<compile_context>
chip_gen: v5e
topology: v5e:2x2
jax: 0.10.0
libtpu: 0.0.40
codegen_flags: <defaults>
</compile_context>

<pallas_src>
import functools

import jax
import jax.numpy as jnp
from jax.experimental import pallas as pl
from jax.experimental.pallas import tpu as pltpu

CP = 128  # padded channel count == TPU lane width


# ----------------------------- fused Pallas kernel ---------------------------

def _block_kernel(*refs, stride, H, W, C, eps):
    """One residual block for one sample, fully VMEM-resident."""
    if stride == 1:
        (x_ref, w1_ref, g1_ref, b1_ref, w2_ref, g2_ref, b2_ref,
         out_ref, hpad_ref) = refs
    else:
        (x_ref, w1_ref, g1_ref, b1_ref, w2_ref, g2_ref, b2_ref,
         wsc_ref, gsc_ref, bsc_ref, out_ref, hpad_ref) = refs

    Ho, Wo = H // stride, W // stride
    M = Ho * Wo

    def gn_affine(v, g_ref, b_ref, relu):
        # GroupNorm(num_groups=1) over the whole (H, W, C) extent of a sample.
        # v: (M, CP); only the first C channels are real (pad channels are 0).
        mask = jax.lax.broadcasted_iota(jnp.int32, v.shape, 1) < C
        n = float(M * C)
        mean = jnp.sum(jnp.where(mask, v, 0.0)) / n
        xc = v - mean
        var = jnp.sum(jnp.where(mask, xc * xc, 0.0)) / n
        y = xc * jax.lax.rsqrt(var + eps) * g_ref[...] + b_ref[...]
        return jnp.maximum(y, 0.0) if relu else y

    def conv3x3(tap, w_ref):
        # Sum of 9 shifted (M, CP) @ (CP, CP) matmuls, f32 accumulate.
        acc = jnp.zeros((M, CP), jnp.float32)
        for ki in range(3):
            for kj in range(3):
                xt = tap(ki, kj)                              # (Ho, Wo, CP)
                acc = acc + jnp.dot(xt.reshape(M, CP), w_ref[ki * 3 + kj],
                                    preferred_element_type=jnp.float32)
        return acc

    if stride == 1:
        tap1 = lambda ki, kj: x_ref[0, ki:ki + Ho, kj:kj + Wo, :]
        xs = x_ref[0, 1:H + 1, 1:W + 1, :]                    # original x
    else:
        def tap1(ki, kj):
            p, q, r0, c0 = ki % 2, kj % 2, ki // 2, kj // 2
            return x_ref[0, p * 2 + q, r0:r0 + Ho, c0:c0 + Wo, :]
        xs = x_ref[0, 3, 0:Ho, 0:Wo, :]                       # x[::2, ::2]

    # conv1 -> GN1 -> ReLU
    h1 = gn_affine(conv3x3(tap1, w1_ref), g1_ref, b1_ref, relu=True)

    # stage GN1 output into a spatially padded VMEM scratch for conv2
    hpad_ref[...] = jnp.zeros_like(hpad_ref)
    hpad_ref[1:Ho + 1, 1:Wo + 1, :] = h1.reshape(Ho, Wo, CP)

    # conv2 -> GN2
    tap2 = lambda ki, kj: hpad_ref[ki:ki + Ho, kj:kj + Wo, :]
    y = gn_affine(conv3x3(tap2, w2_ref), g2_ref, b2_ref, relu=False)

    # shortcut
    if stride == 1:
        sc = xs.reshape(M, CP)                                # identity
    else:
        sc = jnp.dot(xs.reshape(M, CP), wsc_ref[...],
                     preferred_element_type=jnp.float32)      # 1x1 stride-2 conv
        sc = gn_affine(sc, gsc_ref, bsc_ref, relu=False)

    out_ref[0] = jnp.maximum(y + sc, 0.0)


# ------------------------------ wrapper / glue --------------------------------

def _pad_channels(a, cp=CP):
    return jnp.pad(a, [(0, 0)] * (a.ndim - 1) + [(0, cp - a.shape[-1])])


def _prep_conv_w(w):
    # (3, 3, Ci, Co) -> (9, CP, CP); pad channels are zero on both axes.
    ci, co = w.shape[2], w.shape[3]
    wp = jnp.zeros((3, 3, CP, CP), jnp.float32).at[:, :, :ci, :co].set(w)
    return wp.reshape(9, CP, CP)


@functools.partial(jax.jit, static_argnames=("stride",))
def block_forward(x, params, stride):
    """Pallas implementation of Block.forward (NHWC activations, HWIO weights)."""
    N, H, W, Cin = x.shape
    Cout = params["w1"].shape[-1]
    assert H % 2 == 0 and W % 2 == 0
    Ho, Wo = H // stride, W // stride
    M = Ho * Wo

    # Lane-dense (channel-padded), spatially padded input: (N, H+2, W+2, CP).
    xp = jnp.pad(_pad_channels(x), ((0, 0), (1, 1), (1, 1), (0, 0)))

    w1p, w2p = _prep_conv_w(params["w1"]), _prep_conv_w(params["w2"])
    g1p, b1p = _pad_channels(params["g1"])[None], _pad_channels(params["b1"])[None]
    g2p, b2p = _pad_channels(params["g2"])[None], _pad_channels(params["b2"])[None]

    vec_spec = pl.BlockSpec((1, CP), lambda i: (0, 0))
    w_spec = pl.BlockSpec((9, CP, CP), lambda i: (0, 0, 0))

    if stride == 1:
        args = (xp, w1p, g1p, b1p, w2p, g2p, b2p)
        in_specs = [pl.BlockSpec((1, H + 2, W + 2, CP), lambda i: (i, 0, 0, 0)),
                    w_spec, vec_spec, vec_spec, w_spec, vec_spec, vec_spec]
    else:
        # Polyphase repack: xph[n, 2p+q, i, j, c] = xp[n, 2i+p, 2j+q, c].
        # Every stride-2 tap then becomes a contiguous static slice in-kernel.
        Hp2, Wp2 = (H + 2) // 2, (W + 2) // 2
        xph = xp.reshape(N, Hp2, 2, Wp2, 2, CP).transpose(0, 2, 4, 1, 3, 5)
        xph = xph.reshape(N, 4, Hp2, Wp2, CP)
        wscp = jnp.zeros((CP, CP), jnp.float32).at[:Cin, :Cout].set(params["wsc"])
        gscp = _pad_channels(params["gsc"])[None]
        bscp = _pad_channels(params["bsc"])[None]
        args = (xph, w1p, g1p, b1p, w2p, g2p, b2p, wscp, gscp, bscp)
        in_specs = [pl.BlockSpec((1, 4, Hp2, Wp2, CP), lambda i: (i, 0, 0, 0, 0)),
                    w_spec, vec_spec, vec_spec, w_spec, vec_spec, vec_spec,
                    pl.BlockSpec((CP, CP), lambda i: (0, 0)),
                    vec_spec, vec_spec]

    kernel = functools.partial(_block_kernel, stride=stride,
                               H=H, W=W, C=Cout, eps=1e-5)
    out = pl.pallas_call(
        kernel,
        grid=(N,),
        out_shape=jax.ShapeDtypeStruct((N, M, CP), jnp.float32),
        in_specs=in_specs,
        out_specs=pl.BlockSpec((1, M, CP), lambda i: (i, 0, 0)),
        scratch_shapes=[pltpu.VMEM((Ho + 2, Wo + 2, CP), jnp.float32)],
        compiler_params=pltpu.CompilerParams(
            dimension_semantics=("parallel",)),
    )(*args)
    return out.reshape(N, Ho, Wo, CP)[..., :Cout]


# -------------------------- reference (pure JAX) ------------------------------

def _ref_gn(x, g, b, eps=1e-5):
    mean = jnp.mean(x, axis=(1, 2, 3), keepdims=True)
    var = jnp.mean((x - mean) ** 2, axis=(1, 2, 3), keepdims=True)
    return (x - mean) * jax.lax.rsqrt(var + eps) * g + b


def _ref_conv(x, w_hwio, stride, pad):
    return jax.lax.conv_general_dilated(
        x, w_hwio, window_strides=(stride, stride),
        padding=((pad, pad), (pad, pad)),
        dimension_numbers=("NHWC", "HWIO", "NHWC"))


def ref_block_forward(x, params, stride):
    y = _ref_conv(x, params["w1"], stride, 1)
    y = jax.nn.relu(_ref_gn(y, params["g1"], params["b1"]))
    y = _ref_conv(y, params["w2"], 1, 1)
    y = _ref_gn(y, params["g2"], params["b2"])
    if stride != 1:
        sc = _ref_conv(x, params["wsc"][None, None], 2, 0)
        sc = _ref_gn(sc, params["gsc"], params["bsc"])
    else:
        sc = x
    return jax.nn.relu(y + sc)


# ------------------------------- params --------------------------------------

def init_params(key, in_chans, out_chans, stride):
    ks = jax.random.split(key, 6)
    p = {
        "w1": 0.1 * jax.random.normal(ks[0], (3, 3, in_chans, out_chans), jnp.float32),
        "g1": jnp.ones((out_chans,), jnp.float32),
        "b1": jnp.zeros((out_chans,), jnp.float32),
        "w2": 0.1 * jax.random.normal(ks[1], (3, 3, out_chans, out_chans), jnp.float32),
        "g2": 1.0 + 0.05 * jax.random.normal(ks[2], (out_chans,), jnp.float32),
        "b2": 0.05 * jax.random.normal(ks[3], (out_chans,), jnp.float32),
    }
    if stride != 1:
        p["wsc"] = 0.1 * jax.random.normal(ks[4], (in_chans, out_chans), jnp.float32)
        p["gsc"] = jnp.ones((out_chans,), jnp.float32)
        p["bsc"] = jnp.zeros((out_chans,), jnp.float32)
    return p


# --------------------------------- main ---------------------------------------

if __name__ == "__main__":
    key = jax.random.PRNGKey(0)
    k_in1, k_in2, k_p1, k_p2 = jax.random.split(key, 4)

    # Case 1: stride=2 downsampling block (4 -> 8 channels, 16x16 -> 8x8).
    N, Cin, Cout, S = 2, 4, 8, 16
    x1 = jax.random.normal(k_in1, (N, S, S, Cin), jnp.float32)
    p1 = init_params(k_p1, Cin, Cout, stride=2)
    out1 = jax.block_until_ready(block_forward(x1, p1, stride=2))
    ref1 = ref_block_forward(x1, p1, stride=2)
    assert out1.shape == (N, S // 2, S // 2, Cout)
    assert jnp.allclose(out1, ref1, rtol=1e-4, atol=1e-4)

    # Case 2: stride=1 identity-shortcut block (4 -> 4 channels).
    x2 = jax.random.normal(k_in2, (N, S, S, Cin), jnp.float32)
    p2 = init_params(k_p2, Cin, Cin, stride=1)
    out2 = jax.block_until_ready(block_forward(x2, p2, stride=1))
    ref2 = ref_block_forward(x2, p2, stride=1)
    assert out2.shape == (N, S, S, Cin)
    assert jnp.allclose(out2, ref2, rtol=1e-4, atol=1e-4)

    print("KERNEL_OK")
</pallas_src>

<mosaic_0001>
module attributes {stable_mosaic.version = 11 : i64} {
  func.func @_block_kernel(%arg0: i32, %arg1: memref<1x4x9x9x128xf32, #tpu.memory_space<vmem>>, %arg2: memref<9x128x128xf32, #tpu.memory_space<vmem>>, %arg3: memref<1x128xf32, #tpu.memory_space<vmem>>, %arg4: memref<1x128xf32, #tpu.memory_space<vmem>>, %arg5: memref<9x128x128xf32, #tpu.memory_space<vmem>>, %arg6: memref<1x128xf32, #tpu.memory_space<vmem>>, %arg7: memref<1x128xf32, #tpu.memory_space<vmem>>, %arg8: memref<128x128xf32, #tpu.memory_space<vmem>>, %arg9: memref<1x128xf32, #tpu.memory_space<vmem>>, %arg10: memref<1x128xf32, #tpu.memory_space<vmem>>, %arg11: memref<1x64x128xf32, #tpu.memory_space<vmem>>, %arg12: memref<10x10x128xf32, #tpu.memory_space<vmem>>) attributes {dimension_semantics = [#tpu.dimension_semantics<parallel>], iteration_bounds = array<i64: 2>, scalar_prefetch = 0 : i64, scratch_operands = 1 : i64, tpu.core_type = #tpu.core_type<tc>, window_params = [{transform_indices = @transform_0, window_bounds = array<i64: 1, 4, 9, 9, 128>}, {pipeline_mode = #tpu.pipeline_mode<synchronous>, transform_indices = @transform_1, window_bounds = array<i64: 9, 128, 128>}, {pipeline_mode = #tpu.pipeline_mode<synchronous>, transform_indices = @transform_2, window_bounds = array<i64: 1, 128>}, {pipeline_mode = #tpu.pipeline_mode<synchronous>, transform_indices = @transform_3, window_bounds = array<i64: 1, 128>}, {pipeline_mode = #tpu.pipeline_mode<synchronous>, transform_indices = @transform_4, window_bounds = array<i64: 9, 128, 128>}, {pipeline_mode = #tpu.pipeline_mode<synchronous>, transform_indices = @transform_5, window_bounds = array<i64: 1, 128>}, {pipeline_mode = #tpu.pipeline_mode<synchronous>, transform_indices = @transform_6, window_bounds = array<i64: 1, 128>}, {pipeline_mode = #tpu.pipeline_mode<synchronous>, transform_indices = @transform_7, window_bounds = array<i64: 128, 128>}, {pipeline_mode = #tpu.pipeline_mode<synchronous>, transform_indices = @transform_8, window_bounds = array<i64: 1, 128>}, {pipeline_mode = #tpu.pipeline_mode<synchronous>, transform_indices = @transform_9, window_bounds = array<i64: 1, 128>}, {transform_indices = @transform_10, window_bounds = array<i64: 1, 64, 128>}]} {
    %c0 = arith.constant 0 : index
    %c3 = arith.constant 3 : index
    %c0_0 = arith.constant 0 : index
    %c0_1 = arith.constant 0 : index
    %c0_2 = arith.constant 0 : index
    %0 = vector.load %arg1[%c0, %c3, %c0_0, %c0_1, %c0_2] : memref<1x4x9x9x128xf32, #tpu.memory_space<vmem>>, vector<1x1x8x8x128xf32>
    %1 = vector.shape_cast %0 : vector<1x1x8x8x128xf32> to vector<8x8x128xf32>
    %cst = arith.constant 0.000000e+00 : f32
    %2 = vector.broadcast %cst : f32 to vector<64x128xf32>
    %c0_3 = arith.constant 0 : index
    %c0_4 = arith.constant 0 : index
    %c0_5 = arith.constant 0 : index
    %c0_6 = arith.constant 0 : index
    %c0_7 = arith.constant 0 : index
    %3 = vector.load %arg1[%c0_3, %c0_4, %c0_5, %c0_6, %c0_7] : memref<1x4x9x9x128xf32, #tpu.memory_space<vmem>>, vector<1x1x8x8x128xf32>
    %4 = vector.shape_cast %3 : vector<1x1x8x8x128xf32> to vector<8x8x128xf32>
    %5 = vector.shape_cast %4 : vector<8x8x128xf32> to vector<64x128xf32>
    %c0_8 = arith.constant 0 : index
    %c0_9 = arith.constant 0 : index
    %c0_10 = arith.constant 0 : index
    %6 = vector.load %arg2[%c0_8, %c0_9, %c0_10] : memref<9x128x128xf32, #tpu.memory_space<vmem>>, vector<1x128x128xf32>
    %7 = vector.shape_cast %6 : vector<1x128x128xf32> to vector<128x128xf32>
    %cst_11 = arith.constant dense<0.000000e+00> : vector<64x128xf32>
    %8 = tpu.matmul %5, %7, %cst_11 {dimension_numbers = #tpu.dot_dimension_numbers<[1], [0], [0], [1], [0, 0, 1, 1], [], []>} : vector<64x128xf32>, vector<128x128xf32>, vector<64x128xf32> -> vector<64x128xf32>
    %9 = arith.addf %2, %8 : vector<64x128xf32>
    %c0_12 = arith.constant 0 : index
    %c1 = arith.constant 1 : index
    %c0_13 = arith.constant 0 : index
    %c0_14 = arith.constant 0 : index
    %c0_15 = arith.constant 0 : index
    %10 = vector.load %arg1[%c0_12, %c1, %c0_13, %c0_14, %c0_15] : memref<1x4x9x9x128xf32, #tpu.memory_space<vmem>>, vector<1x1x8x8x128xf32>
    %11 = vector.shape_cast %10 : vector<1x1x8x8x128xf32> to vector<8x8x128xf32>
    %12 = vector.shape_cast %11 : vector<8x8x128xf32> to vector<64x128xf32>
    %c1_16 = arith.constant 1 : index
    %c0_17 = arith.constant 0 : index
    %c0_18 = arith.constant 0 : index
    %13 = vector.load %arg2[%c1_16, %c0_17, %c0_18] : memref<9x128x128xf32, #tpu.memory_space<vmem>>, vector<1x128x128xf32>
    %14 = vector.shape_cast %13 : vector<1x128x128xf32> to vector<128x128xf32>
    %cst_19 = arith.constant dense<0.000000e+00> : vector<64x128xf32>
    %15 = tpu.matmul %12, %14, %cst_19 {dimension_numbers = #tpu.dot_dimension_numbers<[1], [0], [0], [1], [0, 0, 1, 1], [], []>} : vector<64x128xf32>, vector<128x128xf32>, vector<64x128xf32> -> vector<64x128xf32>
    %16 = arith.addf %9, %15 : vector<64x128xf32>
    %c0_20 = arith.constant 0 : index
    %c0_21 = arith.constant 0 : index
    %c0_22 = arith.constant 0 : index
    %c1_23 = arith.constant 1 : index
    %c0_24 = arith.constant 0 : index
    %17 = vector.load %arg1[%c0_20, %c0_21, %c0_22, %c1_23, %c0_24] : memref<1x4x9x9x128xf32, #tpu.memory_space<vmem>>, vector<1x1x8x8x128xf32>
    %18 = vector.shape_cast %17 : vector<1x1x8x8x128xf32> to vector<8x8x128xf32>
    %19 = vector.shape_cast %18 : vector<8x8x128xf32> to vector<64x128xf32>
    %c2 = arith.constant 2 : index
    %c0_25 = arith.constant 0 : index
    %c0_26 = arith.constant 0 : index
    %20 = vector.load %arg2[%c2, %c0_25, %c0_26] : memref<9x128x128xf32, #tpu.memory_space<vmem>>, vector<1x128x128xf32>
    %21 = vector.shape_cast %20 : vector<1x128x128xf32> to vector<128x128xf32>
    %cst_27 = arith.constant dense<0.000000e+00> : vector<64x128xf32>
    %22 = tpu.matmul %19, %21, %cst_27 {dimension_numbers = #tpu.dot_dimension_numbers<[1], [0], [0], [1], [0, 0, 1, 1], [], []>} : vector<64x128xf32>, vector<128x128xf32>, vector<64x128xf32> -> vector<64x128xf32>
    %23 = arith.addf %16, %22 : vector<64x128xf32>
    %c0_28 = arith.constant 0 : index
    %c2_29 = arith.constant 2 : index
    %c0_30 = arith.constant 0 : index
    %c0_31 = arith.constant 0 : index
    %c0_32 = arith.constant 0 : index
    %24 = vector.load %arg1[%c0_28, %c2_29, %c0_30, %c0_31, %c0_32] : memref<1x4x9x9x128xf32, #tpu.memory_space<vmem>>, vector<1x1x8x8x128xf32>
    %25 = vector.shape_cast %24 : vector<1x1x8x8x128xf32> to vector<8x8x128xf32>
    %26 = vector.shape_cast %25 : vector<8x8x128xf32> to vector<64x128xf32>
    %c3_33 = arith.constant 3 : index
    %c0_34 = arith.constant 0 : index
    %c0_35 = arith.constant 0 : index
    %27 = vector.load %arg2[%c3_33, %c0_34, %c0_35] : memref<9x128x128xf32, #tpu.memory_space<vmem>>, vector<1x128x128xf32>
    %28 = vector.shape_cast %27 : vector<1x128x128xf32> to vector<128x128xf32>
    %cst_36 = arith.constant dense<0.000000e+00> : vector<64x128xf32>
    %29 = tpu.matmul %26, %28, %cst_36 {dimension_numbers = #tpu.dot_dimension_numbers<[1], [0], [0], [1], [0, 0, 1, 1], [], []>} : vector<64x128xf32>, vector<128x128xf32>, vector<64x128xf32> -> vector<64x128xf32>
    %30 = arith.addf %23, %29 : vector<64x128xf32>
    %c0_37 = arith.constant 0 : index
    %c3_38 = arith.constant 3 : index
    %c0_39 = arith.constant 0 : index
    %c0_40 = arith.constant 0 : index
    %c0_41 = arith.constant 0 : index
    %31 = vector.load %arg1[%c0_37, %c3_38, %c0_39, %c0_40, %c0_41] : memref<1x4x9x9x128xf32, #tpu.memory_space<vmem>>, vector<1x1x8x8x128xf32>
    %32 = vector.shape_cast %31 : vector<1x1x8x8x128xf32> to vector<8x8x128xf32>
    %33 = vector.shape_cast %32 : vector<8x8x128xf32> to vector<64x128xf32>
    %c4 = arith.constant 4 : index
    %c0_42 = arith.constant 0 : index
    %c0_43 = arith.constant 0 : index
    %34 = vector.load %arg2[%c4, %c0_42, %c0_43] : memref<9x128x128xf32, #tpu.memory_space<vmem>>, vector<1x128x128xf32>
    %35 = vector.shape_cast %34 : vector<1x128x128xf32> to vector<128x128xf32>
    %cst_44 = arith.constant dense<0.000000e+00> : vector<64x128xf32>
    %36 = tpu.matmul %33, %35, %cst_44 {dimension_numbers = #tpu.dot_dimension_numbers<[1], [0], [0], [1], [0, 0, 1, 1], [], []>} : vector<64x128xf32>, vector<128x128xf32>, vector<64x128xf32> -> vector<64x128xf32>
    %37 = arith.addf %30, %36 : vector<64x128xf32>
    %c0_45 = arith.constant 0 : index
    %c2_46 = arith.constant 2 : index
    %c0_47 = arith.constant 0 : index
    %c1_48 = arith.constant 1 : index
    %c0_49 = arith.constant 0 : index
    %38 = vector.load %arg1[%c0_45, %c2_46, %c0_47, %c1_48, %c0_49] : memref<1x4x9x9x128xf32, #tpu.memory_space<vmem>>, vector<1x1x8x8x128xf32>
    %39 = vector.shape_cast %38 : vector<1x1x8x8x128xf32> to vector<8x8x128xf32>
    %40 = vector.shape_cast %39 : vector<8x8x128xf32> to vector<64x128xf32>
    %c5 = arith.constant 5 : index
    %c0_50 = arith.constant 0 : index
    %c0_51 = arith.constant 0 : index
    %41 = vector.load %arg2[%c5, %c0_50, %c0_51] : memref<9x128x128xf32, #tpu.memory_space<vmem>>, vector<1x128x128xf32>
    %42 = vector.shape_cast %41 : vector<1x128x128xf32> to vector<128x128xf32>
    %cst_52 = arith.constant dense<0.000000e+00> : vector<64x128xf32>
    %43 = tpu.matmul %40, %42, %cst_52 {dimension_numbers = #tpu.dot_dimension_numbers<[1], [0], [0], [1], [0, 0, 1, 1], [], []>} : vector<64x128xf32>, vector<128x128xf32>, vector<64x128xf32> -> vector<64x128xf32>
    %44 = arith.addf %37, %43 : vector<64x128xf32>
    %c0_53 = arith.constant 0 : index
    %c0_54 = arith.constant 0 : index
    %c1_55 = arith.constant 1 : index
    %c0_56 = arith.constant 0 : index
    %c0_57 = arith.constant 0 : index
    %45 = vector.load %arg1[%c0_53, %c0_54, %c1_55, %c0_56, %c0_57] : memref<1x4x9x9x128xf32, #tpu.memory_space<vmem>>, vector<1x1x8x8x128xf32>
    %46 = vector.shape_cast %45 : vector<1x1x8x8x128xf32> to vector<8x8x128xf32>
    %47 = vector.shape_cast %46 : vector<8x8x128xf32> to vector<64x128xf32>
    %c6 = arith.constant 6 : index
    %c0_58 = arith.constant 0 : index
    %c0_59 = arith.constant 0 : index
    %48 = vector.load %arg2[%c6, %c0_58, %c0_59] : memref<9x128x128xf32, #tpu.memory_space<vmem>>, vector<1x128x128xf32>
    %49 = vector.shape_cast %48 : vector<1x128x128xf32> to vector<128x128xf32>
    %cst_60 = arith.constant dense<0.000000e+00> : vector<64x128xf32>
    %50 = tpu.matmul %47, %49, %cst_60 {dimension_numbers = #tpu.dot_dimension_numbers<[1], [0], [0], [1], [0, 0, 1, 1], [], []>} : vector<64x128xf32>, vector<128x128xf32>, vector<64x128xf32> -> vector<64x128xf32>
    %51 = arith.addf %44, %50 : vector<64x128xf32>
    %c0_61 = arith.constant 0 : index
    %c1_62 = arith.constant 1 : index
    %c1_63 = arith.constant 1 : index
    %c0_64 = arith.constant 0 : index
    %c0_65 = arith.constant 0 : index
    %52 = vector.load %arg1[%c0_61, %c1_62, %c1_63, %c0_64, %c0_65] : memref<1x4x9x9x128xf32, #tpu.memory_space<vmem>>, vector<1x1x8x8x128xf32>
    %53 = vector.shape_cast %52 : vector<1x1x8x8x128xf32> to vector<8x8x128xf32>
    %54 = vector.shape_cast %53 : vector<8x8x128xf32> to vector<64x128xf32>
    %c7 = arith.constant 7 : index
    %c0_66 = arith.constant 0 : index
    %c0_67 = arith.constant 0 : index
    %55 = vector.load %arg2[%c7, %c0_66, %c0_67] : memref<9x128x128xf32, #tpu.memory_space<vmem>>, vector<1x128x128xf32>
    %56 = vector.shape_cast %55 : vector<1x128x128xf32> to vector<128x128xf32>
    %cst_68 = arith.constant dense<0.000000e+00> : vector<64x128xf32>
    %57 = tpu.matmul %54, %56, %cst_68 {dimension_numbers = #tpu.dot_dimension_numbers<[1], [0], [0], [1], [0, 0, 1, 1], [], []>} : vector<64x128xf32>, vector<128x128xf32>, vector<64x128xf32> -> vector<64x128xf32>
    %58 = arith.addf %51, %57 : vector<64x128xf32>
    %c0_69 = arith.constant 0 : index
    %c0_70 = arith.constant 0 : index
    %c1_71 = arith.constant 1 : index
    %c1_72 = arith.constant 1 : index
    %c0_73 = arith.constant 0 : index
    %59 = vector.load %arg1[%c0_69, %c0_70, %c1_71, %c1_72, %c0_73] : memref<1x4x9x9x128xf32, #tpu.memory_space<vmem>>, vector<1x1x8x8x128xf32>
    %60 = vector.shape_cast %59 : vector<1x1x8x8x128xf32> to vector<8x8x128xf32>
    %61 = vector.shape_cast %60 : vector<8x8x128xf32> to vector<64x128xf32>
    %c8 = arith.constant 8 : index
    %c0_74 = arith.constant 0 : index
    %c0_75 = arith.constant 0 : index
    %62 = vector.load %arg2[%c8, %c0_74, %c0_75] : memref<9x128x128xf32, #tpu.memory_space<vmem>>, vector<1x128x128xf32>
    %63 = vector.shape_cast %62 : vector<1x128x128xf32> to vector<128x128xf32>
    %cst_76 = arith.constant dense<0.000000e+00> : vector<64x128xf32>
    %64 = tpu.matmul %61, %63, %cst_76 {dimension_numbers = #tpu.dot_dimension_numbers<[1], [0], [0], [1], [0, 0, 1, 1], [], []>} : vector<64x128xf32>, vector<128x128xf32>, vector<64x128xf32> -> vector<64x128xf32>
    %65 = arith.addf %58, %64 : vector<64x128xf32>
    %66 = tpu.iota {dimensions = array<i32: 1>} : vector<64x128xi32>
    %c8_i32 = arith.constant 8 : i32
    %67 = vector.broadcast %c8_i32 : i32 to vector<64x128xi32>
    %68 = arith.cmpi slt, %66, %67 : vector<64x128xi32>
    %cst_77 = arith.constant 0.000000e+00 : f32
    %69 = vector.broadcast %cst_77 : f32 to vector<64x128xf32>
    %70 = arith.select %68, %65, %69 : vector<64x128xi1>, vector<64x128xf32>
    %71 = vector.shape_cast %70 : vector<64x128xf32> to vector<1x64x128xf32>
    %cst_78 = arith.constant dense<0.000000e+00> : vector<1xf32>
    %72 = vector.multi_reduction <add>, %71, %cst_78 [1, 2] : vector<1x64x128xf32> to vector<1xf32>
    %73 = vector.shape_cast %72 : vector<1xf32> to vector<1x1x1xf32>
    %74 = vector.extract %73[0, 0, 0] : f32 from vector<1x1x1xf32>
    %cst_79 = arith.constant 5.120000e+02 : f32
    %75 = arith.divf %74, %cst_79 : f32
    %76 = vector.broadcast %75 : f32 to vector<64x128xf32>
    %77 = arith.subf %65, %76 : vector<64x128xf32>
    %78 = arith.mulf %77, %77 : vector<64x128xf32>
    %cst_80 = arith.constant 0.000000e+00 : f32
    %79 = vector.broadcast %cst_80 : f32 to vector<64x128xf32>
    %80 = arith.select %68, %78, %79 : vector<64x128xi1>, vector<64x128xf32>
    %81 = vector.shape_cast %80 : vector<64x128xf32> to vector<1x64x128xf32>
    %cst_81 = arith.constant dense<0.000000e+00> : vector<1xf32>
    %82 = vector.multi_reduction <add>, %81, %cst_81 [1, 2] : vector<1x64x128xf32> to vector<1xf32>
    %83 = vector.shape_cast %82 : vector<1xf32> to vector<1x1x1xf32>
    %84 = vector.extract %83[0, 0, 0] : f32 from vector<1x1x1xf32>
    %cst_82 = arith.constant 5.120000e+02 : f32
    %85 = arith.divf %84, %cst_82 : f32
    %cst_83 = arith.constant 9.99999974E-6 : f32
    %86 = arith.addf %85, %cst_83 : f32
    %87 = math.rsqrt %86 : f32
    %88 = vector.broadcast %87 : f32 to vector<64x128xf32>
    %89 = arith.mulf %77, %88 : vector<64x128xf32>
    %c0_84 = arith.constant 0 : index
    %c0_85 = arith.constant 0 : index
    %90 = vector.load %arg3[%c0_84, %c0_85] : memref<1x128xf32, #tpu.memory_space<vmem>>, vector<1x128xf32>
    %91 = vector.broadcast %90 : vector<1x128xf32> to vector<64x128xf32>
    %92 = arith.mulf %89, %91 : vector<64x128xf32>
    %c0_86 = arith.constant 0 : index
    %c0_87 = arith.constant 0 : index
    %93 = vector.load %arg4[%c0_86, %c0_87] : memref<1x128xf32, #tpu.memory_space<vmem>>, vector<1x128xf32>
    %94 = vector.broadcast %93 : vector<1x128xf32> to vector<64x128xf32>
    %95 = arith.addf %92, %94 : vector<64x128xf32>
    %cst_88 = arith.constant 0.000000e+00 : f32
    %96 = vector.broadcast %cst_88 : f32 to vector<64x128xf32>
    %97 = arith.maximumf %95, %96 : vector<64x128xf32>
    %cst_89 = arith.constant 0.000000e+00 : f32
    %98 = vector.broadcast %cst_89 : f32 to vector<10x10x128xf32>
    %c0_90 = arith.constant 0 : index
    %c0_91 = arith.constant 0 : index
    %c0_92 = arith.constant 0 : index
    %99 = vector.load %arg12[%c0_90, %c0_91, %c0_92] : memref<10x10x128xf32, #tpu.memory_space<vmem>>, vector<10x10x128xf32>
    tpu.vector_store %arg12[%c0_90, %c0_91, %c0_92], %98 {strides = array<i32>} : memref<10x10x128xf32, #tpu.memory_space<vmem>>, vector<10x10x128xf32>,
    %100 = vector.shape_cast %97 : vector<64x128xf32> to vector<8x8x128xf32>
    %c1_93 = arith.constant 1 : index
    %c1_94 = arith.constant 1 : index
    %c0_95 = arith.constant 0 : index
    %101 = vector.load %arg12[%c1_93, %c1_94, %c0_95] : memref<10x10x128xf32, #tpu.memory_space<vmem>>, vector<8x8x128xf32>
    tpu.vector_store %arg12[%c1_93, %c1_94, %c0_95], %100 {strides = array<i32>} : memref<10x10x128xf32, #tpu.memory_space<vmem>>, vector<8x8x128xf32>,
    %cst_96 = arith.constant 0.000000e+00 : f32
    %102 = vector.broadcast %cst_96 : f32 to vector<64x128xf32>
    %c0_97 = arith.constant 0 : index
    %c0_98 = arith.constant 0 : index
    %c0_99 = arith.constant 0 : index
    %103 = vector.load %arg12[%c0_97, %c0_98, %c0_99] : memref<10x10x128xf32, #tpu.memory_space<vmem>>, vector<8x8x128xf32>
    %104 = vector.shape_cast %103 : vector<8x8x128xf32> to vector<64x128xf32>
    %c0_100 = arith.constant 0 : index
    %c0_101 = arith.constant 0 : index
    %c0_102 = arith.constant 0 : index
    %105 = vector.load %arg5[%c0_100, %c0_101, %c0_102] : memref<9x128x128xf32, #tpu.memory_space<vmem>>, vector<1x128x128xf32>
    %106 = vector.shape_cast %105 : vector<1x128x128xf32> to vector<128x128xf32>
    %cst_103 = arith.constant dense<0.000000e+00> : vector<64x128xf32>
    %107 = tpu.matmul %104, %106, %cst_103 {dimension_numbers = #tpu.dot_dimension_numbers<[1], [0], [0], [1], [0, 0, 1, 1], [], []>} : vector<64x128xf32>, vector<128x128xf32>, vector<64x128xf32> -> vector<64x128xf32>
    %108 = arith.addf %102, %107 : vector<64x128xf32>
    %c0_104 = arith.constant 0 : index
    %c1_105 = arith.constant 1 : index
    %c0_106 = arith.constant 0 : index
    %109 = vector.load %arg12[%c0_104, %c1_105, %c0_106] : memref<10x10x128xf32, #tpu.memory_space<vmem>>, vector<8x8x128xf32>
    %110 = vector.shape_cast %109 : vector<8x8x128xf32> to vector<64x128xf32>
    %c1_107 = arith.constant 1 : index
    %c0_108 = arith.constant 0 : index
    %c0_109 = arith.constant 0 : index
    %111 = vector.load %arg5[%c1_107, %c0_108, %c0_109] : memref<9x128x128xf32, #tpu.memory_space<vmem>>, vector<1x128x128xf32>
    %112 = vector.shape_cast %111 : vector<1x128x128xf32> to vector<128x128xf32>
    %cst_110 = arith.constant dense<0.000000e+00> : vector<64x128xf32>
    %113 = tpu.matmul %110, %112, %cst_110 {dimension_numbers = #tpu.dot_dimension_numbers<[1], [0], [0], [1], [0, 0, 1, 1], [], []>} : vector<64x128xf32>, vector<128x128xf32>, vector<64x128xf32> -> vector<64x128xf32>
    %114 = arith.addf %108, %113 : vector<64x128xf32>
    %c0_111 = arith.constant 0 : index
    %c2_112 = arith.constant 2 : index
    %c0_113 = arith.constant 0 : index
    %115 = vector.load %arg12[%c0_111, %c2_112, %c0_113] : memref<10x10x128xf32, #tpu.memory_space<vmem>>, vector<8x8x128xf32>
    %116 = vector.shape_cast %115 : vector<8x8x128xf32> to vector<64x128xf32>
    %c2_114 = arith.constant 2 : index
    %c0_115 = arith.constant 0 : index
    %c0_116 = arith.constant 0 : index
    %117 = vector.load %arg5[%c2_114, %c0_115, %c0_116] : memref<9x128x128xf32, #tpu.memory_space<vmem>>, vector<1x128x128xf32>
    %118 = vector.shape_cast %117 : vector<1x128x128xf32> to vector<128x128xf32>
    %cst_117 = arith.constant dense<0.000000e+00> : vector<64x128xf32>
    %119 = tpu.matmul %116, %118, %cst_117 {dimension_numbers = #tpu.dot_dimension_numbers<[1], [0], [0], [1], [0, 0, 1, 1], [], []>} : vector<64x128xf32>, vector<128x128xf32>, vector<64x128xf32> -> vector<64x128xf32>
    %120 = arith.addf %114, %119 : vector<64x128xf32>
    %c1_118 = arith.constant 1 : index
    %c0_119 = arith.constant 0 : index
    %c0_120 = arith.constant 0 : index
    %121 = vector.load %arg12[%c1_118, %c0_119, %c0_120] : memref<10x10x128xf32, #tpu.memory_space<vmem>>, vector<8x8x128xf32>
    %122 = vector.shape_cast %121 : vector<8x8x128xf32> to vector<64x128xf32>
    %c3_121 = arith.constant 3 : index
    %c0_122 = arith.constant 0 : index
    %c0_123 = arith.constant 0 : index
    %123 = vector.load %arg5[%c3_121, %c0_122, %c0_123] : memref<9x128x128xf32, #tpu.memory_space<vmem>>, vector<1x128x128xf32>
    %124 = vector.shape_cast %123 : vector<1x128x128xf32> to vector<128x128xf32>
    %cst_124 = arith.constant dense<0.000000e+00> : vector<64x128xf32>
    %125 = tpu.matmul %122, %124, %cst_124 {dimension_numbers = #tpu.dot_dimension_numbers<[1], [0], [0], [1], [0, 0, 1, 1], [], []>} : vector<64x128xf32>, vector<128x128xf32>, vector<64x128xf32> -> vector<64x128xf32>
    %126 = arith.addf %120, %125 : vector<64x128xf32>
    %c1_125 = arith.constant 1 : index
    %c1_126 = arith.constant 1 : index
    %c0_127 = arith.constant 0 : index
    %127 = vector.load %arg12[%c1_125, %c1_126, %c0_127] : memref<10x10x128xf32, #tpu.memory_space<vmem>>, vector<8x8x128xf32>
    %128 = vector.shape_cast %127 : vector<8x8x128xf32> to vector<64x128xf32>
    %c4_128 = arith.constant 4 : index
    %c0_129 = arith.constant 0 : index
    %c0_130 = arith.constant 0 : index
    %129 = vector.load %arg5[%c4_128, %c0_129, %c0_130] : memref<9x128x128xf32, #tpu.memory_space<vmem>>, vector<1x128x128xf32>
    %130 = vector.shape_cast %129 : vector<1x128x128xf32> to vector<128x128xf32>
    %cst_131 = arith.constant dense<0.000000e+00> : vector<64x128xf32>
    %131 = tpu.matmul %128, %130, %cst_131 {dimension_numbers = #tpu.dot_dimension_numbers<[1], [0], [0], [1], [0, 0, 1, 1], [], []>} : vector<64x128xf32>, vector<128x128xf32>, vector<64x128xf32> -> vector<64x128xf32>
    %132 = arith.addf %126, %131 : vector<64x128xf32>
    %c1_132 = arith.constant 1 : index
    %c2_133 = arith.constant 2 : index
    %c0_134 = arith.constant 0 : index
    %133 = vector.load %arg12[%c1_132, %c2_133, %c0_134] : memref<10x10x128xf32, #tpu.memory_space<vmem>>, vector<8x8x128xf32>
    %134 = vector.shape_cast %133 : vector<8x8x128xf32> to vector<64x128xf32>
    %c5_135 = arith.constant 5 : index
    %c0_136 = arith.constant 0 : index
    %c0_137 = arith.constant 0 : index
    %135 = vector.load %arg5[%c5_135, %c0_136, %c0_137] : memref<9x128x128xf32, #tpu.memory_space<vmem>>, vector<1x128x128xf32>
    %136 = vector.shape_cast %135 : vector<1x128x128xf32> to vector<128x128xf32>
    %cst_138 = arith.constant dense<0.000000e+00> : vector<64x128xf32>
    %137 = tpu.matmul %134, %136, %cst_138 {dimension_numbers = #tpu.dot_dimension_numbers<[1], [0], [0], [1], [0, 0, 1, 1], [], []>} : vector<64x128xf32>, vector<128x128xf32>, vector<64x128xf32> -> vector<64x128xf32>
    %138 = arith.addf %132, %137 : vector<64x128xf32>
    %c2_139 = arith.constant 2 : index
    %c0_140 = arith.constant 0 : index
    %c0_141 = arith.constant 0 : index
    %139 = vector.load %arg12[%c2_139, %c0_140, %c0_141] : memref<10x10x128xf32, #tpu.memory_space<vmem>>, vector<8x8x128xf32>
    %140 = vector.shape_cast %139 : vector<8x8x128xf32> to vector<64x128xf32>
    %c6_142 = arith.constant 6 : index
    %c0_143 = arith.constant 0 : index
    %c0_144 = arith.constant 0 : index
    %141 = vector.load %arg5[%c6_142, %c0_143, %c0_144] : memref<9x128x128xf32, #tpu.memory_space<vmem>>, vector<1x128x128xf32>
    %142 = vector.shape_cast %141 : vector<1x128x128xf32> to vector<128x128xf32>
    %cst_145 = arith.constant dense<0.000000e+00> : vector<64x128xf32>
    %143 = tpu.matmul %140, %142, %cst_145 {dimension_numbers = #tpu.dot_dimension_numbers<[1], [0], [0], [1], [0, 0, 1, 1], [], []>} : vector<64x128xf32>, vector<128x128xf32>, vector<64x128xf32> -> vector<64x128xf32>
    %144 = arith.addf %138, %143 : vector<64x128xf32>
    %c2_146 = arith.constant 2 : index
    %c1_147 = arith.constant 1 : index
    %c0_148 = arith.constant 0 : index
    %145 = vector.load %arg12[%c2_146, %c1_147, %c0_148] : memref<10x10x128xf32, #tpu.memory_space<vmem>>, vector<8x8x128xf32>
    %146 = vector.shape_cast %145 : vector<8x8x128xf32> to vector<64x128xf32>
    %c7_149 = arith.constant 7 : index
    %c0_150 = arith.constant 0 : index
    %c0_151 = arith.constant 0 : index
    %147 = vector.load %arg5[%c7_149, %c0_150, %c0_151] : memref<9x128x128xf32, #tpu.memory_space<vmem>>, vector<1x128x128xf32>
    %148 = vector.shape_cast %147 : vector<1x128x128xf32> to vector<128x128xf32>
    %cst_152 = arith.constant dense<0.000000e+00> : vector<64x128xf32>
    %149 = tpu.matmul %146, %148, %cst_152 {dimension_numbers = #tpu.dot_dimension_numbers<[1], [0], [0], [1], [0, 0, 1, 1], [], []>} : vector<64x128xf32>, vector<128x128xf32>, vector<64x128xf32> -> vector<64x128xf32>
    %150 = arith.addf %144, %149 : vector<64x128xf32>
    %c2_153 = arith.constant 2 : index
    %c2_154 = arith.constant 2 : index
    %c0_155 = arith.constant 0 : index
    %151 = vector.load %arg12[%c2_153, %c2_154, %c0_155] : memref<10x10x128xf32, #tpu.memory_space<vmem>>, vector<8x8x128xf32>
    %152 = vector.shape_cast %151 : vector<8x8x128xf32> to vector<64x128xf32>
    %c8_156 = arith.constant 8 : index
    %c0_157 = arith.constant 0 : index
    %c0_158 = arith.constant 0 : index
    %153 = vector.load %arg5[%c8_156, %c0_157, %c0_158] : memref<9x128x128xf32, #tpu.memory_space<vmem>>, vector<1x128x128xf32>
    %154 = vector.shape_cast %153 : vector<1x128x128xf32> to vector<128x128xf32>
    %cst_159 = arith.constant dense<0.000000e+00> : vector<64x128xf32>
    %155 = tpu.matmul %152, %154, %cst_159 {dimension_numbers = #tpu.dot_dimension_numbers<[1], [0], [0], [1], [0, 0, 1, 1], [], []>} : vector<64x128xf32>, vector<128x128xf32>, vector<64x128xf32> -> vector<64x128xf32>
    %156 = arith.addf %150, %155 : vector<64x128xf32>
    %157 = tpu.iota {dimensions = array<i32: 1>} : vector<64x128xi32>
    %c8_i32_160 = arith.constant 8 : i32
    %158 = vector.broadcast %c8_i32_160 : i32 to vector<64x128xi32>
    %159 = arith.cmpi slt, %157, %158 : vector<64x128xi32>
    %cst_161 = arith.constant 0.000000e+00 : f32
    %160 = vector.broadcast %cst_161 : f32 to vector<64x128xf32>
    %161 = arith.select %159, %156, %160 : vector<64x128xi1>, vector<64x128xf32>
    %162 = vector.shape_cast %161 : vector<64x128xf32> to vector<1x64x128xf32>
    %cst_162 = arith.constant dense<0.000000e+00> : vector<1xf32>
    %163 = vector.multi_reduction <add>, %162, %cst_162 [1, 2] : vector<1x64x128xf32> to vector<1xf32>
    %164 = vector.shape_cast %163 : vector<1xf32> to vector<1x1x1xf32>
    %165 = vector.extract %164[0, 0, 0] : f32 from vector<1x1x1xf32>
    %cst_163 = arith.constant 5.120000e+02 : f32
    %166 = arith.divf %165, %cst_163 : f32
    %167 = vector.broadcast %166 : f32 to vector<64x128xf32>
    %168 = arith.subf %156, %167 : vector<64x128xf32>
    %169 = arith.mulf %168, %168 : vector<64x128xf32>
    %cst_164 = arith.constant 0.000000e+00 : f32
    %170 = vector.broadcast %cst_164 : f32 to vector<64x128xf32>
    %171 = arith.select %159, %169, %170 : vector<64x128xi1>, vector<64x128xf32>
    %172 = vector.shape_cast %171 : vector<64x128xf32> to vector<1x64x128xf32>
    %cst_165 = arith.constant dense<0.000000e+00> : vector<1xf32>
    %173 = vector.multi_reduction <add>, %172, %cst_165 [1, 2] : vector<1x64x128xf32> to vector<1xf32>
    %174 = vector.shape_cast %173 : vector<1xf32> to vector<1x1x1xf32>
    %175 = vector.extract %174[0, 0, 0] : f32 from vector<1x1x1xf32>
    %cst_166 = arith.constant 5.120000e+02 : f32
    %176 = arith.divf %175, %cst_166 : f32
    %cst_167 = arith.constant 9.99999974E-6 : f32
    %177 = arith.addf %176, %cst_167 : f32
    %178 = math.rsqrt %177 : f32
    %179 = vector.broadcast %178 : f32 to vector<64x128xf32>
    %180 = arith.mulf %168, %179 : vector<64x128xf32>
    %c0_168 = arith.constant 0 : index
    %c0_169 = arith.constant 0 : index
    %181 = vector.load %arg6[%c0_168, %c0_169] : memref<1x128xf32, #tpu.memory_space<vmem>>, vector<1x128xf32>
    %182 = vector.broadcast %181 : vector<1x128xf32> to vector<64x128xf32>
    %183 = arith.mulf %180, %182 : vector<64x128xf32>
    %c0_170 = arith.constant 0 : index
    %c0_171 = arith.constant 0 : index
    %184 = vector.load %arg7[%c0_170, %c0_171] : memref<1x128xf32, #tpu.memory_space<vmem>>, vector<1x128xf32>
    %185 = vector.broadcast %184 : vector<1x128xf32> to vector<64x128xf32>
    %186 = arith.addf %183, %185 : vector<64x128xf32>
    %187 = vector.shape_cast %1 : vector<8x8x128xf32> to vector<64x128xf32>
    %c0_172 = arith.constant 0 : index
    %c0_173 = arith.constant 0 : index
    %188 = vector.load %arg8[%c0_172, %c0_173] : memref<128x128xf32, #tpu.memory_space<vmem>>, vector<128x128xf32>
    %cst_174 = arith.constant dense<0.000000e+00> : vector<64x128xf32>
    %189 = tpu.matmul %187, %188, %cst_174 {dimension_numbers = #tpu.dot_dimension_numbers<[1], [0], [0], [1], [0, 0, 1, 1], [], []>} : vector<64x128xf32>, vector<128x128xf32>, vector<64x128xf32> -> vector<64x128xf32>
    %190 = tpu.iota {dimensions = array<i32: 1>} : vector<64x128xi32>
    %c8_i32_175 = arith.constant 8 : i32
    %191 = vector.broadcast %c8_i32_175 : i32 to vector<64x128xi32>
    %192 = arith.cmpi slt, %190, %191 : vector<64x128xi32>
    %cst_176 = arith.constant 0.000000e+00 : f32
    %193 = vector.broadcast %cst_176 : f32 to vector<64x128xf32>
    %194 = arith.select %192, %189, %193 : vector<64x128xi1>, vector<64x128xf32>
    %195 = vector.shape_cast %194 : vector<64x128xf32> to vector<1x64x128xf32>
    %cst_177 = arith.constant dense<0.000000e+00> : vector<1xf32>
    %196 = vector.multi_reduction <add>, %195, %cst_177 [1, 2] : vector<1x64x128xf32> to vector<1xf32>
    %197 = vector.shape_cast %196 : vector<1xf32> to vector<1x1x1xf32>
    %198 = vector.extract %197[0, 0, 0] : f32 from vector<1x1x1xf32>
    %cst_178 = arith.constant 5.120000e+02 : f32
    %199 = arith.divf %198, %cst_178 : f32
    %200 = vector.broadcast %199 : f32 to vector<64x128xf32>
    %201 = arith.subf %189, %200 : vector<64x128xf32>
    %202 = arith.mulf %201, %201 : vector<64x128xf32>
    %cst_179 = arith.constant 0.000000e+00 : f32
    %203 = vector.broadcast %cst_179 : f32 to vector<64x128xf32>
    %204 = arith.select %192, %202, %203 : vector<64x128xi1>, vector<64x128xf32>
    %205 = vector.shape_cast %204 : vector<64x128xf32> to vector<1x64x128xf32>
    %cst_180 = arith.constant dense<0.000000e+00> : vector<1xf32>
    %206 = vector.multi_reduction <add>, %205, %cst_180 [1, 2] : vector<1x64x128xf32> to vector<1xf32>
    %207 = vector.shape_cast %206 : vector<1xf32> to vector<1x1x1xf32>
    %208 = vector.extract %207[0, 0, 0] : f32 from vector<1x1x1xf32>
    %cst_181 = arith.constant 5.120000e+02 : f32
    %209 = arith.divf %208, %cst_181 : f32
    %cst_182 = arith.constant 9.99999974E-6 : f32
    %210 = arith.addf %209, %cst_182 : f32
    %211 = math.rsqrt %210 : f32
    %212 = vector.broadcast %211 : f32 to vector<64x128xf32>
    %213 = arith.mulf %201, %212 : vector<64x128xf32>
    %c0_183 = arith.constant 0 : index
    %c0_184 = arith.constant 0 : index
    %214 = vector.load %arg9[%c0_183, %c0_184] : memref<1x128xf32, #tpu.memory_space<vmem>>, vector<1x128xf32>
    %215 = vector.broadcast %214 : vector<1x128xf32> to vector<64x128xf32>
    %216 = arith.mulf %213, %215 : vector<64x128xf32>
    %c0_185 = arith.constant 0 : index
    %c0_186 = arith.constant 0 : index
    %217 = vector.load %arg10[%c0_185, %c0_186] : memref<1x128xf32, #tpu.memory_space<vmem>>, vector<1x128xf32>
    %218 = vector.broadcast %217 : vector<1x128xf32> to vector<64x128xf32>
    %219 = arith.addf %216, %218 : vector<64x128xf32>
    %220 = arith.addf %186, %219 : vector<64x128xf32>
    %cst_187 = arith.constant 0.000000e+00 : f32
    %221 = vector.broadcast %cst_187 : f32 to vector<64x128xf32>
    %222 = arith.maximumf %220, %221 : vector<64x128xf32>
    %c0_188 = arith.constant 0 : index
    %c0_189 = arith.constant 0 : index
    %c0_190 = arith.constant 0 : index
    %223 = vector.load %arg11[%c0_188, %c0_189, %c0_190] : memref<1x64x128xf32, #tpu.memory_space<vmem>>, vector<1x64x128xf32>
    %224 = vector.shape_cast %223 : vector<1x64x128xf32> to vector<64x128xf32>
    %225 = vector.shape_cast %222 : vector<64x128xf32> to vector<1x64x128xf32>
    tpu.vector_store %arg11[%c0_188, %c0_189, %c0_190], %225 {strides = array<i32>} : memref<1x64x128xf32, #tpu.memory_space<vmem>>, vector<1x64x128xf32>,
    return
  }
  func.func @transform_0(%arg0: i32) -> (i32, i32, i32, i32, i32) {
    %c0_i32 = arith.constant 0 : i32
    %c0_i32_0 = arith.constant 0 : i32
    %c0_i32_1 = arith.constant 0 : i32
    %c0_i32_2 = arith.constant 0 : i32
    %c0_i32_3 = arith.constant 0 : i32
    return %arg0, %c0_i32, %c0_i32_0, %c0_i32_1, %c0_i32_2 : i32, i32, i32, i32, i32
  }
  func.func @transform_1(%arg0: i32) -> (i32, i32, i32) {
    %c0_i32 = arith.constant 0 : i32
    %c0_i32_0 = arith.constant 0 : i32
    %c0_i32_1 = arith.constant 0 : i32
    %c0_i32_2 = arith.constant 0 : i32
    return %c0_i32, %c0_i32_0, %c0_i32_1 : i32, i32, i32
  }
  func.func @transform_2(%arg0: i32) -> (i32, i32) {
    %c0_i32 = arith.constant 0 : i32
    %c0_i32_0 = arith.constant 0 : i32
    %c0_i32_1 = arith.constant 0 : i32
    return %c0_i32, %c0_i32_0 : i32, i32
  }
  func.func @transform_3(%arg0: i32) -> (i32, i32) {
    %c0_i32 = arith.constant 0 : i32
    %c0_i32_0 = arith.constant 0 : i32
    %c0_i32_1 = arith.constant 0 : i32
    return %c0_i32, %c0_i32_0 : i32, i32
  }
  func.func @transform_4(%arg0: i32) -> (i32, i32, i32) {
    %c0_i32 = arith.constant 0 : i32
    %c0_i32_0 = arith.constant 0 : i32
    %c0_i32_1 = arith.constant 0 : i32
    %c0_i32_2 = arith.constant 0 : i32
    return %c0_i32, %c0_i32_0, %c0_i32_1 : i32, i32, i32
  }
  func.func @transform_5(%arg0: i32) -> (i32, i32) {
    %c0_i32 = arith.constant 0 : i32
    %c0_i32_0 = arith.constant 0 : i32
    %c0_i32_1 = arith.constant 0 : i32
    return %c0_i32, %c0_i32_0 : i32, i32
  }
  func.func @transform_6(%arg0: i32) -> (i32, i32) {
    %c0_i32 = arith.constant 0 : i32
    %c0_i32_0 = arith.constant 0 : i32
    %c0_i32_1 = arith.constant 0 : i32
    return %c0_i32, %c0_i32_0 : i32, i32
  }
  func.func @transform_7(%arg0: i32) -> (i32, i32) {
    %c0_i32 = arith.constant 0 : i32
    %c0_i32_0 = arith.constant 0 : i32
    %c0_i32_1 = arith.constant 0 : i32
    return %c0_i32, %c0_i32_0 : i32, i32
  }
  func.func @transform_8(%arg0: i32) -> (i32, i32) {
    %c0_i32 = arith.constant 0 : i32
    %c0_i32_0 = arith.constant 0 : i32
    %c0_i32_1 = arith.constant 0 : i32
    return %c0_i32, %c0_i32_0 : i32, i32
  }
  func.func @transform_9(%arg0: i32) -> (i32, i32) {
    %c0_i32 = arith.constant 0 : i32
    %c0_i32_0 = arith.constant 0 : i32
    %c0_i32_1 = arith.constant 0 : i32
    return %c0_i32, %c0_i32_0 : i32, i32
  }
  func.func @transform_10(%arg0: i32) -> (i32, i32, i32) {
    %c0_i32 = arith.constant 0 : i32
    %c0_i32_0 = arith.constant 0 : i32
    %c0_i32_1 = arith.constant 0 : i32
    return %arg0, %c0_i32, %c0_i32_0 : i32, i32, i32
  }
}

</mosaic_0001>

<bundles_post_ra>
// kernel: block_forward.1
= control target key start
LH: loop header
LB: loop body
LE: loop exit
PB: predicated region body
PF: predicated region fallthrough
CT: control target
= control target key end

     0   :  { %s4499_s0 = inlined_call_operand.vmem [shape: f32[2,4,9,9,128], index: 0, kind: input, shape index: {}]   ;;  %s4500_s1 = inlined_call_operand.vmem [shape: f32[9,128,128], index: 1, kind: input, shape index: {}]   ;;  %s4501_s2 = inlined_call_operand.vmem [shape: f32[1,128], index: 2, kind: input, shape index: {}]   ;;  %s4502_s3 = inlined_call_operand.vmem [shape: f32[1,128], index: 3, kind: input, shape index: {}]   ;;  %s4503_s4 = inlined_call_operand.vmem [shape: f32[9,128,128], index: 4, kind: input, shape index: {}]   ;;  %s4504_s5 = inlined_call_operand.vmem [shape: f32[1,128], index: 5, kind: input, shape index: {}]   ;;  %s4505_s6 = inlined_call_operand.vmem [shape: f32[1,128], index: 6, kind: input, shape index: {}]   ;;  %s4506_s7 = inlined_call_operand.vmem [shape: f32[128,128], index: 7, kind: input, shape index: {}]   ;;  %s4507_s8 = inlined_call_operand.vmem [shape: f32[1,128], index: 8, kind: input, shape index: {}]   ;;  %s4508_s9 = inlined_call_operand.vmem [shape: f32[1,128], index: 9, kind: input, shape index: {}]   ;;  %s4509_s10 = inlined_call_operand.hbm [shape: f32[2,64,128], index: 10, kind: output, shape index: {}]  }
   0x1   :  { %4510 = sst [smem:[#allocation15_spill]] %s4499_s0 }
   0x2   :  { %4511 = sst [smem:[#allocation16_spill]] %s4500_s1 }
   0x3   :  { %15 = vsyncpa [#allocation4], 0 }
   0x4   :  { %17 = vsyncpa [#allocation4 + $0x1], 0  ;;  %s2829_s13 = smov 0   ;;  %s2831_s14 = smov 0  }
   0x5   :  { %s2833_s15 = smov 0   ;;  %s2835_s16 = smov 0  }
   0x6 LB: > { %s2850_s17 = sadd.s32 4294967295, %s2768_s16   ;;  %s2248_s18 = sadd.s32 4294967294, %s2768_s16   ;;  %s2768_s16 = sphi %s2835_s16, %s4537_s16   ;;  %s2764_s15 = sphi %s2833_s15, %s4536_s15   ;;  %s2760_s14 = sphi %s2831_s14, %s4535_s14   ;;  %s2756_s13 = sphi %s2829_s13, %s4534_s13  }
   0x7   : > { %s2854_s19 = sadd.s32 1, %s2768_s16   ;;  %s245_s20 = sadd.s32 1, %s2764_s15 }
   0x8   : > { %s242_s21 = ssub.s32 %s2768_s16, %s2854_s19  ;;  %p255_p0 = scmp.ne.s32.totalorder %s2764_s15, %s2760_s14 }
   0x9   : > { %p243_p1 = scmp.eq.s32.totalorder %s242_s21, 0  ;;  %p256_p2 = scmp.eq.s32.totalorder %s2850_s17, 1 }
   0xa   : > { %p261_p3 = scmp.ne.s32.totalorder %s2760_s14, %s2756_s13  ;;  %p262_p4 = scmp.eq.s32.totalorder %s2248_s18, 1 }
   0xb   : > { %s2865_s22 = scalar_select %p243_p1, %s2764_s15, %s245_s20  }
   0xc   : > { %p2867_p5 = por %p256_p2, %p255_p0  ;;  %p2871_p6 = por %p262_p4, %p261_p3 }
   0xd   : > { %4512 = sst [smem:[#allocation6_spill]] %s2865_s22  ;;  %p2251_p7 = scmp.ge.s32.totalorder %s2768_s16, 1 }
   0xe   : > { %p315_p8 = scmp.lt.s32.totalorder %s2768_s16, 3 }
  0x10   : > { %p316_p9 = pnand %p2251_p7, %p315_p8 }
  0x12   : > { %319 = sbr.rel (%p316_p9) target bundleno = 1854 (0x73e), region = 60 }
  0x17   : > { %s4515_s1 = sld [smem:[#allocation16_spill]]  ;;  %p353_p10 = scmp.lt.s32.totalorder %s2850_s17, 1 }
  0x18   : > { %s4516_s0 = sld [smem:[#allocation15_spill]] }
  0x19   : > { %s2971_s30 = scalar_select %p353_p10, %s2850_s17, 1 }
  0x1b   : > { %s2620_s18 = smul.u32 576, %s2971_s30 }
  0x1d   : > { %v2285_v0 = vld [vmem:[%s4515_s1 + $0xf8] sm:$0xff]  ;;  %v2284_v3 = vld [vmem:[%s4515_s1 + $0xf0] sm:$0xff]  ;;  %v2283_v6 = vld [vmem:[%s4515_s1 + $0xe8] sm:$0xff] }
  0x1e   : > { %v390_v1 = vld [vmem:[%s4515_s1 + $0x78] sm:$0xff]  ;;  %2572 = vmatpush.msra.mxu3 %v2285_v0  ;;  %v389_v4 = vld [vmem:[%s4515_s1 + $0x70] sm:$0xff]  ;;  %v388_v7 = vld [vmem:[%s4515_s1 + $0x68] sm:$0xff]  ;;  %417 = vmatpush.msra.mxu0 %v2285_v0  ;;  %s3013_s27 = scalar_lea.vmem %s4516_s0, %s2620_s18 }
  0x1f   : > { %v2301_v2 = vld [vmem:[%s4515_s1 + $0x178] sm:$0xff]  ;;  %458 = vmatpush.msra.mxu1 %v390_v1  ;;  %v2300_v5 = vld [vmem:[%s4515_s1 + $0x170] sm:$0xff]  ;;  %v2299_v8 = vld [vmem:[%s4515_s1 + $0x168] sm:$0xff] }
  0x20   : > { %524 = vmatpush.msra.mxu2 %v2301_v2  ;;  %2573 = vmatpush.msra.mxu3 %v2284_v3  ;;  %v2282_v9 = vld [vmem:[%s4515_s1 + $0xe0] sm:$0xff]  ;;  %v2281_v12 = vld [vmem:[%s4515_s1 + $0xd8] sm:$0xff]  ;;  %v2280_v15 = vld [vmem:[%s4515_s1 + $0xd0] sm:$0xff] }
  0x21   : > { %459 = vmatpush.msra.mxu1 %v389_v4  ;;  %v387_v10 = vld [vmem:[%s4515_s1 + $0x60] sm:$0xff]  ;;  %418 = vmatpush.msra.mxu0 %v2284_v3  ;;  %v386_v13 = vld [vmem:[%s4515_s1 + $0x58] sm:$0xff]  ;;  %v385_v16 = vld [vmem:[%s4515_s1 + $0x50] sm:$0xff] }
  0x22   : > { %525 = vmatpush.msra.mxu2 %v2300_v5  ;;  %2574 = vmatpush.msra.mxu3 %v2283_v6  ;;  %v2298_v11 = vld [vmem:[%s4515_s1 + $0x160] sm:$0xff]  ;;  %v2297_v14 = vld [vmem:[%s4515_s1 + $0x158] sm:$0xff]  ;;  %v2296_v17 = vld [vmem:[%s4515_s1 + $0x150] sm:$0xff] }
  0x23   : > { %460 = vmatpush.msra.mxu1 %v388_v7  ;;  %419 = vmatpush.msra.mxu0 %v2283_v6  ;;  %v2279_v18 = vld [vmem:[%s4515_s1 + $0xc8] sm:$0xff]  ;;  %v2278_v21 = vld [vmem:[%s4515_s1 + $0xc0] sm:$0xff]  ;;  %v2277_v24 = vld [vmem:[%s4515_s1 + $0xb8] sm:$0xff] }
  0x24   : > { %526 = vmatpush.msra.mxu2 %v2299_v8  ;;  %2575 = vmatpush.msra.mxu3 %v2282_v9  ;;  %v384_v19 = vld [vmem:[%s4515_s1 + $0x48] sm:$0xff]  ;;  %v383_v22 = vld [vmem:[%s4515_s1 + $0x40] sm:$0xff]  ;;  %v382_v25 = vld [vmem:[%s4515_s1 + $0x38] sm:$0xff] }
  0x25   : > { %461 = vmatpush.msra.mxu1 %v387_v10  ;;  %420 = vmatpush.msra.mxu0 %v2282_v9  ;;  %v2295_v20 = vld [vmem:[%s4515_s1 + $0x148] sm:$0xff]  ;;  %v2294_v23 = vld [vmem:[%s4515_s1 + $0x140] sm:$0xff]  ;;  %v2293_v26 = vld [vmem:[%s4515_s1 + $0x138] sm:$0xff] }
  0x26   : > { %527 = vmatpush.msra.mxu2 %v2298_v11  ;;  %2576 = vmatpush.msra.mxu3 %v2281_v12  ;;  %v2276_v27 = vld [vmem:[%s4515_s1 + $0xb0] sm:$0xff]  ;;  %v2275_v30 = vld [vmem:[%s4515_s1 + $0xa8] sm:$0xff]  ;;  %v2274_v33 = vld [vmem:[%s4515_s1 + $0xa0] sm:$0xff] }
  0x27   : > { %462 = vmatpush.msra.mxu1 %v386_v13  ;;  %421 = vmatpush.msra.mxu0 %v2281_v12  ;;  %v381_v28 = vld [vmem:[%s4515_s1 + $0x30] sm:$0xff]  ;;  %v380_v31 = vld [vmem:[%s4515_s1 + $0x28] sm:$0xff]  ;;  %v379_v34 = vld [vmem:[%s4515_s1 + $0x20] sm:$0xff] }
  0x28   : > { %528 = vmatpush.msra.mxu2 %v2297_v14  ;;  %2577 = vmatpush.msra.mxu3 %v2280_v15  ;;  %v2292_v29 = vld [vmem:[%s4515_s1 + $0x130] sm:$0xff]  ;;  %v2291_v32 = vld [vmem:[%s4515_s1 + $0x128] sm:$0xff]  ;;  %v2290_v35 = vld [vmem:[%s4515_s1 + $0x120] sm:$0xff] }
  0x29   : > { %463 = vmatpush.msra.mxu1 %v385_v16  ;;  %422 = vmatpush.msra.mxu0 %v2280_v15  ;;  %v2273_v36 = vld [vmem:[%s4515_s1 + $0x98] sm:$0xff]  ;;  %v2272_v39 = vld [vmem:[%s4515_s1 + $0x90] sm:$0xff]  ;;  %v2271_v42 = vld [vmem:[%s4515_s1 + $0x88] sm:$0xff] }
  0x2a   : > { %529 = vmatpush.msra.mxu2 %v2296_v17  ;;  %2578 = vmatpush.msra.mxu3 %v2279_v18  ;;  %v378_v37 = vld [vmem:[%s4515_s1 + $0x18] sm:$0xff]  ;;  %v377_v40 = vld [vmem:[%s4515_s1 + $0x10] sm:$0xff]  ;;  %v376_v43 = vld [vmem:[%s4515_s1 + $0x8] sm:$0xff] }
  0x2b   : > { %464 = vmatpush.msra.mxu1 %v384_v19  ;;  %423 = vmatpush.msra.mxu0 %v2279_v18  ;;  %v2289_v38 = vld [vmem:[%s4515_s1 + $0x118] sm:$0xff]  ;;  %v2288_v41 = vld [vmem:[%s4515_s1 + $0x110] sm:$0xff]  ;;  %v2287_v44 = vld [vmem:[%s4515_s1 + $0x108] sm:$0xff] }
  0x2c   : > { %530 = vmatpush.msra.mxu2 %v2295_v20  ;;  %2579 = vmatpush.msra.mxu3 %v2278_v21  ;;  %v2270_v45 = vld [vmem:[%s4515_s1 + $0x80] sm:$0xff]  ;;  %v3034_v48 = vld [vmem:[%s3013_s27 + $0xd0] sm:$0xff]  ;;  %v2325_v51 = vld [vmem:[%s4515_s1 + $0x1f8] sm:$0xff] }
  0x2d   : > { %465 = vmatpush.msra.mxu1 %v383_v22  ;;  %424 = vmatpush.msra.mxu0 %v2278_v21  ;;  %v375_v46 = vld [vmem:[%s4515_s1] sm:$0xff]  ;;  %v2262_v52 = vld [vmem:[%s3013_s27 + $0x90] sm:$0xff]  ;;  %v2389_v53 = vld [vmem:[%s4515_s1 + $0x378] sm:$0xff] }
  0x2e   : > { %531 = vmatpush.msra.mxu2 %v2294_v23  ;;  %2580 = vmatpush.msra.mxu3 %v2277_v24  ;;  %v2286_v47 = vld [vmem:[%s4515_s1 + $0x100] sm:$0xff]  ;;  %v2324_v54 = vld [vmem:[%s4515_s1 + $0x1f0] sm:$0xff]  ;;  %v2341_v55 = vld [vmem:[%s4515_s1 + $0x278] sm:$0xff] }
  0x2f   : > { %466 = vmatpush.msra.mxu1 %v382_v25  ;;  %425 = vmatpush.msra.mxu0 %v2277_v24  ;;  %v367_v49 = vld [vmem:[%s3013_s27] sm:$0xff]  ;;  %v2365_v56 = vld [vmem:[%s4515_s1 + $0x2f8] sm:$0xff]  ;;  %v2323_v57 = vld [vmem:[%s4515_s1 + $0x1e8] sm:$0xff] }
  0x30   : > { %532 = vmatpush.msra.mxu2 %v2293_v26  ;;  %2581 = vmatpush.msra.mxu3 %v2276_v27  ;;  %v499_v50 = vld [vmem:[%s3013_s27 + $0x1] sm:$0xff]  ;;  %v2340_v58 = vld [vmem:[%s4515_s1 + $0x270] sm:$0xff]  ;;  %v2321_v3 = vld [vmem:[%s4515_s1 + $0x1d8] sm:$0xff] }
  0x31   : > { %467 = vmatpush.msra.mxu1 %v381_v28  ;;  %426 = vmatpush.msra.mxu0 %v2276_v27  ;;  %v2388_v59 = vld [vmem:[%s4515_s1 + $0x370] sm:$0xff]  ;;  %v2322_v61 = vld [vmem:[%s4515_s1 + $0x1e0] sm:$0xff]  ;;  %v2339_v62 = vld [vmem:[%s4515_s1 + $0x268] sm:$0xff] }
  0x32   : > { %533 = vmatpush.msra.mxu2 %v2292_v29  ;;  %2582 = vmatpush.msra.mxu3 %v2275_v30  ;;  %v2364_v60 = vld [vmem:[%s4515_s1 + $0x2f0] sm:$0xff]  ;;  %v3074_v63 = vld [vmem:[%s3013_s27 + $0xe0] sm:$0xff]  ;;  %v2387_v1 = vld [vmem:[%s4515_s1 + $0x368] sm:$0xff] }
  0x33   : > { %468 = vmatpush.msra.mxu1 %v380_v31  ;;  %427 = vmatpush.msra.mxu0 %v2275_v30  ;;  %v3077_v0 = vld [vmem:[%s3013_s27 + $0x10] sm:$0xff]  ;;  %v2338_v4 = vld [vmem:[%s4515_s1 + $0x260] sm:$0xff]  ;;  %v2363_v5 = vld [vmem:[%s4515_s1 + $0x2e8] sm:$0xff] }
  0x34   : > { %534 = vmatpush.msra.mxu2 %v2291_v32  ;;  %2583 = vmatpush.msra.mxu3 %v2274_v33  ;;  %v3083_v2 = vld [vmem:[%s3013_s27 + $0x11] sm:$0xff]  ;;  %v3100_v7 = vld [vmem:[%s3013_s27 + $0xa0] sm:$0xff]  ;;  %v2319_v10 = vld [vmem:[%s4515_s1 + $0x1c8] sm:$0xff] }
  0x35   : > { %469 = vmatpush.msra.mxu1 %v379_v34  ;;  %428 = vmatpush.msra.mxu0 %v2274_v33  ;;  %v2320_v6 = vld [vmem:[%s4515_s1 + $0x1d0] sm:$0xff]  ;;  %v2337_v8 = vld [vmem:[%s4515_s1 + $0x258] sm:$0xff]  ;;  %v2362_v9 = vld [vmem:[%s4515_s1 + $0x2e0] sm:$0xff] }
  0x36   : > { %535 = vmatpush.msra.mxu2 %v2290_v35  ;;  %2584 = vmatpush.msra.mxu3 %v2273_v36  ;;  %v2386_v11 = vld [vmem:[%s4515_s1 + $0x360] sm:$0xff]  ;;  %v2336_v12 = vld [vmem:[%s4515_s1 + $0x250] sm:$0xff]  ;;  %v2361_v13 = vld [vmem:[%s4515_s1 + $0x2d8] sm:$0xff] }
  0x37   : > { %470 = vmatpush.msra.mxu1 %v378_v37  ;;  %429 = vmatpush.msra.mxu0 %v2273_v36  ;;  %v2318_v14 = vld [vmem:[%s4515_s1 + $0x1c0] sm:$0xff]  ;;  %v2385_v15 = vld [vmem:[%s4515_s1 + $0x358] sm:$0xff]  ;;  %v3129_v16 = vld [vmem:[%s3013_s27 + $0xf0] sm:$0xff] }
  0x38   : > { %536 = vmatpush.msra.mxu2 %v2289_v38  ;;  %2585 = vmatpush.msra.mxu3 %v2272_v39  ;;  %v3132_v17 = vld [vmem:[%s3013_s27 + $0x20] sm:$0xff]  ;;  %v2317_v19 = vld [vmem:[%s4515_s1 + $0x1b8] sm:$0xff]  ;;  %v2335_v20 = vld [vmem:[%s4515_s1 + $0x248] sm:$0xff] }
  0x39   : > { %471 = vmatpush.msra.mxu1 %v377_v40  ;;  %430 = vmatpush.msra.mxu0 %v2272_v39  ;;  %v3135_v18 = vld [vmem:[%s3013_s27 + $0x21] sm:$0xff]  ;;  %v2360_v21 = vld [vmem:[%s4515_s1 + $0x2d0] sm:$0xff]  ;;  %v2333_v28 = vld [vmem:[%s4515_s1 + $0x238] sm:$0xff] }
  0x3a   : > { %537 = vmatpush.msra.mxu2 %v2288_v41  ;;  %2586 = vmatpush.msra.mxu3 %v2271_v42  ;;  %v2316_v22 = vld [vmem:[%s4515_s1 + $0x1b0] sm:$0xff]  ;;  %v2334_v24 = vld [vmem:[%s4515_s1 + $0x240] sm:$0xff]  ;;  %v2315_v26 = vld [vmem:[%s4515_s1 + $0x1a8] sm:$0xff] }
  0x3b   : > { %472 = vmatpush.msra.mxu1 %v376_v43  ;;  %431 = vmatpush.msra.mxu0 %v2271_v42  ;;  %v3152_v23 = vld [vmem:[%s3013_s27 + $0xb0] sm:$0xff]  ;;  %v2359_v27 = vld [vmem:[%s4515_s1 + $0x2c8] sm:$0xff]  ;;  %v2314_v30 = vld [vmem:[%s4515_s1 + $0x1a0] sm:$0xff] }
  0x3c   : > { %538 = vmatpush.msra.mxu2 %v2287_v44  ;;  %2587 = vmatpush.msra.mxu3 %v2270_v45  ;;  %v2384_v25 = vld [vmem:[%s4515_s1 + $0x350] sm:$0xff]  ;;  %v2383_v29 = vld [vmem:[%s4515_s1 + $0x348] sm:$0xff]  ;;  %v2358_v31 = vld [vmem:[%s4515_s1 + $0x2c0] sm:$0xff] }
  0x3d   : > { %473 = vmatpush.msra.mxu1 %v375_v46  ;;  %445 = vmatmul.f32.vlgmr.msra.gmra.mxu3 %v3034_v48  ;;  %v3181_v32 = vld [vmem:[%s3013_s27 + $0x100] sm:$0xff]  ;;  %v3184_v33 = vld [vmem:[%s3013_s27 + $0x30] sm:$0xff]  ;;  %v2313_v35 = vld [vmem:[%s4515_s1 + $0x198] sm:$0xff] }
  0x3e   : > { %539 = vmatpush.msra.mxu2 %v2286_v47  ;;  %474 = vmatmul.f32.vlgmr.msra.gmra.mxu1 %v367_v49  ;;  %v3187_v34 = vld [vmem:[%s3013_s27 + $0x31] sm:$0xff]  ;;  %v2382_v37 = vld [vmem:[%s4515_s1 + $0x340] sm:$0xff]  ;;  %v2331_v40 = vld [vmem:[%s4515_s1 + $0x228] sm:$0xff] }
  0x3f   : > { %540 = vmatmul.f32.vlgmr.msra.gmra.mxu2 %v499_v50  ;;  %599 = vmatpush.msrb.mxu3 %v2325_v51  ;;  %v2332_v36 = vld [vmem:[%s4515_s1 + $0x230] sm:$0xff]  ;;  %v3204_v39 = vld [vmem:[%s3013_s27 + $0xc0] sm:$0xff]  ;;  %v2357_v41 = vld [vmem:[%s4515_s1 + $0x2b8] sm:$0xff] }
  0x40   : > { %432 = vmatpush.msra.mxu0 %v2270_v45  ;;  %814 = vmatpush.msrb.mxu2 %v2389_v53  ;;  %v2312_v38 = vld [vmem:[%s4515_s1 + $0x190] sm:$0xff]  ;;  %v2311_v42 = vld [vmem:[%s4515_s1 + $0x188] sm:$0xff]  ;;  %v2381_v43 = vld [vmem:[%s4515_s1 + $0x338] sm:$0xff] }
  0x41   : > { %433 = vmatmul.f32.vlgmr.msra.gmra.mxu0 %v2262_v52  ;;  %600 = vmatpush.msrb.mxu3 %v2324_v54  ;;  %v2330_v44 = vld [vmem:[%s4515_s1 + $0x220] sm:$0xff]  ;;  %v2356_v45 = vld [vmem:[%s4515_s1 + $0x2b0] sm:$0xff]  ;;  %v2329_v52 = vld [vmem:[%s4515_s1 + $0x218] sm:$0xff] }
  0x42   : > { %665 = vmatpush.msrb.mxu0 %v2341_v55  ;;  %739 = vmatpush.msrb.mxu1 %v2365_v56  ;;  %v2310_v46 = vld [vmem:[%s4515_s1 + $0x180] sm:$0xff]  ;;  %v2380_v47 = vld [vmem:[%s4515_s1 + $0x330] sm:$0xff]  ;;  %v2413_v53 = vld [vmem:[%s4515_s1 + $0x3f8] sm:$0xff] }
  0x43   : > { %815 = vmatpush.msrb.mxu2 %v2388_v59  ;;  %601 = vmatpush.msrb.mxu3 %v2323_v57  ;;  %v3233_v49 = vld [vmem:[%s3013_s27 + $0x40] sm:$0xff]  ;;  %v2355_v54 = vld [vmem:[%s4515_s1 + $0x2a8] sm:$0xff]  ;;  %v2328_v55 = vld [vmem:[%s4515_s1 + $0x210] sm:$0xff] }
  0x44   : > { %666 = vmatpush.msrb.mxu0 %v2340_v58  ;;  %740 = vmatpush.msrb.mxu1 %v2364_v60  ;;  %v2302_v50 = vld [vmem:[%s3013_s27 + $0x120] sm:$0xff]  ;;  %v2379_v56 = vld [vmem:[%s4515_s1 + $0x328] sm:$0xff]  ;;  %v2412_v57 = vld [vmem:[%s4515_s1 + $0x3f0] sm:$0xff] }
  0x45   : > { %816 = vmatpush.msrb.mxu2 %v2387_v1  ;;  %602 = vmatpush.msrb.mxu3 %v2322_v61  ;;  %v3237_v51 = vld [vmem:[%s3013_s27 + $0x41] sm:$0xff] }
  0x46   : > { %667 = vmatpush.msrb.mxu0 %v2339_v62  ;;  %448 = vmatmul.f32.gmra.mxu3 %v3074_v63  ;;  %v2354_v58 = vld [vmem:[%s4515_s1 + $0x2a0] sm:$0xff]  ;;  %v2327_v59 = vld [vmem:[%s4515_s1 + $0x208] sm:$0xff]  ;;  %v2353_v62 = vld [vmem:[%s4515_s1 + $0x298] sm:$0xff] }
  0x47   : > { %477 = vmatmul.f32.gmra.mxu1 %v3077_v0  ;;  %543 = vmatmul.f32.gmra.mxu2 %v3083_v2  ;;  %v2378_v60 = vld [vmem:[%s4515_s1 + $0x320] sm:$0xff]  ;;  %v2411_v61 = vld [vmem:[%s4515_s1 + $0x3e8] sm:$0xff] }
  0x48   : > { %603 = vmatpush.msrb.mxu3 %v2321_v3  ;;  %668 = vmatpush.msrb.mxu0 %v2338_v4  ;;  %v2326_v1 = vld [vmem:[%s4515_s1 + $0x200] sm:$0xff]  ;;  %v2377_v3 = vld [vmem:[%s4515_s1 + $0x318] sm:$0xff]  ;;  %v3281_v4 = vld [vmem:[%s3013_s27 + $0x50] sm:$0xff] }
  0x49   : > { %741 = vmatpush.msrb.mxu1 %v2363_v5  ;;  %436 = vmatmul.f32.gmra.mxu0 %v3100_v7  ;;  %v2303_v5 = vld [vmem:[%s3013_s27 + $0x130] sm:$0xff] }
  0x4a   : > { %604 = vmatpush.msrb.mxu3 %v2320_v6  ;;  %669 = vmatpush.msrb.mxu0 %v2337_v8  ;;  %v3285_v6 = vld [vmem:[%s3013_s27 + $0x51] sm:$0xff] }
  0x4b   : > { %742 = vmatpush.msrb.mxu1 %v2362_v9  ;;  %817 = vmatpush.msrb.mxu2 %v2386_v11  ;;  %v2254_v8 = vld [vmem:[%s3013_s27 + $0x1b0] sm:$0xff]  ;;  %v2437_v9 = vld [vmem:[%s4515_s1 + $0x478] sm:$0xff] }
  0x4c   : > { %605 = vmatpush.msrb.mxu3 %v2319_v10  ;;  %670 = vmatpush.msrb.mxu0 %v2336_v12  ;;  %v2410_v10 = vld [vmem:[%s4515_s1 + $0x3e0] sm:$0xff]  ;;  %v2352_v11 = vld [vmem:[%s4515_s1 + $0x290] sm:$0xff] }
  0x4d   : > { %743 = vmatpush.msrb.mxu1 %v2361_v13  ;;  %818 = vmatpush.msrb.mxu2 %v2385_v15  ;;  %v2376_v12 = vld [vmem:[%s4515_s1 + $0x310] sm:$0xff]  ;;  %v2351_v15 = vld [vmem:[%s4515_s1 + $0x288] sm:$0xff] }
  0x4e   : > { %606 = vmatpush.msrb.mxu3 %v2318_v14  ;;  %671 = vmatpush.msrb.mxu0 %v2335_v20  ;;  %v2436_v13 = vld [vmem:[%s4515_s1 + $0x470] sm:$0xff]  ;;  %v2409_v14 = vld [vmem:[%s4515_s1 + $0x3d8] sm:$0xff]  ;;  %v2435_v20 = vld [vmem:[%s4515_s1 + $0x468] sm:$0xff] }
  0x4f   : > { %451 = vmatmul.f32.gmra.mxu3 %v3129_v16  ;;  %480 = vmatmul.f32.gmra.mxu1 %v3132_v17 }
  0x50   : > { %546 = vmatmul.f32.gmra.mxu2 %v3135_v18  ;;  %607 = vmatpush.msrb.mxu3 %v2317_v19  ;;  %v2375_v19 = vld [vmem:[%s4515_s1 + $0x308] sm:$0xff] }
  0x51   : > { %744 = vmatpush.msrb.mxu1 %v2360_v21  ;;  %439 = vmatmul.f32.gmra.mxu0 %v3152_v23  ;;  %v2408_v21 = vld [vmem:[%s4515_s1 + $0x3d0] sm:$0xff] }
  0x52   : > { %608 = vmatpush.msrb.mxu3 %v2316_v22  ;;  %672 = vmatpush.msrb.mxu0 %v2334_v24  ;;  %v2350_v22 = vld [vmem:[%s4515_s1 + $0x280] sm:$0xff] }
  0x53   : > { %819 = vmatpush.msrb.mxu2 %v2384_v25  ;;  %745 = vmatpush.msrb.mxu1 %v2359_v27  ;;  %v2374_v24 = vld [vmem:[%s4515_s1 + $0x300] sm:$0xff] }
  0x54   : > { %609 = vmatpush.msrb.mxu3 %v2315_v26  ;;  %673 = vmatpush.msrb.mxu0 %v2333_v28  ;;  %v3327_v25 = vld [vmem:[%s3013_s27 + $0x60] sm:$0xff] }
  0x55   : > { %820 = vmatpush.msrb.mxu2 %v2383_v29  ;;  %746 = vmatpush.msrb.mxu1 %v2358_v31  ;;  %v2304_v26 = vld [vmem:[%s3013_s27 + $0x140] sm:$0xff]  ;;  %v2433_v31 = vld [vmem:[%s4515_s1 + $0x458] sm:$0xff] }
  0x56   : > { %610 = vmatpush.msrb.mxu3 %v2314_v30  ;;  %674 = vmatpush.msrb.mxu0 %v2332_v36  ;;  %v3331_v27 = vld [vmem:[%s3013_s27 + $0x61] sm:$0xff]  ;;  %v2432_v36 = vld [vmem:[%s4515_s1 + $0x450] sm:$0xff] }
  0x57   : > { %454 = vmatmul.f32.gmra.mxu3 %v3181_v32  ;;  %483 = vmatmul.f32.gmra.mxu1 %v3184_v33  ;;  %v2255_v28 = vld [vmem:[%s3013_s27 + $0x1c0] sm:$0xff]  ;;  %v2407_v30 = vld [vmem:[%s4515_s1 + $0x3c8] sm:$0xff] }
  0x58   : > { %549 = vmatmul.f32.gmra.mxu2 %v3187_v34  ;;  %611 = vmatpush.msrb.mxu3 %v2313_v35  ;;  %v2434_v29 = vld [vmem:[%s4515_s1 + $0x460] sm:$0xff] }
  0x59   : > { %821 = vmatpush.msrb.mxu2 %v2382_v37  ;;  %442 = vmatmul.f32.gmra.mxu0 %v3204_v39  ;;  %v2406_v35 = vld [vmem:[%s4515_s1 + $0x3c0] sm:$0xff]  ;;  %v2405_v37 = vld [vmem:[%s4515_s1 + $0x3b8] sm:$0xff] }
  0x5a   : > { %612 = vmatpush.msrb.mxu3 %v2312_v38  ;;  %675 = vmatpush.msrb.mxu0 %v2331_v40  ;;  %v3355_v38 = vld [vmem:[%s3013_s27 + $0x70] sm:$0xff] }
  0x5b   : > { %747 = vmatpush.msrb.mxu1 %v2357_v41  ;;  %822 = vmatpush.msrb.mxu2 %v2381_v43  ;;  %v2305_v40 = vld [vmem:[%s3013_s27 + $0x150] sm:$0xff]  ;;  %v2431_v43 = vld [vmem:[%s4515_s1 + $0x448] sm:$0xff] }
  0x5c   : > { %613 = vmatpush.msrb.mxu3 %v2311_v42  ;;  %676 = vmatpush.msrb.mxu0 %v2330_v44  ;;  %v3359_v41 = vld [vmem:[%s3013_s27 + $0x71] sm:$0xff] }
  0x5d   : > { %748 = vmatpush.msrb.mxu1 %v2356_v45  ;;  %823 = vmatpush.msrb.mxu2 %v2380_v47  ;;  %v2256_v42 = vld [vmem:[%s3013_s27 + $0x1d0] sm:$0xff]  ;;  %v2430_v45 = vld [vmem:[%s4515_s1 + $0x440] sm:$0xff]  ;;  %v2429_v47 = vld [vmem:[%s4515_s1 + $0x438] sm:$0xff] }
  0x5e   : > { %614 = vmatpush.msrb.mxu3 %v2310_v46  ;;  %677 = vmatpush.msrb.mxu0 %v2329_v52  ;;  %v2404_v44 = vld [vmem:[%s4515_s1 + $0x3b0] sm:$0xff]  ;;  %v2403_v46 = vld [vmem:[%s4515_s1 + $0x3a8] sm:$0xff]  ;;  %v2306_v52 = vld [vmem:[%s3013_s27 + $0x160] sm:$0xff] }
  0x5f   : > { %486 = vmatmul.f32.gmra.mxu1 %v3233_v49  ;;  %615 = vmatmul.f32.vlgmr.msrb.gmra.mxu3 %v2302_v50  ;;  %v2402_v50 = vld [vmem:[%s4515_s1 + $0x3a0] sm:$0xff] }
  0x60   : > { %552 = vmatmul.f32.gmra.mxu2 %v3237_v51  ;;  %889 = vmatpush.msra.mxu3 %v2413_v53  ;;  %v2342_v53 = vld [vmem:[%s3013_s27 + $0x121] sm:$0xff] }
  0x61   : > { %749 = vmatpush.msrb.mxu1 %v2355_v54  ;;  %678 = vmatpush.msrb.mxu0 %v2328_v55  ;;  %v2257_v54 = vld [vmem:[%s3013_s27 + $0x1e0] sm:$0xff]  ;;  %v2428_v55 = vld [vmem:[%s4515_s1 + $0x430] sm:$0xff] }
  0x62   : > { %824 = vmatpush.msrb.mxu2 %v2379_v56  ;;  %890 = vmatpush.msra.mxu3 %v2412_v57  ;;  %v2401_v56 = vld [vmem:[%s4515_s1 + $0x398] sm:$0xff]  ;;  %v2427_v57 = vld [vmem:[%s4515_s1 + $0x428] sm:$0xff] }
  0x63   : > { %750 = vmatpush.msrb.mxu1 %v2354_v58  ;;  %679 = vmatpush.msrb.mxu0 %v2327_v59  ;;  %v2400_v58 = vld [vmem:[%s4515_s1 + $0x390] sm:$0xff]  ;;  %v2426_v59 = vld [vmem:[%s4515_s1 + $0x420] sm:$0xff] }
  0x64   : > { %825 = vmatpush.msrb.mxu2 %v2378_v60  ;;  %891 = vmatpush.msra.mxu3 %v2411_v61  ;;  %v2399_v60 = vld [vmem:[%s4515_s1 + $0x388] sm:$0xff]  ;;  %v2343_v61 = vld [vmem:[%s3013_s27 + $0x131] sm:$0xff] }
  0x65   : > { %751 = vmatpush.msrb.mxu1 %v2353_v62  ;;  %680 = vmatpush.msrb.mxu0 %v2326_v1  ;;  %v2258_v62 = vld [vmem:[%s3013_s27 + $0x1f0] sm:$0xff]  ;;  %v2425_v1 = vld [vmem:[%s4515_s1 + $0x418] sm:$0xff] }
  0x66   : > { %826 = vmatpush.msrb.mxu2 %v2377_v3  ;;  %681 = vmatmul.f32.vlgmr.msrb.gmra.mxu0 %v2254_v8  ;;  %v2398_v3 = vld [vmem:[%s4515_s1 + $0x380] sm:$0xff]  ;;  %v2423_v8 = vld [vmem:[%s4515_s1 + $0x408] sm:$0xff] }
  0x67   : > { %489 = vmatmul.f32.gmra.mxu1 %v3281_v4  ;;  %618 = vmatmul.f32.gmra.mxu3 %v2303_v5  ;;  %v2424_v5 = vld [vmem:[%s4515_s1 + $0x410] sm:$0xff] }
  0x68   : > { %555 = vmatmul.f32.gmra.mxu2 %v3285_v6  ;;  %963 = vmatpush.msra.mxu0 %v2437_v9  ;;  %v2308_v9 = vld [vmem:[%s3013_s27 + $0x180] sm:$0xff] }
  0x69   : > { %892 = vmatpush.msra.mxu3 %v2410_v10  ;;  %752 = vmatpush.msrb.mxu1 %v2352_v11  ;;  %v2344_v10 = vld [vmem:[%s3013_s27 + $0x141] sm:$0xff] }
  0x6a   : > { %827 = vmatpush.msrb.mxu2 %v2376_v12  ;;  %964 = vmatpush.msra.mxu0 %v2436_v13  ;;  %v2259_v11 = vld [vmem:[%s3013_s27 + $0x200] sm:$0xff]  ;;  %v2309_v12 = vld [vmem:[%s3013_s27 + $0x190] sm:$0xff] }
  0x6b   : > { %893 = vmatpush.msra.mxu3 %v2409_v14  ;;  %753 = vmatpush.msrb.mxu1 %v2351_v15  ;;  %v2345_v13 = vld [vmem:[%s3013_s27 + $0x151] sm:$0xff]  ;;  %v2346_v15 = vld [vmem:[%s3013_s27 + $0x161] sm:$0xff] }
  0x6c   : > { %828 = vmatpush.msrb.mxu2 %v2375_v19  ;;  %965 = vmatpush.msra.mxu0 %v2435_v20  ;;  %v2260_v14 = vld [vmem:[%s3013_s27 + $0x210] sm:$0xff]  ;;  %v2261_v19 = vld [vmem:[%s3013_s27 + $0x220] sm:$0xff] }
  0x6d   : > { %894 = vmatpush.msra.mxu3 %v2408_v21  ;;  %754 = vmatpush.msrb.mxu1 %v2350_v22  ;;  %v2348_v20 = vld [vmem:[%s3013_s27 + $0x181] sm:$0xff] }
  0x6e   : > { %829 = vmatpush.msrb.mxu2 %v2374_v24  ;;  %684 = vmatmul.f32.gmra.mxu0 %v2255_v28  ;;  %v2421_v28 = vld [vmem:[%s3013_s27 + $0x81] sm:$0xff] }
  0x6f   : > { %492 = vmatmul.f32.gmra.mxu1 %v3327_v25  ;;  %621 = vmatmul.f32.gmra.mxu3 %v2304_v26 }
  0x70   : > { %558 = vmatmul.f32.gmra.mxu2 %v3331_v27  ;;  %966 = vmatpush.msra.mxu0 %v2434_v29 }
  0x71   : > { %895 = vmatpush.msra.mxu3 %v2407_v30 }
  0x72   : > { %967 = vmatpush.msra.mxu0 %v2433_v31 }
  0x73   : > { %896 = vmatpush.msra.mxu3 %v2406_v35 }
  0x74   : > { %968 = vmatpush.msra.mxu0 %v2432_v36 }
  0x75   : > { %897 = vmatpush.msra.mxu3 %v2405_v37 }
  0x76   : > { %687 = vmatmul.f32.gmra.mxu0 %v2256_v42 }
  0x77   : > { %495 = vmatmul.f32.gmra.mxu1 %v3355_v38  ;;  %624 = vmatmul.f32.gmra.mxu3 %v2305_v40 }
  0x78   : > { %561 = vmatmul.f32.gmra.mxu2 %v3359_v41  ;;  %969 = vmatpush.msra.mxu0 %v2431_v43 }
  0x79   : > { %898 = vmatpush.msra.mxu3 %v2404_v44 }
  0x7a   : > { %970 = vmatpush.msra.mxu0 %v2430_v45 }
  0x7b   : > { %899 = vmatpush.msra.mxu3 %v2403_v46 }
  0x7c   : > { %971 = vmatpush.msra.mxu0 %v2429_v47 }
  0x7d   : > { %900 = vmatpush.msra.mxu3 %v2402_v50 }
  0x7e   : > { %690 = vmatmul.f32.gmra.mxu0 %v2257_v54 }
  0x7f   : > { %627 = vmatmul.f32.gmra.mxu3 %v2306_v52  ;;  %755 = vmatmul.f32.vlgmr.msrb.gmra.mxu1 %v2342_v53 }
  0x80   : > { %830 = vmatmul.f32.vlgmr.msrb.gmra.mxu2 %v3077_v0  ;;  %972 = vmatpush.msra.mxu0 %v2428_v55  ;;  %v2307_v0 = vld [vmem:[%s3013_s27 + $0x170] sm:$0xff] }
  0x81   : > { %901 = vmatpush.msra.mxu3 %v2401_v56 }
  0x82   : > { %973 = vmatpush.msra.mxu0 %v2427_v57 }
  0x83   : > { %902 = vmatpush.msra.mxu3 %v2400_v58 }
  0x84   : > { %974 = vmatpush.msra.mxu0 %v2426_v59 }
  0x85   : > { %903 = vmatpush.msra.mxu3 %v2399_v60 }
  0x86   : > { %693 = vmatmul.f32.gmra.mxu0 %v2258_v62 }
  0x87   : > { %630 = vmatmul.f32.gmra.mxu3 %v2307_v0  ;;  %758 = vmatmul.f32.gmra.mxu1 %v2343_v61 }
  0x88   : > { %833 = vmatmul.f32.gmra.mxu2 %v3132_v17  ;;  %975 = vmatpush.msra.mxu0 %v2425_v1  ;;  %v2422_v17 = vld [vmem:[%s4515_s1 + $0x400] sm:$0xff] }
  0x89   : > { %904 = vmatpush.msra.mxu3 %v2398_v3 }
  0x8a   : > { %976 = vmatpush.msra.mxu0 %v2424_v5 }
  0x8c   : > { %977 = vmatpush.msra.mxu0 %v2423_v8 }
  0x8e   : > { %696 = vmatmul.f32.gmra.mxu0 %v2259_v11 }
  0x8f   : > { %633 = vmatmul.f32.gmra.mxu3 %v2308_v9  ;;  %761 = vmatmul.f32.gmra.mxu1 %v2344_v10 }
  0x90   : > { %836 = vmatmul.f32.gmra.mxu2 %v3184_v33  ;;  %978 = vmatpush.msra.mxu0 %v2422_v17  ;;  %v2347_v33 = vld [vmem:[%s3013_s27 + $0x171] sm:$0xff] }
  0x96   : > { %699 = vmatmul.f32.gmra.mxu0 %v2260_v14 }
  0x97   : > { %636 = vmatmul.f32.gmra.mxu3 %v2309_v12  ;;  %764 = vmatmul.f32.gmra.mxu1 %v2345_v13 }
  0x98   : > { %839 = vmatmul.f32.gmra.mxu2 %v3233_v49  ;;  %v2373_v49 = vld [vmem:[%s3013_s27 + $0x80] sm:$0xff] }
  0x9e   : > { %702 = vmatmul.f32.gmra.mxu0 %v2261_v19 }
  0x9f   : > { %767 = vmatmul.f32.gmra.mxu1 %v2346_v15  ;;  %905 = vmatmul.f32.vlgmr.msra.gmra.mxu3 %v3100_v7  ;;  %v2349_v7 = vld [vmem:[%s3013_s27 + $0x191] sm:$0xff] }
  0xa0   : > { %842 = vmatmul.f32.gmra.mxu2 %v3281_v4 }
  0xa6   : > { %979 = vmatmul.f32.vlgmr.msra.gmra.mxu0 %v3083_v2 }
  0xa7   : > { %770 = vmatmul.f32.gmra.mxu1 %v2347_v33  ;;  %908 = vmatmul.f32.gmra.mxu3 %v3152_v23 }
  0xa8   : > { %845 = vmatmul.f32.gmra.mxu2 %v3327_v25  ;;  %v2397_v25 = vld [vmem:[%s3013_s27 + $0x110] sm:$0xff] }
  0xae   : > { %982 = vmatmul.f32.gmra.mxu0 %v3135_v18 }
  0xaf   : > { %773 = vmatmul.f32.gmra.mxu1 %v2348_v20  ;;  %911 = vmatmul.f32.gmra.mxu3 %v3204_v39 }
  0xb0   : > { %848 = vmatmul.f32.gmra.mxu2 %v3355_v38 }
  0xb6   : > { %985 = vmatmul.f32.gmra.mxu0 %v3187_v34 }
  0xb7   : > { %776 = vmatmul.f32.gmra.mxu1 %v2349_v7  ;;  %914 = vmatmul.f32.gmra.mxu3 %v3034_v48 }
  0xb8   : > { %851 = vmatmul.f32.gmra.mxu2 %v2373_v49 }
  0xbb   : > { %v3447_v23 = vpop.f32.mrf.mxu1 }
  0xbe   : > { %v3449_v4 = vpop.f32.mrf.mxu0  ;;  %988 = vmatmul.f32.gmra.mxu0 %v3237_v51 }
  0xbf   : > { %917 = vmatmul.f32.gmra.mxu3 %v3074_v63  ;;  %v476_v33 = vadd.f32 %v3447_v23, %v3449_v4 }
  0xc0   : > { %v3453_v2 = vpop.f32.mrf.mxu3 }
  0xc2   : > { %v3455_v18 = vpop.f32.mrf.mxu2 }
  0xc4   : > { %v478_v48 = vpop.f32.mrf.mxu1 }
  0xc6   : > { %v437_v39 = vpop.f32.mrf.mxu0  ;;  %991 = vmatmul.f32.gmra.mxu0 %v3285_v6 }
  0xc7   : > { %920 = vmatmul.f32.gmra.mxu3 %v3129_v16  ;;  %v479_v15 = vadd.f32 %v478_v48, %v437_v39 }
  0xc9   : > { %v3459_v34 = vpop.f32.mrf.mxu3 }
  0xca   : > { %v544_v21 = vpop.f32.mrf.mxu2 }
  0xcc   : > { %v481_v51 = vpop.f32.mrf.mxu1 }
  0xce   : > { %994 = vmatmul.f32.gmra.mxu0 %v3331_v27  ;;  %v440_v63 = vpop.f32.mrf.mxu0 }
  0xcf   : > { %923 = vmatmul.f32.gmra.mxu3 %v3181_v32  ;;  %v482_v20 = vadd.f32 %v481_v51, %v440_v63 }
  0xd2   : > { %v3463_v22 = vpop.f32.mrf.mxu3 }
  0xd3   : > { %v547_v24 = vpop.f32.mrf.mxu2 }
  0xd4   : > { %v484_v6 = vpop.f32.mrf.mxu1 }
  0xd6   : > { %997 = vmatmul.f32.gmra.mxu0 %v3359_v41  ;;  %v443_v26 = vpop.f32.mrf.mxu0 }
  0xd7   : > { %926 = vmatmul.f32.gmra.mxu3 %v2397_v25  ;;  %v485_v49 = vadd.f32 %v484_v6, %v443_v26  ;;  %v566_v25 = vadd.f32 %v544_v21, %v479_v15 }
  0xda   : > { %v3467_v16 = vpop.f32.mrf.mxu3 }
  0xdb   : > { %4517 = vst [vmem:[#allocation7_spill] sm:$0xff] %v3467_v16  ;;  %v550_v29 = vpop.f32.mrf.mxu2 }
  0xdc   : > { %v487_v31 = vpop.f32.mrf.mxu1 }
  0xde   : > { %1000 = vmatmul.f32.gmra.mxu0 %v2421_v28  ;;  %v565_v28 = vadd.f32 %v3455_v18, %v476_v33 }
  0xe2   : > { %v616_v30 = vpop.f32.mrf.mxu3 }
  0xe3   : > { %v682_v32 = vpop.f32.mrf.mxu0  ;;  %v553_v27 = vpop.f32.mrf.mxu2 }
  0xe4   : > { %v490_v37 = vpop.f32.mrf.mxu1 }
  0xe5   : > { %v491_v23 = vadd.f32 %v490_v37, %v3459_v34 }
  0xea   : > { %v619_v35 = vpop.f32.mrf.mxu3 }
  0xeb   : > { %v685_v36 = vpop.f32.mrf.mxu0  ;;  %v556_v38 = vpop.f32.mrf.mxu2 }
  0xec   : > { %v493_v43 = vpop.f32.mrf.mxu1  ;;  %v570_v18 = vadd.f32 %v556_v38, %v491_v23 }
  0xed   : > { %v494_v21 = vadd.f32 %v493_v43, %v3463_v22 }
  0xf2   : > { %v622_v40 = vpop.f32.mrf.mxu3 }
  0xf3   : > { %v688_v42 = vpop.f32.mrf.mxu0  ;;  %v559_v41 = vpop.f32.mrf.mxu2 }
  0xf4   : > { %v3470_v47 = vpop.f32.mrf.mxu1 }
  0xf5   : > { %4518 = vst [vmem:[#allocation8_spill] sm:$0xff] %v3470_v47  ;;  %v568_v47 = vadd.f32 %v550_v29, %v485_v49 }
  0xfa   : > { %v625_v44 = vpop.f32.mrf.mxu3 }
  0xfb   : > { %v691_v45 = vpop.f32.mrf.mxu0  ;;  %v3472_v52 = vpop.f32.mrf.mxu2  ;;  %v643_v63 = vadd.f32 %v625_v44, %v568_v47 }
  0xfc   : > { %4519 = vst [vmem:[#allocation9_spill] sm:$0xff] %v3472_v52  ;;  %v756_v55 = vpop.f32.mrf.mxu1  ;;  %v640_v52 = vadd.f32 %v616_v30, %v565_v28  ;;  %v571_v30 = vadd.f32 %v559_v41, %v494_v21  ;;  %v4526_v47 = vld [vmem:[#allocation8_spill] sm:$0xff] }
  0xfe   : > { %v706_v51 = vadd.f32 %v682_v32, %v640_v52 }
 0x100   : > { %v780_v15 = vadd.f32 %v756_v55, %v706_v51 }
 0x102   : > { %v628_v46 = vpop.f32.mrf.mxu3 }
 0x103   : > { %v694_v50 = vpop.f32.mrf.mxu0  ;;  %v831_v56 = vpop.f32.mrf.mxu2 }
 0x104   : > { %v759_v59 = vpop.f32.mrf.mxu1 }
 0x10a   : > { %v631_v53 = vpop.f32.mrf.mxu3 }
 0x10b   : > { %v3474_v54 = vpop.f32.mrf.mxu0  ;;  %v834_v60 = vpop.f32.mrf.mxu2 }
 0x10c   : > { %v762_v62 = vpop.f32.mrf.mxu1 }
 0x112   : > { %v634_v57 = vpop.f32.mrf.mxu3 }
 0x113   : > { %v3476_v58 = vpop.f32.mrf.mxu0  ;;  %v837_v3 = vpop.f32.mrf.mxu2 }
 0x114   : > { %4520 = vst [vmem:[#allocation10_spill] sm:$0xff] %v3476_v58  ;;  %v765_v9 = vpop.f32.mrf.mxu1 }
 0x11a   : > { %v3478_v0 = vpop.f32.mrf.mxu3 }
 0x11b   : > { %4521 = vst [vmem:[#allocation11_spill] sm:$0xff] %v3478_v0  ;;  %v3480_v61 = vpop.f32.mrf.mxu0  ;;  %v840_v11 = vpop.f32.mrf.mxu2  ;;  %v567_v0 = vadd.f32 %v547_v24, %v482_v20 }
 0x11c   : > { %4522 = vst [vmem:[#allocation12_spill] sm:$0xff] %v3480_v61  ;;  %v768_v13 = vpop.f32.mrf.mxu1  ;;  %v641_v61 = vadd.f32 %v619_v35, %v566_v25 }
 0x11d   : > { %v642_v58 = vadd.f32 %v622_v40, %v567_v0  ;;  %v855_v0 = vadd.f32 %v831_v56, %v780_v15 }
 0x11e   : > { %v707_v4 = vadd.f32 %v685_v36, %v641_v61  ;;  %v4528_v61 = vld [vmem:[#allocation9_spill] sm:$0xff] }
 0x11f   : > { %v708_v6 = vadd.f32 %v688_v42, %v642_v58 }
 0x120   : > { %v781_v35 = vadd.f32 %v759_v59, %v707_v4 }
 0x121   : > { %v782_v40 = vadd.f32 %v762_v62, %v708_v6 }
 0x122   : > { %v906_v1 = vpop.f32.mrf.mxu3  ;;  %v856_v29 = vadd.f32 %v834_v60, %v781_v35 }
 0x123   : > { %v3482_v5 = vpop.f32.mrf.mxu0  ;;  %v843_v14 = vpop.f32.mrf.mxu2  ;;  %v857_v36 = vadd.f32 %v837_v3, %v782_v40  ;;  %v930_v43 = vadd.f32 %v906_v1, %v855_v0  ;;  %v4532_v23 = vld [vmem:[#allocation12_spill] sm:$0xff] }
 0x124   : > { %4523 = vst [vmem:[#allocation13_spill] sm:$0xff] %v3482_v5  ;;  %v771_v5 = vpop.f32.mrf.mxu1 }
 0x12a   : > { %v909_v8 = vpop.f32.mrf.mxu3 }
 0x12b   : > { %v983_v10 = vpop.f32.mrf.mxu0  ;;  %v846_v39 = vpop.f32.mrf.mxu2  ;;  %v931_v32 = vadd.f32 %v909_v8, %v856_v29 }
 0x12c   : > { %v774_v44 = vpop.f32.mrf.mxu1 }
 0x12d   : > { %v3500_v59 = vadd.f32 %v983_v10, %v931_v32 }
 0x132   : > { %v912_v17 = vpop.f32.mrf.mxu3 }
 0x133   : > { %v3484_v12 = vpop.f32.mrf.mxu0  ;;  %v849_v41 = vpop.f32.mrf.mxu2 }
 0x134   : > { %4524 = vst [vmem:[#allocation14_spill] sm:$0xff] %v3484_v12  ;;  %v488_v12 = vadd.f32 %v487_v31, %v3453_v2  ;;  %v709_v2 = vadd.f32 %v691_v45, %v643_v63  ;;  %v645_v31 = vadd.f32 %v631_v53, %v570_v18  ;;  %v4525_v45 = vld [vmem:[#allocation7_spill] sm:$0xff]  ;;  %v4527_v53 = vld [vmem:[#allocation10_spill] sm:$0xff]  ;;  %v777_v25 = vpop.f32.mrf.mxu1 }
 0x135   : > { %v497_v52 = vadd.f32 %v4526_v47, %v4525_v45 }
 0x136   : > { %v569_v16 = vadd.f32 %v553_v27, %v488_v12  ;;  %v646_v27 = vadd.f32 %v634_v57, %v571_v30  ;;  %v1012_v12 = vlaneseq  ;;  %v783_v37 = vadd.f32 %v765_v9, %v709_v2 }
 0x137   : > { %v711_v38 = vadd.f32 %v3474_v54, %v645_v31  ;;  %v572_v62 = vadd.f32 %v4528_v61, %v497_v52  ;;  %v4529_v54 = vld [vmem:[#allocation13_spill] sm:$0xff] }
 0x138   : > { %v644_v24 = vadd.f32 %v628_v46, %v569_v16  ;;  %v858_v16 = vadd.f32 %v840_v11, %v783_v37  ;;  %v932_v46 = vadd.f32 %v912_v17, %v857_v36  ;;  %v712_v55 = vadd.f32 %v4527_v53, %v646_v27 }
 0x139   : > { %v3498_v56 = vand.u32 127, %v1012_v12  ;;  %v785_v58 = vadd.f32 %v771_v5, %v711_v38  ;;  %v3504_v1 = vadd.f32 %v4529_v54, %v930_v43 }
 0x13a   : > { %v915_v19 = vpop.f32.mrf.mxu3  ;;  %v710_v34 = vadd.f32 %v694_v50, %v644_v24  ;;  %v786_v8 = vadd.f32 %v774_v44, %v712_v55  ;;  %v2770_v44 = vmov 512.0  }
 0x13b   : > { %v3488_v7 = vpop.f32.mrf.mxu0  ;;  %v933_v60 = vadd.f32 %v915_v19, %v858_v16  ;;  %v860_v3 = vadd.f32 %v846_v39, %v785_v58  ;;  %v4530_v9 = vld [vmem:[#allocation14_spill] sm:$0xff]  ;;  %vm1014_vm0 = vcmp.lt.s32.totalorder %v3498_v56, 8  ;;  %v852_v21 = vpop.f32.mrf.mxu2  ;;  %2690 = vrcp.f32 %v2770_v44 }
 0x13c   : > { %v784_v42 = vadd.f32 %v768_v13, %v710_v34  ;;  %v1006_v11 = vadd.f32 %v4530_v9, %v932_v46  ;;  %v4531_v13 = vld [vmem:[#allocation11_spill] sm:$0xff]  ;;  %v1016_v5 = vsel %vm1014_vm0, %v3500_v59, 0.0  ;;  %v861_v10 = vadd.f32 %v849_v41, %v786_v8  ;;  %v2469_v44 = vld [vmem:[%s4503_s4 + $0x178] sm:$0xff] }
 0x13d   : > { %v647_v33 = vadd.f32 %v4531_v13, %v572_v62  ;;  %v1015_v49 = vsel %vm1014_vm0, %v3504_v1, 0.0  ;;  %1337 = vmatpush.msrb.mxu3 %v2469_v44  ;;  %v2438_v44 = vld [vmem:[%s4503_s4 + $0x80] sm:$0xff] }
 0x13e   : > { %v859_v57 = vadd.f32 %v843_v14, %v784_v42  ;;  %v1007_v14 = vadd.f32 %v3488_v7, %v933_v60  ;;  %v1017_v28 = vsel %vm1014_vm0, %v1006_v11, 0.0  ;;  %v1023_v63 = vadd.f32 %v1016_v5, %v1015_v49 }
 0x13f   : > { %v713_v4 = vadd.f32 %v4532_v23, %v647_v33 }
 0x140   : > { %v1018_v7 = vsel %vm1014_vm0, %v1007_v14, 0.0  ;;  %v1024_v24 = vadd.f32 %v1023_v63, %v1017_v28 }
 0x141   : > { %v787_v6 = vadd.f32 %v777_v25, %v713_v4 }
 0x142   : > { %v918_v48 = vpop.f32.mrf.mxu3  ;;  %v1025_v2 = vadd.f32 %v1024_v24, %v1018_v7 }
 0x143   : > { %v992_v26 = vpop.f32.mrf.mxu0  ;;  %v934_v17 = vadd.f32 %v918_v48, %v859_v57  ;;  %v862_v15 = vadd.f32 %v852_v21, %v787_v6 }
 0x145   : > { %v1008_v39 = vadd.f32 %v992_v26, %v934_v17 }
 0x147   : > { %v1019_v35 = vsel %vm1014_vm0, %v1008_v39, 0.0 }
 0x148   : > { %v1026_v29 = vadd.f32 %v1025_v2, %v1019_v35 }
 0x14a   : > { %v921_v22 = vpop.f32.mrf.mxu3 }
 0x14b   : > { %v995_v50 = vpop.f32.mrf.mxu0  ;;  %v935_v19 = vadd.f32 %v921_v22, %v860_v3  ;;  %v2691_v22 = vpop.eup %2690 }
 0x14c   : > { %v1040_v43 = vmul.f32 512.0, %v2691_v22  ;;  %vm1044_vm1 = vweird.f32 %v2691_v22 }
 0x14d   : > { %v1009_v18 = vadd.f32 %v995_v50, %v935_v19 }
 0x14e   : > { %v1041_v38 = vsub.f32 1.0, %v1040_v43  ;;  %v1202_v43 = vld [vmem:[%s4503_s4 + $0x68] sm:$0xff] }
 0x14f   : > { %v1020_v26 = vsel %vm1014_vm0, %v1009_v18, 0.0 }
 0x150   : > { %v1027_v27 = vadd.f32 %v1026_v29, %v1020_v26  ;;  %v1042_v46 = vmul.f32 %v2691_v22, %v1041_v38  ;;  %v2452_v29 = vld [vmem:[%s4503_s4 + $0xf0] sm:$0xff] }
 0x151   : > { %v2468_v38 = vld [vmem:[%s4503_s4 + $0x170] sm:$0xff] }
 0x152   : > { %v924_v20 = vpop.f32.mrf.mxu3  ;;  %v1043_v52 = vadd.f32 %v2691_v22, %v1042_v46  ;;  %1338 = vmatpush.msrb.mxu3 %v2468_v38  ;;  %v1201_v46 = vld [vmem:[%s4503_s4 + $0x60] sm:$0xff] }
 0x153   : > { %v936_v48 = vadd.f32 %v924_v20, %v861_v10  ;;  %v998_v51 = vpop.f32.mrf.mxu0 }
 0x154   : > { %v1045_v50 = vsel %vm1044_vm1, %v2691_v22, %v1043_v52  ;;  %v2448_v22 = vld [vmem:[%s4503_s4 + $0xd0] sm:$0xff]  ;;  %v2446_v52 = vld [vmem:[%s4503_s4 + $0xc0] sm:$0xff] }
 0x155   : > { %v1010_v30 = vadd.f32 %v998_v51, %v936_v48 }
 0x157   : > { %v1021_v0 = vsel %vm1014_vm0, %v1010_v30, 0.0 }
 0x158   : > { %v1028_v36 = vadd.f32 %v1027_v27, %v1021_v0  ;;  %v2450_v0 = vld [vmem:[%s4503_s4 + $0xe0] sm:$0xff]  ;;  %v2485_v27 = vld [vmem:[%s4503_s4 + $0x1f8] sm:$0xff] }
 0x159   : > { %1411 = vmatpush.msrb.mxu0 %v2485_v27  ;;  %v1190_v27 = vld [vmem:[%s4503_s4 + $0x8] sm:$0xff] }
 0x15a   : > { %v927_v31 = vpop.f32.mrf.mxu3 }
 0x15b   : > { %v937_v40 = vadd.f32 %v927_v31, %v862_v15  ;;  %v1001_v12 = vpop.f32.mrf.mxu0  ;;  %v2453_v31 = vld [vmem:[%s4503_s4 + $0xf8] sm:$0xff] }
 0x15c   : > { %1230 = vmatpush.msra.mxu1 %v2453_v31 }
 0x15d   : > { %v1011_v34 = vadd.f32 %v1001_v12, %v937_v40  ;;  %v2451_v40 = vld [vmem:[%s4503_s4 + $0xe8] sm:$0xff]  ;;  %v2449_v12 = vld [vmem:[%s4503_s4 + $0xd8] sm:$0xff] }
 0x15e   : > { %1231 = vmatpush.msra.mxu1 %v2452_v29 }
 0x15f   : > { %v1022_v37 = vsel %vm1014_vm0, %v1011_v34, 0.0 }
 0x160   : > { %v1029_v32 = vadd.f32 %v1028_v36, %v1022_v37  ;;  %1232 = vmatpush.msra.mxu1 %v2451_v40  ;;  %v1204_v36 = vld [vmem:[%s4503_s4 + $0x78] sm:$0xff]  ;;  %v2483_v37 = vld [vmem:[%s4503_s4 + $0x1e8] sm:$0xff] }
 0x161   : > { %1271 = vmatpush.msra.mxu2 %v1204_v36  ;;  %v2455_v36 = vld [vmem:[%s4503_s4 + $0x108] sm:$0xff] }
 0x162   : > { %1030 = vadd.xlane.f32.xlu0 %v1029_v32  ;;  %1233 = vmatpush.msra.mxu1 %v2450_v0  ;;  %v1203_v32 = vld [vmem:[%s4503_s4 + $0x70] sm:$0xff]  ;;  %v2771_v0 = vmov 0.0  }
 0x163   : > { %1272 = vmatpush.msra.mxu2 %v1203_v32  ;;  %1154 = vst [vmem:[#allocation2 + $0x10] sm:$0xff] %v2771_v0  ;;  %v2439_v32 = vld [vmem:[%s4503_s4 + $0x88] sm:$0xff] }
 0x164   : > { %1234 = vmatpush.msra.mxu1 %v2449_v12  ;;  %1155 = vst [vmem:[#allocation2 + $0x18] sm:$0x3] %v2771_v0  ;;  %v2456_v12 = vld [vmem:[%s4503_s4 + $0x110] sm:$0xff] }
 0x165   : > { %1273 = vmatpush.msra.mxu2 %v1202_v43  ;;  %1156 = vst [vmem:[#allocation2 + $0x20] sm:$0xff] %v2771_v0  ;;  %v2475_v43 = vld [vmem:[%s4503_s4 + $0x1a8] sm:$0xff] }
 0x166   : > { %1235 = vmatpush.msra.mxu1 %v2448_v22  ;;  %1157 = vst [vmem:[#allocation2 + $0x28] sm:$0x3] %v2771_v0  ;;  %v2476_v22 = vld [vmem:[%s4503_s4 + $0x1b0] sm:$0xff] }
 0x167   : > { %1274 = vmatpush.msra.mxu2 %v1201_v46  ;;  %1158 = vst [vmem:[#allocation2 + $0x30] sm:$0xff] %v2771_v0  ;;  %v2473_v46 = vld [vmem:[%s4503_s4 + $0x198] sm:$0xff] }
 0x168   : > { %1159 = vst [vmem:[#allocation2 + $0x38] sm:$0x3] %v2771_v0 }
 0x169   : > { %1160 = vst [vmem:[#allocation2 + $0x40] sm:$0xff] %v2771_v0 }
 0x16a   : > { %1161 = vst [vmem:[#allocation2 + $0x48] sm:$0x3] %v2771_v0 }
 0x16b   : > { %1162 = vst [vmem:[#allocation2 + $0x50] sm:$0xff] %v2771_v0 }
 0x16c   : > { %1163 = vst [vmem:[#allocation2 + $0x58] sm:$0x3] %v2771_v0 }
 0x16d   : > { %1164 = vst [vmem:[#allocation2 + $0x60] sm:$0xff] %v2771_v0 }
 0x16e   : > { %1165 = vst [vmem:[#allocation2 + $0x68] sm:$0x3] %v2771_v0 }
 0x16f   : > { %1166 = vst [vmem:[#allocation2 + $0x70] sm:$0xff] %v2771_v0 }
 0x170   : > { %1167 = vst [vmem:[#allocation2 + $0x78] sm:$0x3] %v2771_v0 }
 0x171   : > { %1168 = vst [vmem:[#allocation2 + $0x80] sm:$0xff] %v2771_v0 }
 0x172   : > { %1169 = vst [vmem:[#allocation2 + $0x88] sm:$0x3] %v2771_v0 }
 0x173   : > { %1152 = vst [vmem:[#allocation2] sm:$0xff] %v2771_v0 }
 0x174   : > { %1153 = vst [vmem:[#allocation2 + $0x8] sm:$0x3] %v2771_v0 }
 0x175   : > { %1170 = vst [vmem:[#allocation2 + $0x90] sm:$0xff] %v2771_v0 }
 0x176   : > { %1171 = vst [vmem:[#allocation2 + $0x98] sm:$0x3] %v2771_v0 }
 0x17b   : > { %v1312_v38 = vld [vmem:[#allocation2 + $0x2] sm:$0xff] }
 0x1d5   : > { %v1031_v16 = vpop.xlane.xlu0 %1030 }
 0x1d6   : > { %v1032_v42 = vrot.slane %v1031_v16, 4 }
 0x1d8   : > { %v1033_v41 = vadd.f32 %v1032_v42, %v1031_v16  ;;  %v2482_v16 = vld [vmem:[%s4503_s4 + $0x1e0] sm:$0xff]  ;;  %v2467_v42 = vld [vmem:[%s4503_s4 + $0x168] sm:$0xff] }
 0x1d9   : > { %1339 = vmatpush.msrb.mxu3 %v2467_v42  ;;  %v1205_v42 = vld [vmem:[#allocation2 + $0x1] sm:$0xff] }
 0x1da   : > { %v1034_v45 = vrot.slane %v1033_v41, 2 }
 0x1dc   : > { %v1035_v47 = vadd.f32 %v1034_v45, %v1033_v41  ;;  %v2447_v41 = vld [vmem:[%s4503_s4 + $0xc8] sm:$0xff]  ;;  %v2466_v45 = vld [vmem:[%s4503_s4 + $0x160] sm:$0xff] }
 0x1dd   : > { %1236 = vmatpush.msra.mxu1 %v2447_v41  ;;  %1340 = vmatpush.msrb.mxu3 %v2466_v45  ;;  %v2501_v41 = vld [vmem:[%s4503_s4 + $0x278] sm:$0xff]  ;;  %v2472_v45 = vld [vmem:[%s4503_s4 + $0x190] sm:$0xff] }
 0x1de   : > { %v1036_v53 = vrot.slane %v1035_v47, 1 }
 0x1df   : > { %1237 = vmatpush.msra.mxu1 %v2446_v52  ;;  %v2471_v52 = vld [vmem:[%s4503_s4 + $0x188] sm:$0xff] }
 0x1e0   : > { %v1037_v55 = vadd.f32 %v1036_v53, %v1035_v47  ;;  %v2481_v47 = vld [vmem:[%s4503_s4 + $0x1d8] sm:$0xff] }
 0x1e1   : > { %v1200_v53 = vld [vmem:[%s4503_s4 + $0x58] sm:$0xff] }
 0x1e2   : > { %2621 = vpush %v1037_v55  ;;  %v2465_v55 = vld [vmem:[%s4503_s4 + $0x158] sm:$0xff]  ;;  %1275 = vmatpush.msra.mxu2 %v1200_v53  ;;  %v2499_v53 = vld [vmem:[%s4503_s4 + $0x268] sm:$0xff] }
 0x1e3   : > { %2623 = vpush %v1045_v50  ;;  %v2480_v50 = vld [vmem:[%s4503_s4 + $0x1d0] sm:$0xff]  ;;  %1341 = vmatpush.msrb.mxu3 %v2465_v55  ;;  %v2470_v55 = vld [vmem:[%s4503_s4 + $0x180] sm:$0xff] }
 0x213   : > { %s2622_s12 = spop %2621 }
 0x214   : > { %s3529_s20 = spop %2623 }
 0x215   : > { %s1047_s18 = smul.f32 %s3529_s20, %s2622_s12 }
 0x217   : > { %v1048_v57 = vstv %s1047_s18 }
 0x218   : > { %v3533_v58 = vsub.f32 %v3504_v1, %v1048_v57  ;;  %v3536_v60 = vsub.f32 %v3500_v59, %v1048_v57  ;;  %v3538_v61 = vsub.f32 %v1006_v11, %v1048_v57  ;;  %v3540_v62 = vsub.f32 %v1007_v14, %v1048_v57 }
 0x219   : > { %v3546_v8 = vsub.f32 %v1008_v39, %v1048_v57  ;;  %v3554_v11 = vsub.f32 %v1009_v18, %v1048_v57  ;;  %v3558_v33 = vsub.f32 %v1010_v30, %v1048_v57  ;;  %v3564_v19 = vsub.f32 %v1011_v34, %v1048_v57  ;;  %v2484_v34 = vld [vmem:[%s4503_s4 + $0x1f0] sm:$0xff]  ;;  %v2445_v57 = vld [vmem:[%s4503_s4 + $0xb8] sm:$0xff] }
 0x21a   : > { %v1057_v54 = vmul.f32 %v3533_v58, %v3533_v58  ;;  %v1058_v3 = vmul.f32 %v3536_v60, %v3536_v60  ;;  %v1059_v9 = vmul.f32 %v3538_v61, %v3538_v61  ;;  %v1060_v17 = vmul.f32 %v3540_v62, %v3540_v62  ;;  %1412 = vmatpush.msrb.mxu0 %v2484_v34  ;;  %v1189_v34 = vld [vmem:[%s4503_s4] sm:$0xff] }
 0x21b   : > { %v1061_v5 = vmul.f32 %v3546_v8, %v3546_v8  ;;  %v1062_v20 = vmul.f32 %v3554_v11, %v3554_v11  ;;  %v1063_v28 = vmul.f32 %v3558_v33, %v3558_v33  ;;  %v1064_v23 = vmul.f32 %v3564_v19, %v3564_v19  ;;  %1238 = vmatpush.msra.mxu1 %v2445_v57  ;;  %v2497_v57 = vld [vmem:[%s4503_s4 + $0x258] sm:$0xff] }
 0x21c   : > { %v1065_v1 = vsel %vm1014_vm0, %v1057_v54, 0.0  ;;  %v1066_v59 = vsel %vm1014_vm0, %v1058_v3, 0.0  ;;  %v1067_v10 = vsel %vm1014_vm0, %v1059_v9, 0.0  ;;  %v1068_v49 = vsel %vm1014_vm0, %v1060_v17, 0.0  ;;  %1413 = vmatpush.msrb.mxu0 %v2483_v37  ;;  %v1199_v54 = vld [vmem:[%s4503_s4 + $0x50] sm:$0xff]  ;;  %v2479_v9 = vld [vmem:[%s4503_s4 + $0x1c8] sm:$0xff] }
 0x21d   : > { %v1073_v13 = vadd.f32 %v1066_v59, %v1065_v1  ;;  %v1069_v39 = vsel %vm1014_vm0, %v1061_v5, 0.0  ;;  %v1070_v4 = vsel %vm1014_vm0, %v1062_v20, 0.0  ;;  %v1071_v51 = vsel %vm1014_vm0, %v1063_v28, 0.0  ;;  %v2464_v3 = vld [vmem:[%s4503_s4 + $0x150] sm:$0xff]  ;;  %v1198_v59 = vld [vmem:[%s4503_s4 + $0x48] sm:$0xff]  ;;  %1276 = vmatpush.msra.mxu2 %v1199_v54  ;;  %v2478_v5 = vld [vmem:[%s4503_s4 + $0x1c0] sm:$0xff] }
 0x21e   : > { %v1072_v7 = vsel %vm1014_vm0, %v1064_v23, 0.0  ;;  %1414 = vmatpush.msrb.mxu0 %v2482_v16  ;;  %v2444_v1 = vld [vmem:[%s4503_s4 + $0xb0] sm:$0xff]  ;;  %1342 = vmatpush.msrb.mxu3 %v2464_v3  ;;  %v2462_v20 = vld [vmem:[%s4503_s4 + $0x140] sm:$0xff]  ;;  %v2441_v23 = vld [vmem:[%s4503_s4 + $0x98] sm:$0xff] }
 0x21f   : > { %v1074_v14 = vadd.f32 %v1073_v13, %v1067_v10  ;;  %v2463_v13 = vld [vmem:[%s4503_s4 + $0x148] sm:$0xff]  ;;  %1239 = vmatpush.msra.mxu1 %v2444_v1  ;;  %1277 = vmatpush.msra.mxu2 %v1198_v59  ;;  %v2442_v28 = vld [vmem:[%s4503_s4 + $0xa0] sm:$0xff]  ;;  %v2496_v54 = vld [vmem:[%s4503_s4 + $0x250] sm:$0xff] }
 0x220   : > { %1415 = vmatpush.msrb.mxu0 %v2481_v47  ;;  %v2443_v10 = vld [vmem:[%s4503_s4 + $0xa8] sm:$0xff]  ;;  %1343 = vmatpush.msrb.mxu3 %v2463_v13  ;;  %v2454_v37 = vld [vmem:[%s4503_s4 + $0x100] sm:$0xff]  ;;  %v2500_v47 = vld [vmem:[%s4503_s4 + $0x270] sm:$0xff] }
 0x221   : > { %v1075_v25 = vadd.f32 %v1074_v14, %v1068_v49  ;;  %v1197_v14 = vld [vmem:[%s4503_s4 + $0x40] sm:$0xff]  ;;  %v2477_v49 = vld [vmem:[%s4503_s4 + $0x1b8] sm:$0xff]  ;;  %1240 = vmatpush.msra.mxu1 %v2443_v10 }
 0x222   : > { %1416 = vmatpush.msrb.mxu0 %v2480_v50  ;;  %1278 = vmatpush.msra.mxu2 %v1197_v14  ;;  %v2474_v16 = vld [vmem:[%s4503_s4 + $0x1a0] sm:$0xff]  ;;  %v2549_v3 = vld [vmem:[%s4503_s4 + $0x3f8] sm:$0xff] }
 0x223   : > { %v1076_v48 = vadd.f32 %v1075_v25, %v1069_v39  ;;  %v1196_v25 = vld [vmem:[%s4503_s4 + $0x38] sm:$0xff]  ;;  %1344 = vmatpush.msrb.mxu3 %v2462_v20  ;;  %1241 = vmatpush.msra.mxu1 %v2442_v28  ;;  %v2498_v50 = vld [vmem:[%s4503_s4 + $0x260] sm:$0xff] }
 0x224   : > { %1417 = vmatpush.msrb.mxu0 %v2479_v9  ;;  %v2461_v39 = vld [vmem:[%s4503_s4 + $0x138] sm:$0xff]  ;;  %1279 = vmatpush.msra.mxu2 %v1196_v25  ;;  %v2684_v9 = vld [vmem:[%s4501_s2] ss:$0 sm:$0xff] }
 0x225   : > { %v1077_v63 = vadd.f32 %v1076_v48, %v1070_v4  ;;  %v1195_v48 = vld [vmem:[%s4503_s4 + $0x30] sm:$0xff]  ;;  %1345 = vmatpush.msrb.mxu3 %v2461_v39  ;;  %1242 = vmatpush.msra.mxu1 %v2441_v23  ;;  %v2685_v10 = vld [vmem:[%s4502_s3] ss:$0 sm:$0xff] }
 0x226   : > { %1418 = vmatpush.msrb.mxu0 %v2478_v5  ;;  %v2460_v4 = vld [vmem:[%s4503_s4 + $0x130] sm:$0xff]  ;;  %1280 = vmatpush.msra.mxu2 %v1195_v48 }
 0x227   : > { %v1078_v21 = vadd.f32 %v1077_v63, %v1071_v51  ;;  %v1194_v51 = vld [vmem:[%s4503_s4 + $0x28] sm:$0xff]  ;;  %1346 = vmatpush.msrb.mxu3 %v2460_v4 }
 0x228   : > { %1419 = vmatpush.msrb.mxu0 %v2477_v49  ;;  %1281 = vmatpush.msra.mxu2 %v1194_v51 }
 0x229   : > { %v1079_v18 = vadd.f32 %v1078_v21, %v1072_v7  ;;  %v2440_v21 = vld [vmem:[%s4503_s4 + $0x90] sm:$0xff] }
 0x22a   : > { %1243 = vmatpush.msra.mxu1 %v2440_v21  ;;  %1420 = vmatpush.msrb.mxu0 %v2476_v22  ;;  %v2545_v22 = vld [vmem:[%s4503_s4 + $0x3d8] sm:$0xff] }
 0x22b   : > { %1080 = vadd.xlane.f32.xlu0 %v1079_v18  ;;  %v2459_v18 = vld [vmem:[%s4503_s4 + $0x128] sm:$0xff] }
 0x22c   : > { %1347 = vmatpush.msrb.mxu3 %v2459_v18  ;;  %1244 = vmatpush.msra.mxu1 %v2439_v32 }
 0x22d   : > { %1421 = vmatpush.msrb.mxu0 %v2475_v43  ;;  %v2515_v43 = vld [vmem:[%s4503_s4 + $0x2e8] sm:$0xff] }
 0x22e   : > { %1245 = vmatpush.msra.mxu1 %v2438_v44  ;;  %v2492_v44 = vld [vmem:[%s4503_s4 + $0x230] sm:$0xff] }
 0x22f   : > { %1422 = vmatpush.msrb.mxu0 %v2474_v16  ;;  %1246 = vmatmul.f32.vlgmr.msra.gmra.mxu1 %v1205_v42  ;;  %v2514_v16 = vld [vmem:[%s4503_s4 + $0x2e0] sm:$0xff] }
 0x230   : > { %1485 = vmatpush.msrb.mxu1 %v2501_v41 }
 0x231   : > { %1423 = vmatpush.msrb.mxu0 %v2473_v46  ;;  %v2530_v46 = vld [vmem:[%s4503_s4 + $0x360] sm:$0xff] }
 0x232   : > { %1486 = vmatpush.msrb.mxu1 %v2500_v47  ;;  %v2544_v47 = vld [vmem:[%s4503_s4 + $0x3d0] sm:$0xff] }
 0x233   : > { %1424 = vmatpush.msrb.mxu0 %v2472_v45  ;;  %v2491_v45 = vld [vmem:[%s4503_s4 + $0x228] sm:$0xff] }
 0x234   : > { %1487 = vmatpush.msrb.mxu1 %v2499_v53  ;;  %v2529_v53 = vld [vmem:[%s4503_s4 + $0x358] sm:$0xff] }
 0x235   : > { %1425 = vmatpush.msrb.mxu0 %v2471_v52  ;;  %v2513_v52 = vld [vmem:[%s4503_s4 + $0x2d8] sm:$0xff] }
 0x236   : > { %1488 = vmatpush.msrb.mxu1 %v2498_v50  ;;  %v2528_v50 = vld [vmem:[%s4503_s4 + $0x350] sm:$0xff] }
 0x237   : > { %1426 = vmatpush.msrb.mxu0 %v2470_v55  ;;  %v2512_v55 = vld [vmem:[%s4503_s4 + $0x2d0] sm:$0xff] }
 0x238   : > { %1489 = vmatpush.msrb.mxu1 %v2497_v57  ;;  %v2490_v57 = vld [vmem:[%s4503_s4 + $0x220] sm:$0xff] }
 0x239   : > { %1708 = vmatpush.msra.mxu0 %v2549_v3 }
 0x23a   : > { %1490 = vmatpush.msrb.mxu1 %v2496_v54  ;;  %v2543_v54 = vld [vmem:[%s4503_s4 + $0x3c8] sm:$0xff] }
 0x29e   : > { %v1081_v6 = vpop.xlane.xlu0 %1080 }
 0x29f   : > { %v1082_v24 = vrot.slane %v1081_v6, 4 }
 0x2a1   : > { %v1083_v35 = vadd.f32 %v1082_v24, %v1081_v6  ;;  %v1193_v6 = vld [vmem:[%s4503_s4 + $0x20] sm:$0xff] }
 0x2a2   : > { %1282 = vmatpush.msra.mxu2 %v1193_v6 }
 0x2a3   : > { %v1084_v30 = vrot.slane %v1083_v35, 2 }
 0x2a5   : > { %v1085_v15 = vadd.f32 %v1084_v30, %v1083_v35  ;;  %v2458_v35 = vld [vmem:[%s4503_s4 + $0x120] sm:$0xff]  ;;  %v1192_v30 = vld [vmem:[%s4503_s4 + $0x18] sm:$0xff] }
 0x2a6   : > { %1348 = vmatpush.msrb.mxu3 %v2458_v35  ;;  %1283 = vmatpush.msra.mxu2 %v1192_v30 }
 0x2a7   : > { %v1086_v2 = vrot.slane %v1085_v15, 1 }
 0x2a9   : > { %v1087_v26 = vadd.f32 %v1086_v2, %v1085_v15  ;;  %v2457_v2 = vld [vmem:[%s4503_s4 + $0x118] sm:$0xff] }
 0x2aa   : > { %1349 = vmatpush.msrb.mxu3 %v2457_v2 }
 0x2ab   : > { %2625 = vpush %v1087_v26  ;;  %v1191_v26 = vld [vmem:[%s4503_s4 + $0x10] sm:$0xff] }
 0x2ac   : > { %1284 = vmatpush.msra.mxu2 %v1191_v26  ;;  %1350 = vmatpush.msrb.mxu3 %v2456_v12 }
 0x2ae   : > { %1285 = vmatpush.msra.mxu2 %v1190_v27  ;;  %1351 = vmatpush.msrb.mxu3 %v2455_v36  ;;  %v2517_v27 = vld [vmem:[%s4503_s4 + $0x2f8] sm:$0xff]  ;;  %v2516_v36 = vld [vmem:[%s4503_s4 + $0x2f0] sm:$0xff] }
 0x2b0   : > { %1286 = vmatpush.msra.mxu2 %v1189_v34  ;;  %1352 = vmatpush.msrb.mxu3 %v2454_v37  ;;  %v2533_v34 = vld [vmem:[%s4503_s4 + $0x378] sm:$0xff]  ;;  %v2532_v37 = vld [vmem:[%s4503_s4 + $0x370] sm:$0xff] }
 0x2b1   : > { %1287 = vmatmul.f32.vlgmr.msra.gmra.mxu2 %v2771_v0  ;;  %1353 = vmatmul.f32.vlgmr.msrb.gmra.mxu3 %v1312_v38  ;;  %v2531_v38 = vld [vmem:[%s4503_s4 + $0x368] sm:$0xff] }
 0x2b2   : > { %1559 = vmatpush.msrb.mxu2 %v2517_v27  ;;  %1634 = vmatpush.msra.mxu3 %v2533_v34  ;;  %v2564_v27 = vld [vmem:[%s4503_s4 + $0x470] sm:$0xff]  ;;  %v2503_v34 = vld [vmem:[%s4503_s4 + $0x288] sm:$0xff] }
 0x2b4   : > { %1560 = vmatpush.msrb.mxu2 %v2516_v36  ;;  %1635 = vmatpush.msra.mxu3 %v2532_v37  ;;  %v2519_v36 = vld [vmem:[%s4503_s4 + $0x308] sm:$0xff] }
 0x2b5   : > { %v2535_v37 = vld [vmem:[%s4503_s4 + $0x388] sm:$0xff] }
 0x2b6   : > { %1561 = vmatpush.msrb.mxu2 %v2515_v43  ;;  %1636 = vmatpush.msra.mxu3 %v2531_v38  ;;  %v2502_v43 = vld [vmem:[%s4503_s4 + $0x280] sm:$0xff] }
 0x2b7   : > { %v2518_v38 = vld [vmem:[%s4503_s4 + $0x300] sm:$0xff] }
 0x2b8   : > { %1562 = vmatpush.msrb.mxu2 %v2514_v16  ;;  %1637 = vmatpush.msra.mxu3 %v2530_v46  ;;  %v2534_v16 = vld [vmem:[%s4503_s4 + $0x380] sm:$0xff] }
 0x2b9   : > { %v2562_v46 = vld [vmem:[%s4503_s4 + $0x460] sm:$0xff] }
 0x2ba   : > { %1563 = vmatpush.msrb.mxu2 %v2513_v52  ;;  %1638 = vmatpush.msra.mxu3 %v2529_v53  ;;  %v2561_v52 = vld [vmem:[%s4503_s4 + $0x458] sm:$0xff]  ;;  %v2560_v53 = vld [vmem:[%s4503_s4 + $0x450] sm:$0xff] }
 0x2bc   : > { %1564 = vmatpush.msrb.mxu2 %v2512_v55  ;;  %1639 = vmatpush.msra.mxu3 %v2528_v50 }
 0x2dc   : > { %s2626_s21 = spop %2625 }
 0x2dd   : > { %s1097_s11 = smul.f32 %s2626_s21, %s3529_s20 }
 0x2df   : > { %s1098_s21 = sadd.f32 1e-05, %s1097_s11 }
 0x2e1   : > { %v1099_v17 = vstv %s1098_s21 }
 0x2e2   : > { %2692 = vrsqrt.f32 %v1099_v17  ;;  %vm1106_vm3 = vweird.f32 %v1099_v17 }
 0x2e8   : > { %v2693_v63 = vpop.eup %2692 }
 0x2e9   : > { %v1101_v7 = vmul.f32 %v2693_v63, %v1099_v17  ;;  %vm1107_vm2 = vweird.f32 %v2693_v63 }
 0x2ea   : > { %vm1108_vm4 = vmor %vm1106_vm3, %vm1107_vm2 }
 0x2eb   : > { %v1102_v24 = vmul.f32 %v2693_v63, %v1101_v7 }
 0x2ed   : > { %v1103_v15 = vmul.f32 0.5, %v1102_v24 }
 0x2ef   : > { %v1104_v31 = vsub.f32 1.5, %v1103_v15 }
 0x2f1   : > { %v1105_v29 = vmul.f32 %v2693_v63, %v1104_v31 }
 0x2f3   : > { %v1109_v40 = vsel %vm1108_vm4, %v2693_v63, %v1105_v29  ;;  %v2493_v29 = vld [vmem:[%s4503_s4 + $0x238] sm:$0xff] }
 0x2f4   : > { %2627 = vpush %v1109_v40  ;;  %v2546_v40 = vld [vmem:[%s4503_s4 + $0x3e0] sm:$0xff] }
 0x325   : > { %s2628_s1 = spop %2627 }
 0x326   : > { %v1111_v1 = vstv %s2628_s1 }
 0x327   : > { %v1112_v59 = vmul.f32 %v1111_v1, %v3533_v58  ;;  %v1113_v17 = vmul.f32 %v1111_v1, %v3536_v60  ;;  %v1114_v13 = vmul.f32 %v1111_v1, %v3538_v61  ;;  %v1115_v5 = vmul.f32 %v1111_v1, %v3540_v62  ;;  %v2495_v58 = vld [vmem:[%s4503_s4 + $0x248] sm:$0xff]  ;;  %v2548_v60 = vld [vmem:[%s4503_s4 + $0x3f0] sm:$0xff]  ;;  %v2494_v61 = vld [vmem:[%s4503_s4 + $0x240] sm:$0xff] }
 0x328   : > { %v1116_v14 = vmul.f32 %v1111_v1, %v3546_v8  ;;  %v1117_v20 = vmul.f32 %v1111_v1, %v3554_v11  ;;  %v1118_v49 = vmul.f32 %v1111_v1, %v3558_v33  ;;  %v1119_v25 = vmul.f32 %v1111_v1, %v3564_v19  ;;  %1491 = vmatpush.msrb.mxu1 %v2495_v58  ;;  %v2547_v33 = vld [vmem:[%s4503_s4 + $0x3e8] sm:$0xff] }
 0x329   : > { %v1124_v62 = vmul.f32 %v2684_v9, %v1112_v59  ;;  %v1125_v8 = vmul.f32 %v2684_v9, %v1113_v17  ;;  %v1126_v28 = vmul.f32 %v2684_v9, %v1114_v13  ;;  %v1127_v11 = vmul.f32 %v2684_v9, %v1115_v5  ;;  %1709 = vmatpush.msra.mxu0 %v2548_v60  ;;  %v2511_v1 = vld [vmem:[%s4503_s4 + $0x2c8] sm:$0xff]  ;;  %v2510_v17 = vld [vmem:[%s4503_s4 + $0x2c0] sm:$0xff]  ;;  %v2489_v5 = vld [vmem:[%s4503_s4 + $0x218] sm:$0xff] }
 0x32a   : > { %v1128_v19 = vmul.f32 %v2684_v9, %v1116_v14  ;;  %v1129_v39 = vmul.f32 %v2684_v9, %v1117_v20  ;;  %v1130_v48 = vmul.f32 %v2684_v9, %v1118_v49  ;;  %v1131_v23 = vmul.f32 %v2684_v9, %v1119_v25  ;;  %1492 = vmatpush.msrb.mxu1 %v2494_v61  ;;  %v2527_v59 = vld [vmem:[%s4503_s4 + $0x348] sm:$0xff]  ;;  %v2526_v13 = vld [vmem:[%s4503_s4 + $0x340] sm:$0xff]  ;;  %v2509_v14 = vld [vmem:[%s4503_s4 + $0x2b8] sm:$0xff] }
 0x32b   : > { %v1136_v4 = vadd.f32 %v2685_v10, %v1124_v62  ;;  %v1137_v63 = vadd.f32 %v2685_v10, %v1125_v8  ;;  %v1138_v51 = vadd.f32 %v2685_v10, %v1126_v28  ;;  %v1139_v21 = vadd.f32 %v2685_v10, %v1127_v11  ;;  %1710 = vmatpush.msra.mxu0 %v2547_v33  ;;  %v2525_v20 = vld [vmem:[%s4503_s4 + $0x338] sm:$0xff]  ;;  %v2488_v49 = vld [vmem:[%s4503_s4 + $0x210] sm:$0xff]  ;;  %v2507_v8 = vld [vmem:[%s4503_s4 + $0x2a8] sm:$0xff] }
 0x32c   : > { %v1140_v7 = vadd.f32 %v2685_v10, %v1128_v19  ;;  %v1141_v18 = vadd.f32 %v2685_v10, %v1129_v39  ;;  %v1142_v6 = vadd.f32 %v2685_v10, %v1130_v48  ;;  %v1143_v15 = vadd.f32 %v2685_v10, %v1131_v23  ;;  %1493 = vmatpush.msrb.mxu1 %v2493_v29  ;;  %v2542_v10 = vld [vmem:[%s4503_s4 + $0x3c0] sm:$0xff]  ;;  %v2541_v25 = vld [vmem:[%s4503_s4 + $0x3b8] sm:$0xff]  ;;  %v2508_v61 = vld [vmem:[%s4503_s4 + $0x2b0] sm:$0xff] }
 0x32d   : > { %v3843_v24 = vmax.f32 %v1136_v4, 0.0  ;;  %v3845_v35 = vmax.f32 %v1137_v63, 0.0  ;;  %v3847_v30 = vmax.f32 %v1138_v51, 0.0  ;;  %v3849_v2 = vmax.f32 %v1139_v21, 0.0  ;;  %1711 = vmatpush.msra.mxu0 %v2546_v40  ;;  %1565 = vmatpush.msrb.mxu2 %v2511_v1  ;;  %v2524_v62 = vld [vmem:[%s4503_s4 + $0x330] sm:$0xff]  ;;  %v2523_v28 = vld [vmem:[%s4503_s4 + $0x328] sm:$0xff] }
 0x32e   : > { %v3851_v26 = vmax.f32 %v1140_v7, 0.0  ;;  %v3855_v31 = vmax.f32 %v1141_v18, 0.0  ;;  %v3867_v12 = vmax.f32 %v1142_v6, 0.0  ;;  %v3879_v32 = vmax.f32 %v1143_v15, 0.0  ;;  %1494 = vmatpush.msrb.mxu1 %v2492_v44  ;;  %1640 = vmatpush.msra.mxu3 %v2527_v59  ;;  %v2487_v11 = vld [vmem:[%s4503_s4 + $0x208] sm:$0xff]  ;;  %v2540_v33 = vld [vmem:[%s4503_s4 + $0x3b0] sm:$0xff] }
 0x32f   : > { %1173 = vst [vmem:[#allocation2 + $0x11] sm:$0xff] %v3843_v24  ;;  %1249 = vmatmul.f32.gmra.mxu1 %v3843_v24  ;;  %1712 = vmatpush.msra.mxu0 %v2545_v22  ;;  %v2506_v19 = vld [vmem:[%s4503_s4 + $0x2a0] sm:$0xff]  ;;  %v2539_v23 = vld [vmem:[%s4503_s4 + $0x3a8] sm:$0xff]  ;;  %v2505_v21 = vld [vmem:[%s4503_s4 + $0x298] sm:$0xff] }
 0x330   : > { %1174 = vst [vmem:[#allocation2 + $0x21] sm:$0xff] %v3845_v35  ;;  %1495 = vmatpush.msrb.mxu1 %v2491_v45  ;;  %1566 = vmatpush.msrb.mxu2 %v2510_v17  ;;  %v2522_v39 = vld [vmem:[%s4503_s4 + $0x320] sm:$0xff]  ;;  %v2521_v7 = vld [vmem:[%s4503_s4 + $0x318] sm:$0xff]  ;;  %v2504_v18 = vld [vmem:[%s4503_s4 + $0x290] sm:$0xff] }
 0x331   : > { %1175 = vst [vmem:[#allocation2 + $0x31] sm:$0xff] %v3847_v30  ;;  %1713 = vmatpush.msra.mxu0 %v2544_v47  ;;  %1641 = vmatpush.msra.mxu3 %v2526_v13  ;;  %v2486_v48 = vld [vmem:[%s4503_s4 + $0x200] sm:$0xff]  ;;  %v2520_v6 = vld [vmem:[%s4503_s4 + $0x310] sm:$0xff]  ;;  %v2565_v15 = vld [vmem:[%s4503_s4 + $0x478] sm:$0xff] }
 0x332   : > { %1176 = vst [vmem:[#allocation2 + $0x41] sm:$0xff] %v3849_v2  ;;  %1496 = vmatpush.msrb.mxu1 %v2490_v57  ;;  %1567 = vmatpush.msrb.mxu2 %v2509_v14  ;;  %v2538_v4 = vld [vmem:[%s4503_s4 + $0x3a0] sm:$0xff]  ;;  %v2537_v29 = vld [vmem:[%s4503_s4 + $0x398] sm:$0xff]  ;;  %v2536_v40 = vld [vmem:[%s4503_s4 + $0x390] sm:$0xff] }
 0x333   : > { %1177 = vst [vmem:[#allocation2 + $0x51] sm:$0xff] %v3851_v26  ;;  %1714 = vmatpush.msra.mxu0 %v2543_v54  ;;  %1642 = vmatpush.msra.mxu3 %v2525_v20  ;;  %v2559_v57 = vld [vmem:[%s4503_s4 + $0x448] sm:$0xff]  ;;  %v2558_v54 = vld [vmem:[%s4503_s4 + $0x440] sm:$0xff]  ;;  %v2556_v59 = vld [vmem:[%s4503_s4 + $0x430] sm:$0xff] }
 0x334   : > { %1178 = vst [vmem:[#allocation2 + $0x61] sm:$0xff] %v3855_v31  ;;  %1497 = vmatpush.msrb.mxu1 %v2489_v5  ;;  %1568 = vmatpush.msrb.mxu2 %v2508_v61  ;;  %v2552_v17 = vld [vmem:[%s4503_s4 + $0x410] sm:$0xff]  ;;  %v2550_v13 = vld [vmem:[%s4503_s4 + $0x400] sm:$0xff]  ;;  %v1247_v5 = vpop.f32.mrf.mxu1  ;;  %v1354_v14 = vpop.f32.mrf.mxu3 }
 0x335   : > { %1179 = vst [vmem:[#allocation2 + $0x71] sm:$0xff] %v3867_v12  ;;  %1715 = vmatpush.msra.mxu0 %v2542_v10  ;;  %1643 = vmatpush.msra.mxu3 %v2524_v62 }
 0x336   : > { %1180 = vst [vmem:[#allocation2 + $0x81] sm:$0xff] %v3879_v32  ;;  %v1182_v42 = vld [vmem:[#allocation2 + $0x10] sm:$0xff]  ;;  %1498 = vmatpush.msrb.mxu1 %v2488_v49  ;;  %1569 = vmatpush.msrb.mxu2 %v2507_v8 }
 0x337   : > { %v3901_v41 = vld [vmem:[#allocation2 + $0x12] sm:$0xff]  ;;  %1290 = vmatmul.f32.gmra.mxu2 %v1182_v42  ;;  %1427 = vmatmul.f32.vlgmr.msrb.gmra.mxu0 %v1182_v42  ;;  %v3932_v3 = vld [vmem:[#allocation2 + $0x20] sm:$0xff]  ;;  %v2563_v42 = vld [vmem:[%s4503_s4 + $0x468] sm:$0xff] }
 0x338   : > { %1356 = vmatmul.f32.gmra.mxu3 %v3901_v41  ;;  %1252 = vmatmul.f32.gmra.mxu1 %v3845_v35  ;;  %v3934_v9 = vld [vmem:[#allocation2 + $0x22] sm:$0xff]  ;;  %v3970_v58 = vld [vmem:[#allocation2 + $0x30] sm:$0xff] }
 0x339   : > { %1716 = vmatpush.msra.mxu0 %v2541_v25  ;;  %v3972_v60 = vld [vmem:[#allocation2 + $0x32] sm:$0xff]  ;;  %1499 = vmatpush.msrb.mxu1 %v2487_v11  ;;  %v4011_v63 = vld [vmem:[#allocation2 + $0x40] sm:$0xff] }
 0x33a   : > { %1644 = vmatpush.msra.mxu3 %v2523_v28  ;;  %1570 = vmatpush.msrb.mxu2 %v2506_v19  ;;  %v4013_v51 = vld [vmem:[#allocation2 + $0x42] sm:$0xff]  ;;  %v4052_v44 = vld [vmem:[#allocation2 + $0x50] sm:$0xff] }
 0x33b   : > { %1717 = vmatpush.msra.mxu0 %v2540_v33  ;;  %1500 = vmatpush.msrb.mxu1 %v2486_v48  ;;  %v4054_v22 = vld [vmem:[#allocation2 + $0x52] sm:$0xff]  ;;  %v4075_v45 = vld [vmem:[#allocation2 + $0x60] sm:$0xff] }
 0x33c   : > { %1645 = vmatpush.msra.mxu3 %v2522_v39  ;;  %1571 = vmatpush.msrb.mxu2 %v2505_v21  ;;  %v4077_v47 = vld [vmem:[#allocation2 + $0x62] sm:$0xff]  ;;  %v1188_v55 = vld [vmem:[#allocation2 + $0x70] sm:$0xff] }
 0x33d   : > { %1718 = vmatpush.msra.mxu0 %v2539_v23  ;;  %2588 = vmatpush.msra.mxu1 %v2565_v15  ;;  %v4089_v50 = vld [vmem:[#allocation2 + $0x72] sm:$0xff]  ;;  %v1393_v1 = vld [vmem:[#allocation2 + $0x80] sm:$0xff] }
 0x33e   : > { %1646 = vmatpush.msra.mxu3 %v2521_v7  ;;  %1572 = vmatpush.msrb.mxu2 %v2504_v18  ;;  %v1690_v49 = vld [vmem:[#allocation2 + $0x91] sm:$0xff] }
 0x33f   : > { %1293 = vmatmul.f32.gmra.mxu2 %v3932_v3  ;;  %1430 = vmatmul.f32.gmra.mxu0 %v3932_v3 }
 0x340   : > { %1359 = vmatmul.f32.gmra.mxu3 %v3934_v9  ;;  %1255 = vmatmul.f32.gmra.mxu1 %v3847_v30 }
 0x341   : > { %1719 = vmatpush.msra.mxu0 %v2538_v4  ;;  %1647 = vmatpush.msra.mxu3 %v2520_v6 }
 0x342   : > { %2589 = vmatpush.msra.mxu1 %v2564_v27  ;;  %1573 = vmatpush.msrb.mxu2 %v2503_v34 }
 0x343   : > { %1720 = vmatpush.msra.mxu0 %v2537_v29  ;;  %1648 = vmatpush.msra.mxu3 %v2519_v36 }
 0x344   : > { %1574 = vmatpush.msrb.mxu2 %v2502_v43  ;;  %2590 = vmatpush.msra.mxu1 %v2563_v42 }
 0x345   : > { %1721 = vmatpush.msra.mxu0 %v2536_v40  ;;  %1649 = vmatpush.msra.mxu3 %v2518_v38 }
 0x346   : > { %2591 = vmatpush.msra.mxu1 %v2562_v46 }
 0x347   : > { %1296 = vmatmul.f32.gmra.mxu2 %v3970_v58  ;;  %1433 = vmatmul.f32.gmra.mxu0 %v3970_v58 }
 0x348   : > { %1362 = vmatmul.f32.gmra.mxu3 %v3972_v60  ;;  %1258 = vmatmul.f32.gmra.mxu1 %v3849_v2 }
 0x349   : > { %1722 = vmatpush.msra.mxu0 %v2535_v37  ;;  %2592 = vmatpush.msra.mxu1 %v2561_v52 }
 0x34b   : > { %1723 = vmatpush.msra.mxu0 %v2534_v16  ;;  %2593 = vmatpush.msra.mxu1 %v2560_v53 }
 0x34d   : > { %1782 = vmatpush.msrb.mxu0 %v2565_v15  ;;  %2594 = vmatpush.msra.mxu1 %v2559_v57  ;;  %v1764_v15 = vld [vmem:[#allocation2 + $0x92] sm:$0xff] }
 0x34f   : > { %1299 = vmatmul.f32.gmra.mxu2 %v4011_v63  ;;  %1436 = vmatmul.f32.gmra.mxu0 %v4011_v63 }
 0x350   : > { %1365 = vmatmul.f32.gmra.mxu3 %v4013_v51  ;;  %1261 = vmatmul.f32.gmra.mxu1 %v3851_v26 }
 0x351   : > { %1783 = vmatpush.msrb.mxu0 %v2564_v27  ;;  %2595 = vmatpush.msra.mxu1 %v2558_v54 }
 0x353   : > { %1784 = vmatpush.msrb.mxu0 %v2563_v42 }
 0x355   : > { %1785 = vmatpush.msrb.mxu0 %v2562_v46 }
 0x357   : > { %1302 = vmatmul.f32.gmra.mxu2 %v4052_v44  ;;  %1439 = vmatmul.f32.gmra.mxu0 %v4052_v44 }
 0x358   : > { %1368 = vmatmul.f32.gmra.mxu3 %v4054_v22  ;;  %1264 = vmatmul.f32.gmra.mxu1 %v3855_v31 }
 0x359   : > { %1786 = vmatpush.msrb.mxu0 %v2561_v52 }
 0x35b   : > { %1787 = vmatpush.msrb.mxu0 %v2560_v53 }
 0x35d   : > { %1788 = vmatpush.msrb.mxu0 %v2559_v57 }
 0x35f   : > { %1305 = vmatmul.f32.gmra.mxu2 %v4075_v45  ;;  %1442 = vmatmul.f32.gmra.mxu0 %v4075_v45 }
 0x360   : > { %1371 = vmatmul.f32.gmra.mxu3 %v4077_v47  ;;  %1267 = vmatmul.f32.gmra.mxu1 %v3867_v12 }
 0x361   : > { %1789 = vmatpush.msrb.mxu0 %v2558_v54 }
 0x367   : > { %1308 = vmatmul.f32.gmra.mxu2 %v1188_v55  ;;  %1445 = vmatmul.f32.gmra.mxu0 %v1188_v55 }
 0x368   : > { %1374 = vmatmul.f32.gmra.mxu3 %v4089_v50  ;;  %1501 = vmatmul.f32.vlgmr.msrb.gmra.mxu1 %v3843_v24  ;;  %v2557_v24 = vld [vmem:[%s4503_s4 + $0x438] sm:$0xff] }
 0x369   : > { %2596 = vmatpush.msra.mxu1 %v2557_v24  ;;  %1790 = vmatpush.msrb.mxu0 %v2557_v24 }
 0x36b   : > { %2597 = vmatpush.msra.mxu1 %v2556_v59  ;;  %1791 = vmatpush.msrb.mxu0 %v2556_v59 }
 0x36f   : > { %1575 = vmatmul.f32.vlgmr.msrb.gmra.mxu2 %v3901_v41  ;;  %1448 = vmatmul.f32.gmra.mxu0 %v1393_v1  ;;  %v2555_v41 = vld [vmem:[%s4503_s4 + $0x428] sm:$0xff] }
 0x370   : > { %1650 = vmatmul.f32.vlgmr.msra.gmra.mxu3 %v3932_v3  ;;  %1504 = vmatmul.f32.gmra.mxu1 %v3845_v35  ;;  %v2554_v3 = vld [vmem:[%s4503_s4 + $0x420] sm:$0xff] }
 0x371   : > { %2598 = vmatpush.msra.mxu1 %v2555_v41  ;;  %1792 = vmatpush.msrb.mxu0 %v2555_v41 }
 0x373   : > { %2599 = vmatpush.msra.mxu1 %v2554_v3  ;;  %1793 = vmatpush.msrb.mxu0 %v2554_v3 }
 0x377   : > { %1578 = vmatmul.f32.gmra.mxu2 %v3934_v9  ;;  %1724 = vmatmul.f32.vlgmr.msra.gmra.mxu0 %v3845_v35  ;;  %v2553_v35 = vld [vmem:[%s4503_s4 + $0x418] sm:$0xff] }
 0x378   : > { %1653 = vmatmul.f32.gmra.mxu3 %v3970_v58  ;;  %1507 = vmatmul.f32.gmra.mxu1 %v3847_v30 }
 0x379   : > { %2600 = vmatpush.msra.mxu1 %v2553_v35  ;;  %1794 = vmatpush.msrb.mxu0 %v2553_v35 }
 0x37b   : > { %2601 = vmatpush.msra.mxu1 %v2552_v17  ;;  %1795 = vmatpush.msrb.mxu0 %v2552_v17 }
 0x37f   : > { %1581 = vmatmul.f32.gmra.mxu2 %v3972_v60  ;;  %1727 = vmatmul.f32.gmra.mxu0 %v3847_v30  ;;  %v2551_v30 = vld [vmem:[%s4503_s4 + $0x408] sm:$0xff] }
 0x380   : > { %1656 = vmatmul.f32.gmra.mxu3 %v4011_v63  ;;  %1510 = vmatmul.f32.gmra.mxu1 %v3849_v2 }
 0x381   : > { %2602 = vmatpush.msra.mxu1 %v2551_v30  ;;  %1796 = vmatpush.msrb.mxu0 %v2551_v30 }
 0x383   : > { %2603 = vmatpush.msra.mxu1 %v2550_v13  ;;  %1797 = vmatpush.msrb.mxu0 %v2550_v13 }
 0x387   : > { %1584 = vmatmul.f32.gmra.mxu2 %v4013_v51  ;;  %1730 = vmatmul.f32.gmra.mxu0 %v3849_v2  ;;  %v1288_v2 = vpop.f32.mrf.mxu2 }
 0x388   : > { %1659 = vmatmul.f32.gmra.mxu3 %v4052_v44  ;;  %1513 = vmatmul.f32.gmra.mxu1 %v3851_v26  ;;  %v1289_v10 = vadd.f32 %v1288_v2, %v1247_v5 }
 0x38a   : > { %v1378_v20 = vadd.f32 %v1354_v14, %v1289_v10 }
 0x38f   : > { %1587 = vmatmul.f32.gmra.mxu2 %v4054_v22  ;;  %1733 = vmatmul.f32.gmra.mxu0 %v3851_v26  ;;  %v1541_v26 = vld [vmem:[#allocation2 + $0x82] sm:$0xff] }
 0x390   : > { %1662 = vmatmul.f32.gmra.mxu3 %v4075_v45  ;;  %1516 = vmatmul.f32.gmra.mxu1 %v3855_v31 }
 0x397   : > { %1590 = vmatmul.f32.gmra.mxu2 %v4077_v47  ;;  %1736 = vmatmul.f32.gmra.mxu0 %v3855_v31 }
 0x398   : > { %1665 = vmatmul.f32.gmra.mxu3 %v1188_v55  ;;  %1519 = vmatmul.f32.gmra.mxu1 %v3867_v12 }
 0x39f   : > { %1593 = vmatmul.f32.gmra.mxu2 %v4089_v50  ;;  %1739 = vmatmul.f32.gmra.mxu0 %v3867_v12 }
 0x3a0   : > { %1668 = vmatmul.f32.gmra.mxu3 %v1393_v1  ;;  %1522 = vmatmul.f32.gmra.mxu1 %v3879_v32 }
 0x3a7   : > { %1596 = vmatmul.f32.gmra.mxu2 %v1541_v26  ;;  %1742 = vmatmul.f32.gmra.mxu0 %v3879_v32 }
 0x3a8   : > { %1671 = vmatmul.f32.gmra.mxu3 %v2771_v0  ;;  %1804 = vmatmul.f32.vlgmr.msra.gmra.mxu1 %v4013_v51 }
 0x3ac   : > { %v1250_v31 = vpop.f32.mrf.mxu1 }
 0x3af   : > { %1745 = vmatmul.f32.gmra.mxu0 %v1690_v49 }
 0x3b0   : > { %1807 = vmatmul.f32.gmra.mxu1 %v4054_v22 }
 0x3b4   : > { %v1428_v25 = vpop.f32.mrf.mxu0 }
 0x3b5   : > { %v1253_v58 = vpop.f32.mrf.mxu1  ;;  %v1452_v61 = vadd.f32 %v1428_v25, %v1378_v20 }
 0x3b7   : > { %1798 = vmatmul.f32.vlgmr.msrb.gmra.mxu0 %v3934_v9 }
 0x3b8   : > { %1810 = vmatmul.f32.gmra.mxu1 %v4077_v47 }
 0x3ba   : > { %v1291_v12 = vpop.f32.mrf.mxu2 }
 0x3bb   : > { %v1357_v62 = vpop.f32.mrf.mxu3  ;;  %v1292_v8 = vadd.f32 %v1291_v12, %v1250_v31 }
 0x3bc   : > { %v1431_v28 = vpop.f32.mrf.mxu0 }
 0x3bd   : > { %v1379_v0 = vadd.f32 %v1357_v62, %v1292_v8  ;;  %v1256_v32 = vpop.f32.mrf.mxu1 }
 0x3bf   : > { %v1453_v11 = vadd.f32 %v1431_v28, %v1379_v0  ;;  %1801 = vmatmul.f32.gmra.mxu0 %v3972_v60 }
 0x3c0   : > { %1813 = vmatmul.f32.gmra.mxu1 %v4089_v50 }
 0x3c2   : > { %v1294_v33 = vpop.f32.mrf.mxu2 }
 0x3c3   : > { %v1360_v19 = vpop.f32.mrf.mxu3  ;;  %v1295_v39 = vadd.f32 %v1294_v33, %v1253_v58 }
 0x3c4   : > { %v1434_v23 = vpop.f32.mrf.mxu0 }
 0x3c5   : > { %v1380_v48 = vadd.f32 %v1360_v19, %v1295_v39  ;;  %v1259_v4 = vpop.f32.mrf.mxu1 }
 0x3c7   : > { %v1454_v9 = vadd.f32 %v1434_v23, %v1380_v48 }
 0x3c8   : > { %1816 = vmatmul.f32.gmra.mxu1 %v1541_v26 }
 0x3ca   : > { %v1297_v63 = vpop.f32.mrf.mxu2 }
 0x3cb   : > { %v1363_v51 = vpop.f32.mrf.mxu3  ;;  %v1298_v21 = vadd.f32 %v1297_v63, %v1256_v32 }
 0x3cc   : > { %v1437_v18 = vpop.f32.mrf.mxu0 }
 0x3cd   : > { %v1381_v7 = vadd.f32 %v1363_v51, %v1298_v21  ;;  %v1262_v6 = vpop.f32.mrf.mxu1 }
 0x3cf   : > { %v1455_v29 = vadd.f32 %v1437_v18, %v1381_v7 }
 0x3d0   : > { %1819 = vmatmul.f32.gmra.mxu1 %v1764_v15 }
 0x3d2   : > { %v1300_v60 = vpop.f32.mrf.mxu2 }
 0x3d3   : > { %v1366_v40 = vpop.f32.mrf.mxu3  ;;  %v1301_v27 = vadd.f32 %v1300_v60, %v1259_v4  ;;  %v1975_v60 = vld [vmem:[%s4506_s7 + $0x78] sm:$0xff] }
 0x3d4   : > { %v1440_v36 = vpop.f32.mrf.mxu0  ;;  %1976 = vmatpush.msra.mxu2 %v1975_v60  ;;  %2604 = vmatpush.msrb.mxu3 %v1975_v60 }
 0x3d5   : > { %v1382_v34 = vadd.f32 %v1366_v40, %v1301_v27  ;;  %v1265_v37 = vpop.f32.mrf.mxu1  ;;  %v1974_v40 = vld [vmem:[%s4506_s7 + $0x70] sm:$0xff] }
 0x3d6   : > { %1977 = vmatpush.msra.mxu2 %v1974_v40  ;;  %2605 = vmatpush.msrb.mxu3 %v1974_v40 }
 0x3d7   : > { %v4156_v44 = vadd.f32 %v1440_v36, %v1382_v34 }
 0x3da   : > { %v1303_v22 = vpop.f32.mrf.mxu2 }
 0x3db   : > { %v1369_v43 = vpop.f32.mrf.mxu3  ;;  %v1304_v38 = vadd.f32 %v1303_v22, %v1262_v6 }
 0x3dc   : > { %v1443_v42 = vpop.f32.mrf.mxu0 }
 0x3dd   : > { %v1383_v16 = vadd.f32 %v1369_v43, %v1304_v38  ;;  %v1268_v46 = vpop.f32.mrf.mxu1  ;;  %v1973_v38 = vld [vmem:[%s4506_s7 + $0x68] sm:$0xff] }
 0x3de   : > { %1978 = vmatpush.msra.mxu2 %v1973_v38  ;;  %2606 = vmatpush.msrb.mxu3 %v1973_v38  ;;  %v1960_v38 = vld [vmem:[%s4506_s7] sm:$0xff] }
 0x3df   : > { %v4158_v45 = vadd.f32 %v1443_v42, %v1383_v16 }
 0x3e2   : > { %v1306_v47 = vpop.f32.mrf.mxu2 }
 0x3e3   : > { %v1372_v52 = vpop.f32.mrf.mxu3  ;;  %v1307_v53 = vadd.f32 %v1306_v47, %v1265_v37 }
 0x3e4   : > { %v1446_v50 = vpop.f32.mrf.mxu0 }
 0x3e5   : > { %v1384_v55 = vadd.f32 %v1372_v52, %v1307_v53  ;;  %v1502_v57 = vpop.f32.mrf.mxu1 }
 0x3e6   : > { %v1526_v54 = vadd.f32 %v1502_v57, %v1452_v61 }
 0x3e7   : > { %v4160_v1 = vadd.f32 %v1446_v50, %v1384_v55  ;;  %v1971_v55 = vld [vmem:[%s4506_s7 + $0x58] sm:$0xff] }
 0x3ea   : > { %v1309_v24 = vpop.f32.mrf.mxu2 }
 0x3eb   : > { %v1375_v59 = vpop.f32.mrf.mxu3  ;;  %v1310_v41 = vadd.f32 %v1309_v24, %v1268_v46  ;;  %v1972_v46 = vld [vmem:[%s4506_s7 + $0x60] sm:$0xff] }
 0x3ec   : > { %v1449_v35 = vpop.f32.mrf.mxu0  ;;  %1979 = vmatpush.msra.mxu2 %v1972_v46  ;;  %2607 = vmatpush.msrb.mxu3 %v1972_v46  ;;  %v2698_v46 = vld [vmem:[%s3013_s27 + $0x1b0] sm:$0xff] }
 0x3ed   : > { %v1385_v3 = vadd.f32 %v1375_v59, %v1310_v41  ;;  %v1505_v17 = vpop.f32.mrf.mxu1 }
 0x3ee   : > { %v1527_v30 = vadd.f32 %v1505_v17, %v1453_v11  ;;  %1980 = vmatpush.msra.mxu2 %v1971_v55  ;;  %2608 = vmatpush.msrb.mxu3 %v1971_v55  ;;  %v2703_v55 = vld [vmem:[%s3013_s27 + $0x1e0] sm:$0xff] }
 0x3ef   : > { %v4162_v13 = vadd.f32 %v1449_v35, %v1385_v3 }
 0x3f2   : > { %v1576_v2 = vpop.f32.mrf.mxu2 }
 0x3f3   : > { %v1600_v5 = vadd.f32 %v1576_v2, %v1526_v54  ;;  %v1651_v10 = vpop.f32.mrf.mxu3  ;;  %v1970_v54 = vld [vmem:[%s4506_s7 + $0x50] sm:$0xff] }
 0x3f4   : > { %v1725_v20 = vpop.f32.mrf.mxu0  ;;  %1981 = vmatpush.msra.mxu2 %v1970_v54  ;;  %2609 = vmatpush.msrb.mxu3 %v1970_v54 }
 0x3f5   : > { %v1675_v14 = vadd.f32 %v1651_v10, %v1600_v5  ;;  %v1508_v26 = vpop.f32.mrf.mxu1 }
 0x3f6   : > { %v1528_v31 = vadd.f32 %v1508_v26, %v1454_v9  ;;  %v1968_v26 = vld [vmem:[%s4506_s7 + $0x40] sm:$0xff] }
 0x3f7   : > { %v1749_v49 = vadd.f32 %v1725_v20, %v1675_v14 }
 0x3fa   : > { %v1579_v12 = vpop.f32.mrf.mxu2 }
 0x3fb   : > { %v1654_v0 = vpop.f32.mrf.mxu3  ;;  %v1601_v27 = vadd.f32 %v1579_v12, %v1527_v30  ;;  %v1969_v30 = vld [vmem:[%s4506_s7 + $0x48] sm:$0xff]  ;;  %v1967_v12 = vld [vmem:[%s4506_s7 + $0x38] sm:$0xff] }
 0x3fc   : > { %v1728_v25 = vpop.f32.mrf.mxu0  ;;  %1982 = vmatpush.msra.mxu2 %v1969_v30  ;;  %2610 = vmatpush.msrb.mxu3 %v1969_v30 }
 0x3fd   : > { %v1511_v58 = vpop.f32.mrf.mxu1  ;;  %v1676_v47 = vadd.f32 %v1654_v0, %v1601_v27 }
 0x3fe   : > { %v1529_v61 = vadd.f32 %v1511_v58, %v1455_v29  ;;  %1983 = vmatpush.msra.mxu2 %v1968_v26  ;;  %2611 = vmatpush.msrb.mxu3 %v1968_v26 }
 0x3ff   : > { %v1750_v24 = vadd.f32 %v1728_v25, %v1676_v47  ;;  %v2699_v47 = vld [vmem:[%s3013_s27 + $0x210] sm:$0xff] }
 0x400   : > { %1984 = vmatpush.msra.mxu2 %v1967_v12  ;;  %2612 = vmatpush.msrb.mxu3 %v1967_v12 }
 0x402   : > { %v1582_v11 = vpop.f32.mrf.mxu2 }
 0x403   : > { %v1657_v33 = vpop.f32.mrf.mxu3  ;;  %v1602_v34 = vadd.f32 %v1582_v11, %v1528_v31 }
 0x404   : > { %v1731_v62 = vpop.f32.mrf.mxu0 }
 0x405   : > { %v1514_v8 = vpop.f32.mrf.mxu1  ;;  %v1677_v52 = vadd.f32 %v1657_v33, %v1602_v34 }
 0x406   : > { %v1530_v37 = vadd.f32 %v1514_v8, %v4156_v44 }
 0x407   : > { %v1751_v59 = vadd.f32 %v1731_v62, %v1677_v52  ;;  %v2700_v52 = vld [vmem:[%s3013_s27 + $0x1c0] sm:$0xff] }
 0x40a   : > { %v1585_v48 = vpop.f32.mrf.mxu2 }
 0x40b   : > { %v1660_v9 = vpop.f32.mrf.mxu3  ;;  %v1603_v36 = vadd.f32 %v1585_v48, %v1529_v61 }
 0x40c   : > { %v1734_v28 = vpop.f32.mrf.mxu0 }
 0x40d   : > { %v1517_v32 = vpop.f32.mrf.mxu1  ;;  %v1678_v53 = vadd.f32 %v1660_v9, %v1603_v36  ;;  %v1965_v9 = vld [vmem:[%s4506_s7 + $0x28] sm:$0xff] }
 0x40e   : > { %v1531_v44 = vadd.f32 %v1517_v32, %v4158_v45  ;;  %v1966_v32 = vld [vmem:[%s4506_s7 + $0x30] sm:$0xff] }
 0x40f   : > { %v1752_v45 = vadd.f32 %v1734_v28, %v1678_v53  ;;  %1985 = vmatpush.msra.mxu2 %v1966_v32  ;;  %2613 = vmatpush.msrb.mxu3 %v1966_v32  ;;  %v2701_v53 = vld [vmem:[%s3013_s27 + $0x220] sm:$0xff] }
 0x411   : > { %1986 = vmatpush.msra.mxu2 %v1965_v9  ;;  %2614 = vmatpush.msrb.mxu3 %v1965_v9 }
 0x412   : > { %v1588_v63 = vpop.f32.mrf.mxu2 }
 0x413   : > { %v1663_v7 = vpop.f32.mrf.mxu3  ;;  %v1604_v16 = vadd.f32 %v1588_v63, %v1530_v37  ;;  %v1961_v37 = vld [vmem:[%s4506_s7 + $0x8] sm:$0xff] }
 0x414   : > { %v1737_v19 = vpop.f32.mrf.mxu0 }
 0x415   : > { %v1520_v39 = vpop.f32.mrf.mxu1  ;;  %v1679_v50 = vadd.f32 %v1663_v7, %v1604_v16  ;;  %v1964_v7 = vld [vmem:[%s4506_s7 + $0x20] sm:$0xff] }
 0x416   : > { %v1532_v2 = vadd.f32 %v1520_v39, %v4160_v1  ;;  %1987 = vmatpush.msra.mxu2 %v1964_v7  ;;  %2615 = vmatpush.msrb.mxu3 %v1964_v7 }
 0x417   : > { %v1753_v14 = vadd.f32 %v1737_v19, %v1679_v50  ;;  %v2704_v50 = vld [vmem:[%s3013_s27 + $0x1f0] sm:$0xff] }
 0x41a   : > { %v1591_v18 = vpop.f32.mrf.mxu2 }
 0x41b   : > { %v1666_v29 = vpop.f32.mrf.mxu3  ;;  %v1605_v57 = vadd.f32 %v1591_v18, %v1531_v44  ;;  %v2702_v44 = vld [vmem:[%s3013_s27 + $0x1d0] sm:$0xff] }
 0x41c   : > { %v4164_v23 = vpop.f32.mrf.mxu0 }
 0x41d   : > { %v4166_v4 = vpop.f32.mrf.mxu1  ;;  %v1680_v20 = vadd.f32 %v1666_v29, %v1605_v57  ;;  %v1963_v29 = vld [vmem:[%s4506_s7 + $0x18] sm:$0xff]  ;;  %v2705_v57 = vld [vmem:[%s3013_s27 + $0x200] sm:$0xff] }
 0x41e   : > { %v1533_v62 = vadd.f32 %v4166_v4, %v4162_v13  ;;  %1988 = vmatpush.msra.mxu2 %v1963_v29  ;;  %2616 = vmatpush.msrb.mxu3 %v1963_v29 }
 0x41f   : > { %v1754_v11 = vadd.f32 %v4164_v23, %v1680_v20 }
 0x422   : > { %v1594_v42 = vpop.f32.mrf.mxu2 }
 0x423   : > { %v1669_v41 = vpop.f32.mrf.mxu3  ;;  %v1606_v31 = vadd.f32 %v1594_v42, %v1532_v2 }
 0x424   : > { %v4168_v51 = vpop.f32.mrf.mxu0 }
 0x425   : > { %v1805_v21 = vpop.f32.mrf.mxu1  ;;  %v1681_v33 = vadd.f32 %v1669_v41, %v1606_v31 }
 0x426   : > { %v4198_v5 = vadd.f32 %v1805_v21, %v1751_v59 }
 0x427   : > { %v1755_v18 = vadd.f32 %v4168_v51, %v1681_v33  ;;  %v1962_v51 = vld [vmem:[%s4506_s7 + $0x10] sm:$0xff] }
 0x428   : > { %v1833_v8 = vsel %vm1014_vm0, %v4198_v5, 0.0  ;;  %1989 = vmatpush.msra.mxu2 %v1962_v51  ;;  %2617 = vmatpush.msrb.mxu3 %v1962_v51 }
 0x42a   : > { %v1597_v58 = vpop.f32.mrf.mxu2  ;;  %1990 = vmatpush.msra.mxu2 %v1961_v37  ;;  %2618 = vmatpush.msrb.mxu3 %v1961_v37 }
 0x42b   : > { %v1607_v19 = vadd.f32 %v1597_v58, %v1533_v62  ;;  %v1672_v39 = vpop.f32.mrf.mxu3 }
 0x42c   : > { %v4170_v6 = vpop.f32.mrf.mxu0  ;;  %1991 = vmatpush.msra.mxu2 %v1960_v38  ;;  %2619 = vmatpush.msrb.mxu3 %v1960_v38 }
 0x42d   : > { %v1808_v15 = vpop.f32.mrf.mxu1  ;;  %1992 = vmatmul.f32.vlgmr.msra.gmra.mxu2 %v2698_v46  ;;  %2010 = vmatmul.f32.vlgmr.msrb.gmra.mxu3 %v2699_v47 }
 0x42e   : > { %v4208_v25 = vadd.f32 %v1808_v15, %v1752_v45  ;;  %v1682_v15 = vadd.f32 %v1672_v39, %v1607_v19 }
 0x430   : > { %v1834_v13 = vsel %vm1014_vm0, %v4208_v25, 0.0  ;;  %v1756_v34 = vadd.f32 %v4170_v6, %v1682_v15 }
 0x434   : > { %v1799_v22 = vpop.f32.mrf.mxu0 }
 0x435   : > { %v1811_v43 = vpop.f32.mrf.mxu1  ;;  %v4192_v3 = vadd.f32 %v1799_v22, %v1749_v49  ;;  %1995 = vmatmul.f32.gmra.mxu2 %v2700_v52  ;;  %2013 = vmatmul.f32.gmra.mxu3 %v2701_v53 }
 0x436   : > { %v4221_v0 = vadd.f32 %v1811_v43, %v1753_v14 }
 0x437   : > { %v1831_v49 = vsel %vm1014_vm0, %v4192_v3, 0.0 }
 0x438   : > { %v1835_v63 = vsel %vm1014_vm0, %v4221_v0, 0.0 }
 0x43c   : > { %v1802_v35 = vpop.f32.mrf.mxu0 }
 0x43d   : > { %v1814_v17 = vpop.f32.mrf.mxu1  ;;  %v4200_v10 = vadd.f32 %v1802_v35, %v1750_v24  ;;  %1998 = vmatmul.f32.gmra.mxu2 %v2702_v44 }
 0x43e   : > { %v4236_v23 = vadd.f32 %v1814_v17, %v1754_v11 }
 0x43f   : > { %v1832_v1 = vsel %vm1014_vm0, %v4200_v10, 0.0 }
 0x440   : > { %v1839_v61 = vadd.f32 %v1832_v1, %v1831_v49  ;;  %v1836_v60 = vsel %vm1014_vm0, %v4236_v23, 0.0 }
 0x442   : > { %v1840_v28 = vadd.f32 %v1839_v61, %v1833_v8 }
 0x444   : > { %v1841_v48 = vadd.f32 %v1840_v28, %v1834_v13 }
 0x445   : > { %v1817_v4 = vpop.f32.mrf.mxu1  ;;  %2001 = vmatmul.f32.gmra.mxu2 %v2703_v55 }
 0x446   : > { %v1842_v21 = vadd.f32 %v1841_v48, %v1835_v63  ;;  %v4248_v40 = vadd.f32 %v1817_v4, %v1755_v18 }
 0x448   : > { %v1843_v27 = vadd.f32 %v1842_v21, %v1836_v60  ;;  %v1837_v22 = vsel %vm1014_vm0, %v4248_v40, 0.0 }
 0x44a   : > { %v1844_v6 = vadd.f32 %v1843_v27, %v1837_v22 }
 0x44d   : > { %v1820_v36 = vpop.f32.mrf.mxu1  ;;  %2004 = vmatmul.f32.gmra.mxu2 %v2704_v50 }
 0x44e   : > { %v4260_v43 = vadd.f32 %v1820_v36, %v1756_v34 }
 0x450   : > { %v1838_v16 = vsel %vm1014_vm0, %v4260_v43, 0.0 }
 0x451   : > { %v1845_v42 = vadd.f32 %v1844_v6, %v1838_v16 }
 0x453   : > { %1846 = vadd.xlane.f32.xlu1 %v1845_v42 }
 0x455   : > { %2007 = vmatmul.f32.gmra.mxu2 %v2705_v57 }
 0x4b0   : > { %v4276_v30 = vpop.f32.mrf.mxu2  ;;  %v4310_v33 = vpop.f32.mrf.mxu3 }
 0x4b1   : > { %v2017_v20 = vsel %vm1014_vm0, %v4276_v30, 0.0  ;;  %v2023_v6 = vsel %vm1014_vm0, %v4310_v33, 0.0 }
 0x4b8   : > { %v4278_v2 = vpop.f32.mrf.mxu2  ;;  %v4354_v37 = vpop.f32.mrf.mxu3 }
 0x4b9   : > { %v2018_v26 = vsel %vm1014_vm0, %v4278_v2, 0.0  ;;  %v2024_v47 = vsel %vm1014_vm0, %v4354_v37, 0.0 }
 0x4ba   : > { %v2025_v49 = vadd.f32 %v2018_v26, %v2017_v20 }
 0x4c0   : > { %v4280_v14 = vpop.f32.mrf.mxu2 }
 0x4c1   : > { %v2019_v58 = vsel %vm1014_vm0, %v4280_v14, 0.0 }
 0x4c2   : > { %v2026_v11 = vadd.f32 %v2025_v49, %v2019_v58 }
 0x4c6   : > { %v1847_v54 = vpop.xlane.xlu1 %1846 }
 0x4c7   : > { %v1848_v24 = vrot.slane %v1847_v54, 4 }
 0x4c8   : > { %v4288_v31 = vpop.f32.mrf.mxu2 }
 0x4c9   : > { %v1849_v59 = vadd.f32 %v1848_v24, %v1847_v54 }
 0x4cb   : > { %v1850_v41 = vrot.slane %v1849_v59, 2 }
 0x4cd   : > { %v1851_v45 = vadd.f32 %v1850_v41, %v1849_v59 }
 0x4cf   : > { %v1852_v35 = vrot.slane %v1851_v45, 1 }
 0x4d0   : > { %v4324_v13 = vpop.f32.mrf.mxu2 }
 0x4d1   : > { %v1853_v17 = vadd.f32 %v1852_v35, %v1851_v45  ;;  %v2021_v7 = vsel %vm1014_vm0, %v4324_v13, 0.0 }
 0x4d3   : > { %2629 = vpush %v1853_v17 }
 0x4d8   : > { %v4352_v36 = vpop.f32.mrf.mxu2 }
 0x4d9   : > { %v2022_v38 = vsel %vm1014_vm0, %v4352_v36, 0.0 }
 0x504   : > { %s2630_s27 = spop %2629 }
 0x505   : > { %s1863_s26 = smul.f32 %s2630_s27, %s3529_s20 }
 0x507   : > { %v1864_v1 = vstv %s1863_s26 }
 0x508   : > { %v4295_v61 = vsub.f32 %v4192_v3, %v1864_v1  ;;  %v4298_v12 = vsub.f32 %v4200_v10, %v1864_v1  ;;  %v4301_v62 = vsub.f32 %v4198_v5, %v1864_v1  ;;  %v4304_v8 = vsub.f32 %v4208_v25, %v1864_v1 }
 0x509   : > { %v4313_v3 = vsub.f32 %v4221_v0, %v1864_v1  ;;  %v2020_v5 = vsel %vm1014_vm0, %v4288_v31, 0.0  ;;  %v4327_v39 = vsub.f32 %v4236_v23, %v1864_v1  ;;  %v4332_v9 = vsub.f32 %v4248_v40, %v1864_v1 }
 0x50a   : > { %v1873_v28 = vmul.f32 %v4295_v61, %v4295_v61  ;;  %v1874_v32 = vmul.f32 %v4298_v12, %v4298_v12  ;;  %v1875_v10 = vmul.f32 %v4301_v62, %v4301_v62  ;;  %v1876_v0 = vmul.f32 %v4304_v8, %v4304_v8 }
 0x50b   : > { %v2027_v4 = vadd.f32 %v2026_v11, %v2020_v5  ;;  %v1877_v63 = vmul.f32 %v4313_v3, %v4313_v3  ;;  %v4342_v18 = vsub.f32 %v4260_v43, %v1864_v1  ;;  %v1878_v15 = vmul.f32 %v4327_v39, %v4327_v39 }
 0x50c   : > { %v1881_v25 = vsel %vm1014_vm0, %v1873_v28, 0.0  ;;  %v1882_v19 = vsel %vm1014_vm0, %v1874_v32, 0.0  ;;  %v1883_v21 = vsel %vm1014_vm0, %v1875_v10, 0.0  ;;  %v1884_v29 = vsel %vm1014_vm0, %v1876_v0, 0.0 }
 0x50d   : > { %v1889_v48 = vadd.f32 %v1882_v19, %v1881_v25  ;;  %v2028_v40 = vadd.f32 %v2027_v4, %v2021_v7  ;;  %v1879_v27 = vmul.f32 %v4332_v9, %v4332_v9  ;;  %v1885_v51 = vsel %vm1014_vm0, %v1877_v63, 0.0 }
 0x50e   : > { %v1880_v22 = vmul.f32 %v4342_v18, %v4342_v18  ;;  %v1886_v43 = vsel %vm1014_vm0, %v1878_v15, 0.0 }
 0x50f   : > { %v1890_v23 = vadd.f32 %v1889_v48, %v1883_v21  ;;  %v2029_v42 = vadd.f32 %v2028_v40, %v2022_v38  ;;  %v1887_v46 = vsel %vm1014_vm0, %v1879_v27, 0.0 }
 0x510   : > { %v1888_v44 = vsel %vm1014_vm0, %v1880_v22, 0.0 }
 0x511   : > { %v1891_v60 = vadd.f32 %v1890_v23, %v1884_v29  ;;  %v2030_v53 = vadd.f32 %v2029_v42, %v2023_v6 }
 0x513   : > { %v1892_v34 = vadd.f32 %v1891_v60, %v1885_v51  ;;  %v2031_v50 = vadd.f32 %v2030_v53, %v2024_v47 }
 0x515   : > { %v1893_v16 = vadd.f32 %v1892_v34, %v1886_v43  ;;  %2032 = vadd.xlane.f32.xlu2 %v2031_v50 }
 0x517   : > { %v1894_v52 = vadd.f32 %v1893_v16, %v1887_v46 }
 0x519   : > { %v1895_v55 = vadd.f32 %v1894_v52, %v1888_v44 }
 0x51b   : > { %1896 = vadd.xlane.f32.xlu1 %v1895_v55 }
 0x588   : > { %v2033_v17 = vpop.xlane.xlu2 %2032 }
 0x589   : > { %v2034_v20 = vrot.slane %v2033_v17, 4 }
 0x58b   : > { %v2035_v49 = vadd.f32 %v2034_v20, %v2033_v17 }
 0x58d   : > { %v2036_v1 = vrot.slane %v2035_v49, 2 }
 0x58e   : > { %v1897_v57 = vpop.xlane.xlu1 %1896 }
 0x58f   : > { %v1898_v54 = vrot.slane %v1897_v57, 4  ;;  %v2037_v11 = vadd.f32 %v2036_v1, %v2035_v49 }
 0x591   : > { %v1899_v24 = vadd.f32 %v1898_v54, %v1897_v57  ;;  %v2038_v25 = vrot.slane %v2037_v11, 1 }
 0x593   : > { %v1900_v59 = vrot.slane %v1899_v24, 2  ;;  %v2039_v48 = vadd.f32 %v2038_v25, %v2037_v11  ;;  %v2686_v25 = vld [vmem:[%s4504_s5] ss:$0 sm:$0xff] }
 0x595   : > { %v1901_v41 = vadd.f32 %v1900_v59, %v1899_v24 }
 0x597   : > { %v1902_v45 = vrot.slane %v1901_v41, 1 }
 0x599   : > { %v1903_v35 = vadd.f32 %v1902_v45, %v1901_v41 }
 0x59b   : > { %2631 = vpush %v1903_v35 }
 0x5cc   : > { %s2632_s28 = spop %2631 }
 0x5cd   : > { %s1913_s29 = smul.f32 %s2632_s28, %s3529_s20 }
 0x5cf   : > { %s1914_s30 = sadd.f32 1e-05, %s1913_s29 }
 0x5d1   : > { %v1915_v26 = vstv %s1914_s30 }
 0x5d2   : > { %2694 = vrsqrt.f32 %v1915_v26  ;;  %vm1922_vm6 = vweird.f32 %v1915_v26 }
 0x5d8   : > { %v2695_v58 = vpop.eup %2694 }
 0x5d9   : > { %v1917_v28 = vmul.f32 %v2695_v58, %v1915_v26  ;;  %vm1923_vm5 = vweird.f32 %v2695_v58 }
 0x5da   : > { %vm1924_vm7 = vmor %vm1922_vm6, %vm1923_vm5 }
 0x5db   : > { %v1918_v32 = vmul.f32 %v2695_v58, %v1917_v28 }
 0x5dd   : > { %v1919_v10 = vmul.f32 0.5, %v1918_v32 }
 0x5df   : > { %v1920_v5 = vsub.f32 1.5, %v1919_v10 }
 0x5e1   : > { %v1921_v19 = vmul.f32 %v2695_v58, %v1920_v5 }
 0x5e3   : > { %v1925_v0 = vsel %vm1924_vm7, %v2695_v58, %v1921_v19 }
 0x5e4   : > { %2633 = vpush %v1925_v0 }
 0x5e5   : > { %2635 = vpush %v2039_v48 }
 0x615   : > { %s4374_s12 = spop %2633 }
 0x616   : > { %s2636_s22 = spop %2635  ;;  %v1927_v28 = vstv %s4374_s12  ;;  %s2726_s12 = scalar_lea.hbm %s4509_s10, 128 }
 0x617   : > { %s2049_s0 = smul.f32 %s2636_s22, %s3529_s20  ;;  %v1928_v32 = vmul.f32 %v1927_v28, %v4295_v61  ;;  %v1929_v11 = vmul.f32 %v1927_v28, %v4298_v12  ;;  %v1930_v10 = vmul.f32 %v1927_v28, %v4301_v62  ;;  %v1931_v5 = vmul.f32 %v1927_v28, %v4304_v8  ;;  %v2687_v62 = vld [vmem:[%s4505_s6] ss:$0 sm:$0xff]  ;;  %s350_s22 = sand.u32 1, %s2760_s14  }
 0x618   : > { %v1932_v19 = vmul.f32 %v1927_v28, %v4313_v3  ;;  %v1933_v0 = vmul.f32 %v1927_v28, %v4327_v39  ;;  %v1934_v48 = vmul.f32 %v1927_v28, %v4332_v9  ;;  %v2688_v9 = vld [vmem:[%s4507_s8] ss:$0 sm:$0xff]  ;;  %s2171_s27 = scalar_lea.sflag [#allocation4], %s350_s22 }
 0x619   : > { %v2050_v4 = vstv %s2049_s0  ;;  %v1941_v61 = vmul.f32 %v2686_v25, %v1929_v11  ;;  %v1943_v12 = vmul.f32 %v2686_v25, %v1931_v5  ;;  %s2252_s0 = sshll.u32 %s350_s22, 6 }
 0x61a   : > { %v4378_v63 = vsub.f32 %v4276_v30, %v2050_v4  ;;  %v4381_v21 = vsub.f32 %v4278_v2, %v2050_v4  ;;  %v4384_v7 = vsub.f32 %v4280_v14, %v2050_v4  ;;  %v4387_v23 = vsub.f32 %v4288_v31, %v2050_v4  ;;  %s352_s25 = scalar_lea.vmem [#allocation3], %s2252_s0 }
 0x61b   : > { %v4394_v60 = vsub.f32 %v4324_v13, %v2050_v4  ;;  %v4403_v31 = vsub.f32 %v4352_v36, %v2050_v4  ;;  %v4408_v51 = vsub.f32 %v4310_v33, %v2050_v4  ;;  %v4415_v43 = vsub.f32 %v4354_v37, %v2050_v4 }
 0x61c   : > { %v2059_v15 = vmul.f32 %v4378_v63, %v4378_v63  ;;  %v2060_v29 = vmul.f32 %v4381_v21, %v4381_v21  ;;  %v2061_v30 = vmul.f32 %v4384_v7, %v4384_v7  ;;  %v2062_v40 = vmul.f32 %v4387_v23, %v4387_v23 }
 0x61d   : > { %v2063_v13 = vmul.f32 %v4394_v60, %v4394_v60  ;;  %v2064_v36 = vmul.f32 %v4403_v31, %v4403_v31  ;;  %v2065_v33 = vmul.f32 %v4408_v51, %v4408_v51  ;;  %v2066_v46 = vmul.f32 %v4415_v43, %v4415_v43 }
 0x61e   : > { %v2067_v2 = vsel %vm1014_vm0, %v2059_v15, 0.0  ;;  %v2068_v14 = vsel %vm1014_vm0, %v2060_v29, 0.0  ;;  %v2069_v34 = vsel %vm1014_vm0, %v2061_v30, 0.0  ;;  %v2070_v6 = vsel %vm1014_vm0, %v2062_v40, 0.0 }
 0x61f   : > { %v2075_v27 = vadd.f32 %v2068_v14, %v2067_v2  ;;  %v2071_v16 = vsel %vm1014_vm0, %v2063_v13, 0.0  ;;  %v2072_v37 = vsel %vm1014_vm0, %v2064_v36, 0.0  ;;  %v2073_v52 = vsel %vm1014_vm0, %v2065_v33, 0.0 }
 0x620   : > { %v2074_v44 = vsel %vm1014_vm0, %v2066_v46, 0.0  ;;  %v1935_v4 = vmul.f32 %v1927_v28, %v4342_v18  ;;  %v1940_v15 = vmul.f32 %v2686_v25, %v1928_v32  ;;  %v1942_v29 = vmul.f32 %v2686_v25, %v1930_v10 }
 0x621   : > { %v2076_v22 = vadd.f32 %v2075_v27, %v2069_v34  ;;  %v1944_v8 = vmul.f32 %v2686_v25, %v1932_v19  ;;  %v1945_v30 = vmul.f32 %v2686_v25, %v1933_v0  ;;  %v1946_v2 = vmul.f32 %v2686_v25, %v1934_v48 }
 0x622   : > { %v1947_v14 = vmul.f32 %v2686_v25, %v1935_v4  ;;  %v1952_v3 = vadd.f32 %v2687_v62, %v1940_v15  ;;  %v1953_v40 = vadd.f32 %v2687_v62, %v1941_v61  ;;  %v1954_v39 = vadd.f32 %v2687_v62, %v1942_v29 }
 0x623   : > { %v2077_v38 = vadd.f32 %v2076_v22, %v2070_v6  ;;  %v1955_v27 = vadd.f32 %v2687_v62, %v1943_v12  ;;  %v1956_v18 = vadd.f32 %v2687_v62, %v1944_v8  ;;  %v1957_v13 = vadd.f32 %v2687_v62, %v1945_v30 }
 0x624   : > { %v1958_v34 = vadd.f32 %v2687_v62, %v1946_v2 }
 0x625   : > { %v2078_v42 = vadd.f32 %v2077_v38, %v2071_v16  ;;  %v2689_v16 = vld [vmem:[%s4508_s9] ss:$0 sm:$0xff] }
 0x627   : > { %v2079_v47 = vadd.f32 %v2078_v42, %v2072_v37 }
 0x629   : > { %v2080_v53 = vadd.f32 %v2079_v47, %v2073_v52 }
 0x62b   : > { %v2081_v55 = vadd.f32 %v2080_v53, %v2074_v44 }
 0x62d   : > { %2082 = vadd.xlane.f32.xlu2 %v2081_v55 }
 0x6a0   : > { %v2083_v50 = vpop.xlane.xlu2 %2082 }
 0x6a1   : > { %v2084_v57 = vrot.slane %v2083_v50, 4 }
 0x6a3   : > { %v2085_v54 = vadd.f32 %v2084_v57, %v2083_v50 }
 0x6a5   : > { %v2086_v24 = vrot.slane %v2085_v54, 2 }
 0x6a7   : > { %v2087_v59 = vadd.f32 %v2086_v24, %v2085_v54 }
 0x6a9   : > { %v2088_v41 = vrot.slane %v2087_v59, 1 }
 0x6ab   : > { %v2089_v45 = vadd.f32 %v2088_v41, %v2087_v59 }
 0x6ad   : > { %2637 = vpush %v2089_v45 }
 0x6de   : > { %s2638_s21 = spop %2637 }
 0x6df   : > { %s2099_s18 = smul.f32 %s2638_s21, %s3529_s20  ;;  %s2571_s21 = sshll.u32 %s2850_s17, 6 }
 0x6e0   : > { %s2182_s20 = scalar_lea.hbm %s4509_s10, %s2571_s21  ;;  %s2183_s17 = sshll.u32 %s352_s25, 4  ;;  %s2184_s17 = int_to_ptr.vmem [resolvable:$true] %s2183_s17 }
 0x6e1   : > { %s2100_s1 = sadd.f32 1e-05, %s2099_s18  ;;  %s2185_s11 = sshll.u32 %s2182_s20, 4  ;;  %s2186_s11 = int_to_ptr.hbm [resolvable:$true] %s2185_s11 }
 0x6e3   : > { %v2101_v35 = vstv %s2100_s1 }
 0x6e4   : > { %2696 = vrsqrt.f32 %v2101_v35  ;;  %vm2108_vm9 = vweird.f32 %v2101_v35 }
 0x6ea   : > { %v2697_v17 = vpop.eup %2696 }
 0x6eb   : > { %v2103_v20 = vmul.f32 %v2697_v17, %v2101_v35  ;;  %vm2109_vm8 = vweird.f32 %v2697_v17 }
 0x6ec   : > { %vm2110_vm10 = vmor %vm2108_vm9, %vm2109_vm8 }
 0x6ed   : > { %v2104_v56 = vmul.f32 %v2697_v17, %v2103_v20 }
 0x6ef   : > { %v2105_v26 = vmul.f32 0.5, %v2104_v56 }
 0x6f1   : > { %v2106_v49 = vsub.f32 1.5, %v2105_v26 }
 0x6f3   : > { %v2107_v1 = vmul.f32 %v2697_v17, %v2106_v49 }
 0x6f5   : > { %v2111_v58 = vsel %vm2110_vm10, %v2697_v17, %v2107_v1  ;;  %v1959_v17 = vadd.f32 %v2687_v62, %v1947_v14 }
 0x6f6   : > { %2639 = vpush %v2111_v58 }
 0x727   : > { %s2640_s26 = spop %2639 }
 0x728   : > { %v2113_v22 = vstv %s2640_s26  ;;  %s2720_s26 = sshra.s32 %s2186_s11, 4  ;;  %s2721_s26 = int_to_ptr.hbm [resolvable:$true] %s2720_s26 }
 0x729   : > { %v2114_v36 = vmul.f32 %v2113_v22, %v4378_v63  ;;  %v2115_v6 = vmul.f32 %v2113_v22, %v4381_v21  ;;  %v2116_v38 = vmul.f32 %v2113_v22, %v4384_v7  ;;  %v2117_v33 = vmul.f32 %v2113_v22, %v4387_v23  ;;  %s2722_s28 = scalar_lea.hbm %s2721_s26, 64  ;;  %p2727_p0 = scmp.lt.s32.totalorder %s2721_s26, %s4509_s10 }
 0x72a   : > { %v2118_v42 = vmul.f32 %v2113_v22, %v4394_v60  ;;  %v2119_v46 = vmul.f32 %v2113_v22, %v4403_v31  ;;  %v2120_v37 = vmul.f32 %v2113_v22, %v4408_v51  ;;  %v2121_v63 = vmul.f32 %v2113_v22, %v4415_v43  ;;  %p2723_p11 = scmp.ne.s32.totalorder %s2721_s26, %s2722_s28  ;;  %p2728_p1 = scmp.lt.s32.totalorder %s2726_s12, %s2722_s28 }
 0x72b   : > { %v2126_v47 = vmul.f32 %v2688_v9, %v2114_v36  ;;  %v2127_v21 = vmul.f32 %v2688_v9, %v2115_v6  ;;  %v2128_v7 = vmul.f32 %v2688_v9, %v2116_v38  ;;  %v2129_v52 = vmul.f32 %v2688_v9, %v2117_v33 }
 0x72c   : > { %v2130_v53 = vmul.f32 %v2688_v9, %v2118_v42  ;;  %v2131_v23 = vmul.f32 %v2688_v9, %v2119_v46  ;;  %v2132_v44 = vmul.f32 %v2688_v9, %v2120_v37  ;;  %v2133_v55 = vmul.f32 %v2688_v9, %v2121_v63  ;;  %p2724_p12 = pnand %p2723_p11, %p2867_p5  ;;  %p2729_p2 = por %p2728_p1, %p2727_p0 }
 0x72d   : > { %v2138_v50 = vadd.f32 %v2689_v16, %v2126_v47  ;;  %v2139_v57 = vadd.f32 %v2689_v16, %v2127_v21  ;;  %v2140_v60 = vadd.f32 %v2689_v16, %v2128_v7  ;;  %v2141_v54 = vadd.f32 %v2689_v16, %v2129_v52 }
 0x72e   : > { %v2142_v31 = vadd.f32 %v2689_v16, %v2130_v53  ;;  %v2143_v24 = vadd.f32 %v2689_v16, %v2131_v23  ;;  %v2144_v51 = vadd.f32 %v2689_v16, %v2132_v44  ;;  %v2145_v59 = vadd.f32 %v2689_v16, %v2133_v55  ;;  %p2725_p13 = pneg %p2724_p12 }
 0x72f   : > { %v2146_v43 = vadd.f32 %v2138_v50, %v1952_v3  ;;  %v2147_v41 = vadd.f32 %v2139_v57, %v1953_v40  ;;  %v2148_v45 = vadd.f32 %v2140_v60, %v1954_v39  ;;  %v2149_v35 = vadd.f32 %v2141_v54, %v1955_v27 }
 0x730   : > { %v2150_v20 = vadd.f32 %v2142_v31, %v1956_v18  ;;  %v2151_v56 = vadd.f32 %v2143_v24, %v1957_v13  ;;  %v2152_v26 = vadd.f32 %v2144_v51, %v1958_v34  ;;  %v2153_v28 = vadd.f32 %v2145_v59, %v1959_v17  ;;  %p2730_p3 = pnand %p2729_p2, %p2725_p13 }
 0x731   : > { %v2154_v49 = vmax.f32 %v2146_v43, 0.0  ;;  %v2155_v1 = vmax.f32 %v2147_v41, 0.0  ;;  %v2156_v58 = vmax.f32 %v2148_v45, 0.0  ;;  %v2157_v32 = vmax.f32 %v2149_v35, 0.0 }
 0x732   : > { %v2158_v11 = vmax.f32 %v2150_v20, 0.0  ;;  %v2159_v10 = vmax.f32 %v2151_v56, 0.0  ;;  %v2160_v5 = vmax.f32 %v2152_v26, 0.0  ;;  %v2161_v25 = vmax.f32 %v2153_v28, 0.0 }
 0x733   : > { %2162 = vst [vmem:[%s352_s25] sm:$0xff] %v2154_v49 }
 0x734   : > { %2163 = vst [vmem:[%s352_s25 + $0x8] sm:$0xff] %v2155_v1 }
 0x735   : > { %2164 = vst [vmem:[%s352_s25 + $0x10] sm:$0xff] %v2156_v58 }
 0x736   : > { %2165 = vst [vmem:[%s352_s25 + $0x18] sm:$0xff] %v2157_v32 }
 0x737   : > { %2166 = vst [vmem:[%s352_s25 + $0x20] sm:$0xff] %v2158_v11 }
 0x738   : > { %2167 = vst [vmem:[%s352_s25 + $0x28] sm:$0xff] %v2159_v10 }
 0x739   : > { %2168 = vst [vmem:[%s352_s25 + $0x30] sm:$0xff] %v2160_v5 }
 0x73a   : > { %2169 = vst [vmem:[%s352_s25 + $0x38] sm:$0xff] %v2161_v25 }
 0x73b   : > { %2733 = shalt.err (!%p2730_p3)
}
 0x73c   : > { %s2772_s22 = smov 128   ;;  %s2773_s18 = smov 8  }
 0x73d   : > { %2641 = dma.vmem_to_hbm [thread:$0]  (%p2867_p5), %s2184_s17, 1024, %s2186_s11, %s2171_s27, %s2772_s22, %s2772_s22, %s2773_s18  }
 0x73e PF: > { %p2647_p4 = scmp.ge.s32.totalorder %s2768_s16, 2  ;;  %s2200_s1 = sand.u32 1, %s2756_s13  }
 0x73f   : > { %s2201_s20 = scalar_lea.sflag [#allocation4], %s2200_s1 }
 0x740   : > { %p2644_p7 = pnand %p2647_p4, %p2871_p6 }
 0x742   : > { %p2645_p8 = pneg %p2644_p7 }
 0x744   : > { %2751 = dma.done.wait (%p2645_p8), %s2201_s20, 1024  }
 0x745   : > { %2753 = vsyncadd (%p2645_p8), %s2201_s20, 4294966272  ;;  %s4533_s25 = sld [smem:[#allocation6_spill]]  ;;  %p20_p9 = scmp.ge.s32.totalorder %s2854_s19, 4  }
 0x746   : > { %s4534_s13 = smov %s2760_s14  ;;  %s4535_s14 = smov %s2764_s15 }
 0x747   : > { %s4537_s16 = smov %s2854_s19  ;;  %22 = sbr.rel (!%p20_p9) target bundleno = 6 (0x6), region = 118 }
 0x74b   : > { %s4536_s15 = smov %s4533_s25 }
 0x74c   :  { %2207 = vsyncpa [#allocation4], 1 }
 0x74d   :  { %2209 = vsyncpa [#allocation4 + $0x1], 1 }

</bundles_post_ra>
